<compile_context>
chip_gen: v6e
topology: v6e:2x2x1
jax: 0.10.0
libtpu: 0.0.40
codegen_flags: <defaults>
</compile_context>

<pallas_src>
import functools

import jax
import jax.numpy as jnp
from jax.experimental import pallas as pl
from jax.experimental.pallas import tpu as pltpu

NC = 3
CIN_PAD = 8          # conv1 input channels padded 3 -> 8 (K = 4*4*8 = 128)
NDF = 64
DIM_FEATURE = 64
NEG_SLOPE = 0.2
BN_EPS = 1e-5
CDT = jnp.bfloat16   # MXU input / activation dtype


def _round_up(n, m):
    return ((n + m - 1) // m) * m


# ----------------------------------------------------------------------------
# Kernel 1: M-tiled fused  y = leaky_relu((A @ W) * scale + shift)
# ----------------------------------------------------------------------------
def _gemm_scale_bias_act_kernel(a_ref, w_ref, s_ref, b_ref, o_ref, *, apply_act):
    acc = jnp.dot(a_ref[...], w_ref[...], preferred_element_type=jnp.float32)
    y = acc * s_ref[...] + b_ref[...]
    if apply_act:
        y = jnp.where(y >= 0.0, y, NEG_SLOPE * y)
    o_ref[...] = y.astype(o_ref.dtype)


def gemm_scale_bias_act(a, w, scale, shift, apply_act=True,
                        out_dtype=CDT, tile_m=256):
    """a: (M, K) bf16; w: (K, N) bf16; scale/shift: (1, N) f32 -> (M, N)."""
    M, K = a.shape
    K2, N = w.shape
    assert K == K2
    tm = min(tile_m, _round_up(M, 8))
    Mp = _round_up(M, tm)
    if Mp != M:
        a = jnp.pad(a, ((0, Mp - M), (0, 0)))
    grid = (Mp // tm,)

    isz = lambda d: jnp.dtype(d).itemsize
    vmem = 2 * (tm * K * isz(a.dtype) + K * N * isz(w.dtype)
                + tm * N * isz(out_dtype)) + 4 * (8 * _round_up(N, 128) * 4)
    vmem = int(min(max(vmem + (4 << 20), 16 << 20), 32 << 20))

    out = pl.pallas_call(
        functools.partial(_gemm_scale_bias_act_kernel, apply_act=apply_act),
        out_shape=jax.ShapeDtypeStruct((Mp, N), out_dtype),
        grid=grid,
        in_specs=[
            pl.BlockSpec((tm, K), lambda i: (i, 0)),   # A tile, pipelined over M
            pl.BlockSpec((K, N), lambda i: (0, 0)),    # W resident (full K, N)
            pl.BlockSpec((1, N), lambda i: (0, 0)),    # scale
            pl.BlockSpec((1, N), lambda i: (0, 0)),    # shift
        ],
        out_specs=pl.BlockSpec((tm, N), lambda i: (i, 0)),
        compiler_params=pltpu.CompilerParams(
            dimension_semantics=("parallel",),
            vmem_limit_bytes=vmem),
    )(a, w, scale, shift)
    return out[:M] if Mp != M else out


# ----------------------------------------------------------------------------
# Kernel 2: fully fused `fc` head.
#   Grid axis p = 0..15 iterates the 16 spatial positions of the conv3 output.
#   Per step:  h3_p = LReLU(BN3(patches3_p @ W3))          (conv3, one position)
#              acc += h3_p @ W4[p]                          (conv4 accumulation)
#   Last step: g = LReLU(BN4(acc)); g = LReLU(g@W5+b5); out = g@W6+b6
# ----------------------------------------------------------------------------
def _fc_head_kernel(x_ref, w3_ref, s3_ref, b3_ref, w4_ref, s4_ref, b4_ref,
                    w5_ref, b5_ref, w6_ref, b6_ref, o_ref, acc_ref):
    p = pl.program_id(0)

    @pl.when(p == 0)
    def _():
        acc_ref[...] = jnp.zeros_like(acc_ref)

    h = jnp.dot(x_ref[0], w3_ref[...], preferred_element_type=jnp.float32)
    h = h * s3_ref[...] + b3_ref[...]
    h = jnp.where(h >= 0.0, h, NEG_SLOPE * h)
    acc_ref[...] += jnp.dot(h.astype(CDT), w4_ref[0],
                            preferred_element_type=jnp.float32)

    @pl.when(p == pl.num_programs(0) - 1)
    def _():
        g = acc_ref[...] * s4_ref[...] + b4_ref[...]
        g = jnp.where(g >= 0.0, g, NEG_SLOPE * g)
        g = jnp.dot(g.astype(CDT), w5_ref[...], preferred_element_type=jnp.float32)
        g = g + b5_ref[...]
        g = jnp.where(g >= 0.0, g, NEG_SLOPE * g)
        g = jnp.dot(g.astype(CDT), w6_ref[...], preferred_element_type=jnp.float32)
        g = g + b6_ref[...]
        o_ref[...] = g.astype(o_ref.dtype)


def fused_fc_head(patches_pm, w3, s3, b3, w4r, s4, b4, w5, b5, w6, b6, batch):
    """patches_pm: (P=16, Mp, K3) bf16 conv3 im2col patches (position-major,
    batch padded to Mp).  w4r: (P, 256, 256) conv4 weights split by position."""
    P, Mp, K3 = patches_pm.shape
    N3 = w3.shape[1]
    N4 = w4r.shape[2]
    N5 = w5.shape[1]
    N6 = w6.shape[1]

    out = pl.pallas_call(
        _fc_head_kernel,
        out_shape=jax.ShapeDtypeStruct((Mp, N6), jnp.float32),
        grid=(P,),
        in_specs=[
            pl.BlockSpec((1, Mp, K3), lambda p: (p, 0, 0)),   # patches, streamed
            pl.BlockSpec((K3, N3), lambda p: (0, 0)),          # W3 resident
            pl.BlockSpec((1, N3), lambda p: (0, 0)),
            pl.BlockSpec((1, N3), lambda p: (0, 0)),
            pl.BlockSpec((1, N3, N4), lambda p: (p, 0, 0)),    # W4[p], streamed
            pl.BlockSpec((1, N4), lambda p: (0, 0)),
            pl.BlockSpec((1, N4), lambda p: (0, 0)),
            pl.BlockSpec((N4, N5), lambda p: (0, 0)),          # fc1 resident
            pl.BlockSpec((1, N5), lambda p: (0, 0)),
            pl.BlockSpec((N5, N6), lambda p: (0, 0)),          # fc2 resident
            pl.BlockSpec((1, N6), lambda p: (0, 0)),
        ],
        out_specs=pl.BlockSpec((Mp, N6), lambda p: (0, 0)),    # resident output
        scratch_shapes=[pltpu.VMEM((Mp, N4), jnp.float32)],
        compiler_params=pltpu.CompilerParams(
            dimension_semantics=("arbitrary",),               # p is a reduction
            vmem_limit_bytes=32 << 20),
    )(patches_pm, w3, s3, b3, w4r, s4, b4, w5, b5, w6, b6)
    return out[:batch]


# ----------------------------------------------------------------------------
# Glue: im2col patch extraction (plain JAX data movement) + conv wrapper
# ----------------------------------------------------------------------------
def _im2col_cols(x_nhwc, kh, kw, stride, pad):
    n, h, w, c = x_nhwc.shape
    xp = jnp.pad(x_nhwc, ((0, 0), (pad, pad), (pad, pad), (0, 0)))
    oh = (h + 2 * pad - kh) // stride + 1
    ow = (w + 2 * pad - kw) // stride + 1
    cols = []
    for i in range(kh):
        for j in range(kw):
            cols.append(xp[:, i:i + stride * oh:stride,
                           j:j + stride * ow:stride, :])      # (n, oh, ow, c)
    patches = jnp.stack(cols, axis=3)                          # (n, oh, ow, kh*kw, c)
    return patches, oh, ow


def im2col(x_nhwc, kh, kw, stride, pad):
    patches, oh, ow = _im2col_cols(x_nhwc, kh, kw, stride, pad)
    n, c = x_nhwc.shape[0], x_nhwc.shape[3]
    return patches.reshape(n * oh * ow, kh * kw * c), oh, ow


def im2col_pos_major(x_nhwc, kh, kw, stride, pad):
    """Patches arranged (oh*ow, n, kh*kw*c) for the fused fc head."""
    patches, oh, ow = _im2col_cols(x_nhwc, kh, kw, stride, pad)
    n, c = x_nhwc.shape[0], x_nhwc.shape[3]
    patches = patches.reshape(n, oh * ow, kh * kw * c)
    return jnp.transpose(patches, (1, 0, 2)), oh, ow


def conv_block(x_nhwc, w2d, kh, kw, stride, pad, scale, shift):
    """Conv2d(bias=False) + folded BN + LeakyReLU(0.2) via im2col GEMM kernel."""
    patches, oh, ow = im2col(x_nhwc, kh, kw, stride, pad)
    y = gemm_scale_bias_act(patches, w2d, scale, shift, apply_act=True)
    n = x_nhwc.shape[0]
    return y.reshape(n, oh, ow, w2d.shape[1])


def bn_fold(gamma, beta, mean, var, eps=BN_EPS):
    scale = gamma / jnp.sqrt(var + eps)
    shift = beta - mean * scale
    return scale, shift


# ----------------------------------------------------------------------------
# Parameters (deterministic synthetic init) + one-time device-ready prep
# ----------------------------------------------------------------------------
def init_params(key):
    ks = jax.random.split(key, 16)
    f32 = jnp.float32
    p = {}
    # Conv weights stored as (KH, KW, Cin, Cout)
    p["w1"] = 0.05 * jax.random.normal(ks[0], (4, 4, NC, NDF), f32)
    p["w2"] = 0.05 * jax.random.normal(ks[1], (4, 4, NDF, NDF * 2), f32)
    p["bn2_g"] = 1.0 + 0.05 * jax.random.normal(ks[2], (NDF * 2,), f32)
    p["bn2_b"] = 0.05 * jax.random.normal(ks[3], (NDF * 2,), f32)
    p["w3"] = 0.05 * jax.random.normal(ks[4], (4, 4, NDF * 2, NDF * 4), f32)
    p["bn3_g"] = 1.0 + 0.05 * jax.random.normal(ks[5], (NDF * 4,), f32)
    p["bn3_b"] = 0.05 * jax.random.normal(ks[6], (NDF * 4,), f32)
    p["w4"] = 0.05 * jax.random.normal(ks[7], (4, 4, NDF * 4, NDF * 4), f32)
    p["bn4_g"] = 1.0 + 0.05 * jax.random.normal(ks[8], (NDF * 4,), f32)
    p["bn4_b"] = 0.05 * jax.random.normal(ks[9], (NDF * 4,), f32)
    p["fc1_w"] = 0.05 * jax.random.normal(ks[10], (NDF * 4, 1024), f32)
    p["fc1_b"] = 0.05 * jax.random.normal(ks[11], (1024,), f32)
    p["fc2_w"] = 0.05 * jax.random.normal(ks[12], (1024, DIM_FEATURE), f32)
    p["fc2_b"] = 0.05 * jax.random.normal(ks[13], (DIM_FEATURE,), f32)
    return p


def prepare_params(p):
    """One-time: reshape conv weights to GEMM form, fold BN (eval mode), cast
    MXU inputs to bf16, pre-pad conv1 Cin 3 -> 8, split conv4 weight by
    spatial position, reshape biases to (1, N)."""
    f32 = jnp.float32
    q = {}

    w1 = jnp.pad(p["w1"], ((0, 0), (0, 0), (0, CIN_PAD - NC), (0, 0)))
    q["w1"] = w1.reshape(4 * 4 * CIN_PAD, NDF).astype(CDT)
    q["s1"] = jnp.ones((1, NDF), f32)           # no BN after conv1
    q["b1"] = jnp.zeros((1, NDF), f32)

    def fold(g, b):
        n = g.shape[0]
        s, sh = bn_fold(g, b, jnp.zeros((n,), f32), jnp.ones((n,), f32))
        return s.reshape(1, n).astype(f32), sh.reshape(1, n).astype(f32)

    q["w2"] = p["w2"].reshape(4 * 4 * NDF, NDF * 2).astype(CDT)
    q["s2"], q["b2"] = fold(p["bn2_g"], p["bn2_b"])
    q["w3"] = p["w3"].reshape(4 * 4 * NDF * 2, NDF * 4).astype(CDT)
    q["s3"], q["b3"] = fold(p["bn3_g"], p["bn3_b"])
    # conv4 weight split by spatial position: (16, Cin=256, Cout=256)
    q["w4r"] = p["w4"].reshape(16, NDF * 4, NDF * 4).astype(CDT)
    q["s4"], q["b4"] = fold(p["bn4_g"], p["bn4_b"])
    q["fc1_w"] = p["fc1_w"].astype(CDT)
    q["fc1_b"] = p["fc1_b"].reshape(1, -1).astype(f32)
    q["fc2_w"] = p["fc2_w"].astype(CDT)
    q["fc2_b"] = p["fc2_b"].reshape(1, -1).astype(f32)
    return q


# ----------------------------------------------------------------------------
# Forward pass (mirrors Encoder.forward): returns (local_feature_map, global_feature)
# ----------------------------------------------------------------------------
def encoder_forward(q, x_nchw):
    n = x_nchw.shape[0]
    # NCHW -> NHWC, bf16, channel pad 3 -> 8 (matches pre-padded w1)
    x = jnp.transpose(x_nchw, (0, 2, 3, 1)).astype(CDT)
    x = jnp.pad(x, ((0, 0), (0, 0), (0, 0), (0, CIN_PAD - NC)))

    # self.Conv
    h = conv_block(x, q["w1"], 4, 4, 2, 1, q["s1"], q["b1"])   # (N,16,16,64)
    h = conv_block(h, q["w2"], 4, 4, 2, 1, q["s2"], q["b2"])   # (N,8,8,128)
    local_nhwc = h

    # self.fc  (conv3 + conv4 + fc1 + fc2 fused into one pallas_call)
    patches3, oh, ow = im2col_pos_major(h, 4, 4, 2, 1)         # (16, N, 2048)
    assert oh == 4 and ow == 4
    mp = _round_up(n, 8)
    if mp != n:
        patches3 = jnp.pad(patches3, ((0, 0), (0, mp - n), (0, 0)))
    global_feature = fused_fc_head(patches3, q["w3"], q["s3"], q["b3"],
                                   q["w4r"], q["s4"], q["b4"],
                                   q["fc1_w"], q["fc1_b"],
                                   q["fc2_w"], q["fc2_b"], n)  # (N, 64) f32

    local_nchw = jnp.transpose(local_nhwc, (0, 3, 1, 2)).astype(jnp.float32)
    return local_nchw, global_feature


if __name__ == "__main__":
    key = jax.random.PRNGKey(0)
    pkey, xkey = jax.random.split(key)
    params = init_params(pkey)
    prep = prepare_params(params)
    # Input must be 32x32 so the final 4x4/stride-1/pad-0 conv reduces to 1x1
    # (required by Flatten -> Linear(ndf*4, 1024) in the reference module).
    x = jax.random.normal(xkey, (2, NC, 32, 32), jnp.float32)

    fwd = jax.jit(encoder_forward)
    local_feature_map, global_feature = fwd(prep, x)
    jax.block_until_ready((local_feature_map, global_feature))

    assert local_feature_map.shape == (2, NDF * 2, 8, 8), local_feature_map.shape
    assert global_feature.shape == (2, DIM_FEATURE), global_feature.shape
    assert bool(jnp.isfinite(local_feature_map).all())
    assert bool(jnp.isfinite(global_feature).all())
    print("KERNEL_OK")
</pallas_src>

<mosaic_0001>
module attributes {stable_mosaic.version = 11 : i64} {
  func.func @_gemm_scale_bias_act_kernel(%arg0: i32, %arg1: memref<256x128xbf16, #tpu.memory_space<vmem>>, %arg2: memref<128x64xbf16, #tpu.memory_space<vmem>>, %arg3: memref<1x64xf32, #tpu.memory_space<vmem>>, %arg4: memref<1x64xf32, #tpu.memory_space<vmem>>, %arg5: memref<256x64xbf16, #tpu.memory_space<vmem>>) attributes {dimension_semantics = [#tpu.dimension_semantics<parallel>], iteration_bounds = array<i64: 2>, scalar_prefetch = 0 : i64, scratch_operands = 0 : i64, tpu.core_type = #tpu.core_type<tc>, window_params = [{transform_indices = @transform_0, window_bounds = array<i64: 256, 128>}, {pipeline_mode = #tpu.pipeline_mode<synchronous>, transform_indices = @transform_1, window_bounds = array<i64: 128, 64>}, {pipeline_mode = #tpu.pipeline_mode<synchronous>, transform_indices = @transform_2, window_bounds = array<i64: 1, 64>}, {pipeline_mode = #tpu.pipeline_mode<synchronous>, transform_indices = @transform_3, window_bounds = array<i64: 1, 64>}, {transform_indices = @transform_4, window_bounds = array<i64: 256, 64>}]} {
    %c0 = arith.constant 0 : index
    %c0_0 = arith.constant 0 : index
    %0 = vector.load %arg1[%c0, %c0_0] : memref<256x128xbf16, #tpu.memory_space<vmem>>, vector<256x128xbf16>
    %c0_1 = arith.constant 0 : index
    %c0_2 = arith.constant 0 : index
    %1 = vector.load %arg2[%c0_1, %c0_2] : memref<128x64xbf16, #tpu.memory_space<vmem>>, vector<128x64xbf16>
    %cst = arith.constant dense<0.000000e+00> : vector<256x64xf32>
    %2 = tpu.matmul %0, %1, %cst {dimension_numbers = #tpu.dot_dimension_numbers<[1], [0], [0], [1], [0, 0, 1, 1], [], []>} : vector<256x128xbf16>, vector<128x64xbf16>, vector<256x64xf32> -> vector<256x64xf32>
    %c0_3 = arith.constant 0 : index
    %c0_4 = arith.constant 0 : index
    %3 = vector.load %arg3[%c0_3, %c0_4] : memref<1x64xf32, #tpu.memory_space<vmem>>, vector<1x64xf32>
    %4 = vector.broadcast %3 : vector<1x64xf32> to vector<256x64xf32>
    %5 = arith.mulf %2, %4 : vector<256x64xf32>
    %c0_5 = arith.constant 0 : index
    %c0_6 = arith.constant 0 : index
    %6 = vector.load %arg4[%c0_5, %c0_6] : memref<1x64xf32, #tpu.memory_space<vmem>>, vector<1x64xf32>
    %7 = vector.broadcast %6 : vector<1x64xf32> to vector<256x64xf32>
    %8 = arith.addf %5, %7 : vector<256x64xf32>
    %cst_7 = arith.constant 0.000000e+00 : f32
    %9 = vector.broadcast %cst_7 : f32 to vector<256x64xf32>
    %10 = arith.cmpf oge, %8, %9 : vector<256x64xf32>
    %cst_8 = arith.constant 2.000000e-01 : f32
    %11 = vector.broadcast %cst_8 : f32 to vector<256x64xf32>
    %12 = arith.mulf %11, %8 : vector<256x64xf32>
    %13 = arith.select %10, %8, %12 : vector<256x64xi1>, vector<256x64xf32>
    %14 = arith.truncf %13 : vector<256x64xf32> to vector<256x64xbf16>
    %c0_9 = arith.constant 0 : index
    %c0_10 = arith.constant 0 : index
    %15 = vector.load %arg5[%c0_9, %c0_10] : memref<256x64xbf16, #tpu.memory_space<vmem>>, vector<256x64xbf16>
    tpu.vector_store %arg5[%c0_9, %c0_10], %14 {strides = array<i32>} : memref<256x64xbf16, #tpu.memory_space<vmem>>, vector<256x64xbf16>,
    return
  }
  func.func @transform_0(%arg0: i32) -> (i32, i32) {
    %c0_i32 = arith.constant 0 : i32
    %c0_i32_0 = arith.constant 0 : i32
    return %arg0, %c0_i32 : i32, i32
  }
  func.func @transform_1(%arg0: i32) -> (i32, i32) {
    %c0_i32 = arith.constant 0 : i32
    %c0_i32_0 = arith.constant 0 : i32
    %c0_i32_1 = arith.constant 0 : i32
    return %c0_i32, %c0_i32_0 : i32, i32
  }
  func.func @transform_2(%arg0: i32) -> (i32, i32) {
    %c0_i32 = arith.constant 0 : i32
    %c0_i32_0 = arith.constant 0 : i32
    %c0_i32_1 = arith.constant 0 : i32
    return %c0_i32, %c0_i32_0 : i32, i32
  }
  func.func @transform_3(%arg0: i32) -> (i32, i32) {
    %c0_i32 = arith.constant 0 : i32
    %c0_i32_0 = arith.constant 0 : i32
    %c0_i32_1 = arith.constant 0 : i32
    return %c0_i32, %c0_i32_0 : i32, i32
  }
  func.func @transform_4(%arg0: i32) -> (i32, i32) {
    %c0_i32 = arith.constant 0 : i32
    %c0_i32_0 = arith.constant 0 : i32
    return %arg0, %c0_i32 : i32, i32
  }
}

module attributes {stable_mosaic.version = 11 : i64} {
  func.func @_gemm_scale_bias_act_kernel(%arg0: i32, %arg1: memref<128x1024xbf16, #tpu.memory_space<vmem>>, %arg2: memref<1024x128xbf16, #tpu.memory_space<vmem>>, %arg3: memref<1x128xf32, #tpu.memory_space<vmem>>, %arg4: memref<1x128xf32, #tpu.memory_space<vmem>>, %arg5: memref<128x128xbf16, #tpu.memory_space<vmem>>) attributes {dimension_semantics = [#tpu.dimension_semantics<parallel>], iteration_bounds = array<i64: 1>, scalar_prefetch = 0 : i64, scratch_operands = 0 : i64, tpu.core_type = #tpu.core_type<tc>, window_params = [{transform_indices = @transform_0, window_bounds = array<i64: 128, 1024>}, {pipeline_mode = #tpu.pipeline_mode<synchronous>, transform_indices = @transform_1, window_bounds = array<i64: 1024, 128>}, {pipeline_mode = #tpu.pipeline_mode<synchronous>, transform_indices = @transform_2, window_bounds = array<i64: 1, 128>}, {pipeline_mode = #tpu.pipeline_mode<synchronous>, transform_indices = @transform_3, window_bounds = array<i64: 1, 128>}, {transform_indices = @transform_4, window_bounds = array<i64: 128, 128>}]} {
    %c0 = arith.constant 0 : index
    %c0_0 = arith.constant 0 : index
    %0 = vector.load %arg1[%c0, %c0_0] : memref<128x1024xbf16, #tpu.memory_space<vmem>>, vector<128x1024xbf16>
    %c0_1 = arith.constant 0 : index
    %c0_2 = arith.constant 0 : index
    %1 = vector.load %arg2[%c0_1, %c0_2] : memref<1024x128xbf16, #tpu.memory_space<vmem>>, vector<1024x128xbf16>
    %cst = arith.constant dense<0.000000e+00> : vector<128x128xf32>
    %2 = tpu.matmul %0, %1, %cst {dimension_numbers = #tpu.dot_dimension_numbers<[1], [0], [0], [1], [0, 0, 1, 1], [], []>} : vector<128x1024xbf16>, vector<1024x128xbf16>, vector<128x128xf32> -> vector<128x128xf32>
    %c0_3 = arith.constant 0 : index
    %c0_4 = arith.constant 0 : index
    %3 = vector.load %arg3[%c0_3, %c0_4] : memref<1x128xf32, #tpu.memory_space<vmem>>, vector<1x128xf32>
    %4 = vector.broadcast %3 : vector<1x128xf32> to vector<128x128xf32>
    %5 = arith.mulf %2, %4 : vector<128x128xf32>
    %c0_5 = arith.constant 0 : index
    %c0_6 = arith.constant 0 : index
    %6 = vector.load %arg4[%c0_5, %c0_6] : memref<1x128xf32, #tpu.memory_space<vmem>>, vector<1x128xf32>
    %7 = vector.broadcast %6 : vector<1x128xf32> to vector<128x128xf32>
    %8 = arith.addf %5, %7 : vector<128x128xf32>
    %cst_7 = arith.constant 0.000000e+00 : f32
    %9 = vector.broadcast %cst_7 : f32 to vector<128x128xf32>
    %10 = arith.cmpf oge, %8, %9 : vector<128x128xf32>
    %cst_8 = arith.constant 2.000000e-01 : f32
    %11 = vector.broadcast %cst_8 : f32 to vector<128x128xf32>
    %12 = arith.mulf %11, %8 : vector<128x128xf32>
    %13 = arith.select %10, %8, %12 : vector<128x128xi1>, vector<128x128xf32>
    %14 = arith.truncf %13 : vector<128x128xf32> to vector<128x128xbf16>
    %c0_9 = arith.constant 0 : index
    %c0_10 = arith.constant 0 : index
    %15 = vector.load %arg5[%c0_9, %c0_10] : memref<128x128xbf16, #tpu.memory_space<vmem>>, vector<128x128xbf16>
    tpu.vector_store %arg5[%c0_9, %c0_10], %14 {strides = array<i32>} : memref<128x128xbf16, #tpu.memory_space<vmem>>, vector<128x128xbf16>,
    return
  }
  func.func @transform_0(%arg0: i32) -> (i32, i32) {
    %c0_i32 = arith.constant 0 : i32
    %c0_i32_0 = arith.constant 0 : i32
    return %arg0, %c0_i32 : i32, i32
  }
  func.func @transform_1(%arg0: i32) -> (i32, i32) {
    %c0_i32 = arith.constant 0 : i32
    %c0_i32_0 = arith.constant 0 : i32
    %c0_i32_1 = arith.constant 0 : i32
    return %c0_i32, %c0_i32_0 : i32, i32
  }
  func.func @transform_2(%arg0: i32) -> (i32, i32) {
    %c0_i32 = arith.constant 0 : i32
    %c0_i32_0 = arith.constant 0 : i32
    %c0_i32_1 = arith.constant 0 : i32
    return %c0_i32, %c0_i32_0 : i32, i32
  }
  func.func @transform_3(%arg0: i32) -> (i32, i32) {
    %c0_i32 = arith.constant 0 : i32
    %c0_i32_0 = arith.constant 0 : i32
    %c0_i32_1 = arith.constant 0 : i32
    return %c0_i32, %c0_i32_0 : i32, i32
  }
  func.func @transform_4(%arg0: i32) -> (i32, i32) {
    %c0_i32 = arith.constant 0 : i32
    %c0_i32_0 = arith.constant 0 : i32
    return %arg0, %c0_i32 : i32, i32
  }
}

module attributes {stable_mosaic.version = 11 : i64} {
  func.func @_fc_head_kernel(%arg0: i32, %arg1: memref<1x8x2048xbf16, #tpu.memory_space<vmem>>, %arg2: memref<2048x256xbf16, #tpu.memory_space<vmem>>, %arg3: memref<1x256xf32, #tpu.memory_space<vmem>>, %arg4: memref<1x256xf32, #tpu.memory_space<vmem>>, %arg5: memref<1x256x256xbf16, #tpu.memory_space<vmem>>, %arg6: memref<1x256xf32, #tpu.memory_space<vmem>>, %arg7: memref<1x256xf32, #tpu.memory_space<vmem>>, %arg8: memref<256x1024xbf16, #tpu.memory_space<vmem>>, %arg9: memref<1x1024xf32, #tpu.memory_space<vmem>>, %arg10: memref<1024x64xbf16, #tpu.memory_space<vmem>>, %arg11: memref<1x64xf32, #tpu.memory_space<vmem>>, %arg12: memref<8x64xf32, #tpu.memory_space<vmem>>, %arg13: memref<8x256xf32, #tpu.memory_space<vmem>>) attributes {dimension_semantics = [#tpu.dimension_semantics<arbitrary>], iteration_bounds = array<i64: 16>, scalar_prefetch = 0 : i64, scratch_operands = 1 : i64, tpu.core_type = #tpu.core_type<tc>, window_params = [{transform_indices = @transform_0, window_bounds = array<i64: 1, 8, 2048>}, {pipeline_mode = #tpu.pipeline_mode<synchronous>, transform_indices = @transform_1, window_bounds = array<i64: 2048, 256>}, {pipeline_mode = #tpu.pipeline_mode<synchronous>, transform_indices = @transform_2, window_bounds = array<i64: 1, 256>}, {pipeline_mode = #tpu.pipeline_mode<synchronous>, transform_indices = @transform_3, window_bounds = array<i64: 1, 256>}, {transform_indices = @transform_4, window_bounds = array<i64: 1, 256, 256>}, {pipeline_mode = #tpu.pipeline_mode<synchronous>, transform_indices = @transform_5, window_bounds = array<i64: 1, 256>}, {pipeline_mode = #tpu.pipeline_mode<synchronous>, transform_indices = @transform_6, window_bounds = array<i64: 1, 256>}, {pipeline_mode = #tpu.pipeline_mode<synchronous>, transform_indices = @transform_7, window_bounds = array<i64: 256, 1024>}, {pipeline_mode = #tpu.pipeline_mode<synchronous>, transform_indices = @transform_8, window_bounds = array<i64: 1, 1024>}, {pipeline_mode = #tpu.pipeline_mode<synchronous>, transform_indices = @transform_9, window_bounds = array<i64: 1024, 64>}, {pipeline_mode = #tpu.pipeline_mode<synchronous>, transform_indices = @transform_10, window_bounds = array<i64: 1, 64>}, {pipeline_mode = #tpu.pipeline_mode<synchronous>, transform_indices = @transform_11, window_bounds = array<i64: 8, 64>}]} {
    %c0_i32 = arith.constant 0 : i32
    %0 = arith.cmpi eq, %arg0, %c0_i32 : i32
    %1 = arith.extui %0 : i1 to i32
    %c0_i32_0 = arith.constant 0 : i32
    %2 = arith.cmpi ne, %1, %c0_i32_0 : i32
    scf.if %2 {
      %cst_20 = arith.constant 0.000000e+00 : f32
      %28 = vector.broadcast %cst_20 : f32 to vector<8x256xf32>
      %c0_21 = arith.constant 0 : index
      %c0_22 = arith.constant 0 : index
      %29 = vector.load %arg13[%c0_21, %c0_22] : memref<8x256xf32, #tpu.memory_space<vmem>>, vector<8x256xf32>
      tpu.vector_store %arg13[%c0_21, %c0_22], %28 {strides = array<i32>} : memref<8x256xf32, #tpu.memory_space<vmem>>, vector<8x256xf32>,
    } else {
    }
    %c0 = arith.constant 0 : index
    %c0_1 = arith.constant 0 : index
    %c0_2 = arith.constant 0 : index
    %3 = vector.load %arg1[%c0, %c0_1, %c0_2] : memref<1x8x2048xbf16, #tpu.memory_space<vmem>>, vector<1x8x2048xbf16>
    %4 = vector.shape_cast %3 : vector<1x8x2048xbf16> to vector<8x2048xbf16>
    %c0_3 = arith.constant 0 : index
    %c0_4 = arith.constant 0 : index
    %5 = vector.load %arg2[%c0_3, %c0_4] : memref<2048x256xbf16, #tpu.memory_space<vmem>>, vector<2048x256xbf16>
    %cst = arith.constant dense<0.000000e+00> : vector<8x256xf32>
    %6 = tpu.matmul %4, %5, %cst {dimension_numbers = #tpu.dot_dimension_numbers<[1], [0], [0], [1], [0, 0, 1, 1], [], []>} : vector<8x2048xbf16>, vector<2048x256xbf16>, vector<8x256xf32> -> vector<8x256xf32>
    %c0_5 = arith.constant 0 : index
    %c0_6 = arith.constant 0 : index
    %7 = vector.load %arg3[%c0_5, %c0_6] : memref<1x256xf32, #tpu.memory_space<vmem>>, vector<1x256xf32>
    %8 = vector.broadcast %7 : vector<1x256xf32> to vector<8x256xf32>
    %9 = arith.mulf %6, %8 : vector<8x256xf32>
    %c0_7 = arith.constant 0 : index
    %c0_8 = arith.constant 0 : index
    %10 = vector.load %arg4[%c0_7, %c0_8] : memref<1x256xf32, #tpu.memory_space<vmem>>, vector<1x256xf32>
    %11 = vector.broadcast %10 : vector<1x256xf32> to vector<8x256xf32>
    %12 = arith.addf %9, %11 : vector<8x256xf32>
    %cst_9 = arith.constant 0.000000e+00 : f32
    %13 = vector.broadcast %cst_9 : f32 to vector<8x256xf32>
    %14 = arith.cmpf oge, %12, %13 : vector<8x256xf32>
    %cst_10 = arith.constant 2.000000e-01 : f32
    %15 = vector.broadcast %cst_10 : f32 to vector<8x256xf32>
    %16 = arith.mulf %15, %12 : vector<8x256xf32>
    %17 = arith.select %14, %12, %16 : vector<8x256xi1>, vector<8x256xf32>
    %c0_11 = arith.constant 0 : index
    %c0_12 = arith.constant 0 : index
    %18 = vector.load %arg13[%c0_11, %c0_12] : memref<8x256xf32, #tpu.memory_space<vmem>>, vector<8x256xf32>
    %19 = arith.truncf %17 : vector<8x256xf32> to vector<8x256xbf16>
    %c0_13 = arith.constant 0 : index
    %c0_14 = arith.constant 0 : index
    %c0_15 = arith.constant 0 : index
    %20 = vector.load %arg5[%c0_13, %c0_14, %c0_15] : memref<1x256x256xbf16, #tpu.memory_space<vmem>>, vector<1x256x256xbf16>
    %21 = vector.shape_cast %20 : vector<1x256x256xbf16> to vector<256x256xbf16>
    %cst_16 = arith.constant dense<0.000000e+00> : vector<8x256xf32>
    %22 = tpu.matmul %19, %21, %cst_16 {dimension_numbers = #tpu.dot_dimension_numbers<[1], [0], [0], [1], [0, 0, 1, 1], [], []>} : vector<8x256xbf16>, vector<256x256xbf16>, vector<8x256xf32> -> vector<8x256xf32>
    %23 = arith.addf %18, %22 : vector<8x256xf32>
    %c0_17 = arith.constant 0 : index
    %c0_18 = arith.constant 0 : index
    %24 = vector.load %arg13[%c0_17, %c0_18] : memref<8x256xf32, #tpu.memory_space<vmem>>, vector<8x256xf32>
    tpu.vector_store %arg13[%c0_17, %c0_18], %23 {strides = array<i32>} : memref<8x256xf32, #tpu.memory_space<vmem>>, vector<8x256xf32>,
    %c15_i32 = arith.constant 15 : i32
    %25 = arith.cmpi eq, %arg0, %c15_i32 : i32
    %26 = arith.extui %25 : i1 to i32
    %c0_i32_19 = arith.constant 0 : i32
    %27 = arith.cmpi ne, %26, %c0_i32_19 : i32
    scf.if %27 {
      %c0_20 = arith.constant 0 : index
      %c0_21 = arith.constant 0 : index
      %28 = vector.load %arg13[%c0_20, %c0_21] : memref<8x256xf32, #tpu.memory_space<vmem>>, vector<8x256xf32>
      %c0_22 = arith.constant 0 : index
      %c0_23 = arith.constant 0 : index
      %29 = vector.load %arg6[%c0_22, %c0_23] : memref<1x256xf32, #tpu.memory_space<vmem>>, vector<1x256xf32>
      %30 = vector.broadcast %29 : vector<1x256xf32> to vector<8x256xf32>
      %31 = arith.mulf %28, %30 : vector<8x256xf32>
      %c0_24 = arith.constant 0 : index
      %c0_25 = arith.constant 0 : index
      %32 = vector.load %arg7[%c0_24, %c0_25] : memref<1x256xf32, #tpu.memory_space<vmem>>, vector<1x256xf32>
      %33 = vector.broadcast %32 : vector<1x256xf32> to vector<8x256xf32>
      %34 = arith.addf %31, %33 : vector<8x256xf32>
      %cst_26 = arith.constant 0.000000e+00 : f32
      %35 = vector.broadcast %cst_26 : f32 to vector<8x256xf32>
      %36 = arith.cmpf oge, %34, %35 : vector<8x256xf32>
      %cst_27 = arith.constant 2.000000e-01 : f32
      %37 = vector.broadcast %cst_27 : f32 to vector<8x256xf32>
      %38 = arith.mulf %37, %34 : vector<8x256xf32>
      %39 = arith.select %36, %34, %38 : vector<8x256xi1>, vector<8x256xf32>
      %40 = arith.truncf %39 : vector<8x256xf32> to vector<8x256xbf16>
      %c0_28 = arith.constant 0 : index
      %c0_29 = arith.constant 0 : index
      %41 = vector.load %arg8[%c0_28, %c0_29] : memref<256x1024xbf16, #tpu.memory_space<vmem>>, vector<256x1024xbf16>
      %cst_30 = arith.constant dense<0.000000e+00> : vector<8x1024xf32>
      %42 = tpu.matmul %40, %41, %cst_30 {dimension_numbers = #tpu.dot_dimension_numbers<[1], [0], [0], [1], [0, 0, 1, 1], [], []>} : vector<8x256xbf16>, vector<256x1024xbf16>, vector<8x1024xf32> -> vector<8x1024xf32>
      %c0_31 = arith.constant 0 : index
      %c0_32 = arith.constant 0 : index
      %43 = vector.load %arg9[%c0_31, %c0_32] : memref<1x1024xf32, #tpu.memory_space<vmem>>, vector<1x1024xf32>
      %44 = vector.broadcast %43 : vector<1x1024xf32> to vector<8x1024xf32>
      %45 = arith.addf %42, %44 : vector<8x1024xf32>
      %cst_33 = arith.constant 0.000000e+00 : f32
      %46 = vector.broadcast %cst_33 : f32 to vector<8x1024xf32>
      %47 = arith.cmpf oge, %45, %46 : vector<8x1024xf32>
      %cst_34 = arith.constant 2.000000e-01 : f32
      %48 = vector.broadcast %cst_34 : f32 to vector<8x1024xf32>
      %49 = arith.mulf %48, %45 : vector<8x1024xf32>
      %50 = arith.select %47, %45, %49 : vector<8x1024xi1>, vector<8x1024xf32>
      %51 = arith.truncf %50 : vector<8x1024xf32> to vector<8x1024xbf16>
      %c0_35 = arith.constant 0 : index
      %c0_36 = arith.constant 0 : index
      %52 = vector.load %arg10[%c0_35, %c0_36] : memref<1024x64xbf16, #tpu.memory_space<vmem>>, vector<1024x64xbf16>
      %cst_37 = arith.constant dense<0.000000e+00> : vector<8x64xf32>
      %53 = tpu.matmul %51, %52, %cst_37 {dimension_numbers = #tpu.dot_dimension_numbers<[1], [0], [0], [1], [0, 0, 1, 1], [], []>} : vector<8x1024xbf16>, vector<1024x64xbf16>, vector<8x64xf32> -> vector<8x64xf32>
      %c0_38 = arith.constant 0 : index
      %c0_39 = arith.constant 0 : index
      %54 = vector.load %arg11[%c0_38, %c0_39] : memref<1x64xf32, #tpu.memory_space<vmem>>, vector<1x64xf32>
      %55 = vector.broadcast %54 : vector<1x64xf32> to vector<8x64xf32>
      %56 = arith.addf %53, %55 : vector<8x64xf32>
      %c0_40 = arith.constant 0 : index
      %c0_41 = arith.constant 0 : index
      %57 = vector.load %arg12[%c0_40, %c0_41] : memref<8x64xf32, #tpu.memory_space<vmem>>, vector<8x64xf32>
      tpu.vector_store %arg12[%c0_40, %c0_41], %56 {strides = array<i32>} : memref<8x64xf32, #tpu.memory_space<vmem>>, vector<8x64xf32>,
    } else {
    }
    return
  }
  func.func @transform_0(%arg0: i32) -> (i32, i32, i32) {
    %c0_i32 = arith.constant 0 : i32
    %c0_i32_0 = arith.constant 0 : i32
    %c0_i32_1 = arith.constant 0 : i32
    return %arg0, %c0_i32, %c0_i32_0 : i32, i32, i32
  }
  func.func @transform_1(%arg0: i32) -> (i32, i32) {
    %c0_i32 = arith.constant 0 : i32
    %c0_i32_0 = arith.constant 0 : i32
    %c0_i32_1 = arith.constant 0 : i32
    return %c0_i32, %c0_i32_0 : i32, i32
  }
  func.func @transform_2(%arg0: i32) -> (i32, i32) {
    %c0_i32 = arith.constant 0 : i32
    %c0_i32_0 = arith.constant 0 : i32
    %c0_i32_1 = arith.constant 0 : i32
    return %c0_i32, %c0_i32_0 : i32, i32
  }
  func.func @transform_3(%arg0: i32) -> (i32, i32) {
    %c0_i32 = arith.constant 0 : i32
    %c0_i32_0 = arith.constant 0 : i32
    %c0_i32_1 = arith.constant 0 : i32
    return %c0_i32, %c0_i32_0 : i32, i32
  }
  func.func @transform_4(%arg0: i32) -> (i32, i32, i32) {
    %c0_i32 = arith.constant 0 : i32
    %c0_i32_0 = arith.constant 0 : i32
    %c0_i32_1 = arith.constant 0 : i32
    return %arg0, %c0_i32, %c0_i32_0 : i32, i32, i32
  }
  func.func @transform_5(%arg0: i32) -> (i32, i32) {
    %c0_i32 = arith.constant 0 : i32
    %c0_i32_0 = arith.constant 0 : i32
    %c0_i32_1 = arith.constant 0 : i32
    return %c0_i32, %c0_i32_0 : i32, i32
  }
  func.func @transform_6(%arg0: i32) -> (i32, i32) {
    %c0_i32 = arith.constant 0 : i32
    %c0_i32_0 = arith.constant 0 : i32
    %c0_i32_1 = arith.constant 0 : i32
    return %c0_i32, %c0_i32_0 : i32, i32
  }
  func.func @transform_7(%arg0: i32) -> (i32, i32) {
    %c0_i32 = arith.constant 0 : i32
    %c0_i32_0 = arith.constant 0 : i32
    %c0_i32_1 = arith.constant 0 : i32
    return %c0_i32, %c0_i32_0 : i32, i32
  }
  func.func @transform_8(%arg0: i32) -> (i32, i32) {
    %c0_i32 = arith.constant 0 : i32
    %c0_i32_0 = arith.constant 0 : i32
    %c0_i32_1 = arith.constant 0 : i32
    return %c0_i32, %c0_i32_0 : i32, i32
  }
  func.func @transform_9(%arg0: i32) -> (i32, i32) {
    %c0_i32 = arith.constant 0 : i32
    %c0_i32_0 = arith.constant 0 : i32
    %c0_i32_1 = arith.constant 0 : i32
    return %c0_i32, %c0_i32_0 : i32, i32
  }
  func.func @transform_10(%arg0: i32) -> (i32, i32) {
    %c0_i32 = arith.constant 0 : i32
    %c0_i32_0 = arith.constant 0 : i32
    %c0_i32_1 = arith.constant 0 : i32
    return %c0_i32, %c0_i32_0 : i32, i32
  }
  func.func @transform_11(%arg0: i32) -> (i32, i32) {
    %c0_i32 = arith.constant 0 : i32
    %c0_i32_0 = arith.constant 0 : i32
    %c0_i32_1 = arith.constant 0 : i32
    return %c0_i32, %c0_i32_0 : i32, i32
  }
}

</mosaic_0001>

<bundles_post_ra>
// kernel: encoder_forward.3
= control target key start
LH: loop header
LB: loop body
LE: loop exit
PB: predicated region body
PF: predicated region fallthrough
CT: control target
= control target key end

     0   :  { %s1200_s15 = smov 0   ;;  %s1407_s0 = inlined_call_operand.vmem [shape: bf16[512,128], index: 0, kind: input, shape index: {}]   ;;  %s1408_s1 = inlined_call_operand.vmem [shape: bf16[128,64], index: 1, kind: input, shape index: {}]   ;;  %s1409_s2 = inlined_call_operand.vmem [shape: f32[1,64], index: 2, kind: input, shape index: {}]   ;;  %s1410_s3 = inlined_call_operand.vmem [shape: f32[1,64], index: 3, kind: input, shape index: {}]   ;;  %s1411_s4 = inlined_call_operand.vmem [shape: bf16[512,64], index: 4, kind: output, shape index: {}]  }
   0x1 LB: > { %s946_s16 = sadd.s32 4294967295, %s1173_s15   ;;  %p950_p0 = scmp.ge.s32.totalorder %s1173_s15, 1  ;;  %s1173_s15 = sphi %s1200_s15, %s14_s15  }
   0x2   : > { %p163_p1 = scmp.lt.s32.totalorder %s1173_s15, 3 }
   0x4   : > { %p164_p2 = pnand %p950_p0, %p163_p1 }
   0x5   : > { %s951_s19 = sshll.u32 (!%p164_p2), %s946_s16, 5 }
   0x6   : > { %167 = sbr.rel (%p164_p2) target bundleno = 294 (0x126), region = 36  ;;  %p190_p3 = scmp.lt.s32.totalorder (!%p164_p2), %s951_s19, 63 }
   0xb   : > { %v1143_v0 = vld [vmem:[%s1408_s1 + $0x38] sm:$0xff]   ;;  %v1144_v1 = vld [vmem:[%s1408_s1 + $0x30] sm:$0xff]   ;;  %s1413_s19 = smov (!%p190_p3, %s951_s19), 63  ;;  %v1145_v2 = vld [vmem:[%s1408_s1 + $0x28] sm:$0xff]   ;;  %vm857_vm0 = vcmask 519168  }
   0xc   : > { %1071 = vmatprep.subr.bf16.mxu0 %v1143_v0  ;;  %1119 = vmatprep.subr.bf16.mxu1 %v1143_v0  ;;  %s952_s24 = sshll.u32 %s1413_s19, 2  ;;  %v1146_v3 = vld [vmem:[%s1408_s1 + $0x20] sm:$0xff]   ;;  %v1147_v6 = vld [vmem:[%s1408_s1 + $0x18] sm:$0xff]   ;;  %v1148_v7 = vld [vmem:[%s1408_s1 + $0x10] sm:$0xff]  }
   0xd   : > { %1072 = vmatpush3.bf16.msra.mxu0 %v1143_v0  ;;  %1127 = vmatpush3.bf16.msra.mxu1 %v1143_v0  ;;  %s1225_s27 = scalar_lea.vmem %s1407_s0, %s952_s24  ;;  %v1149_v8 = vld [vmem:[%s1408_s1 + $0x8] sm:$0xff]   ;;  %v1150_v9 = vld [vmem:[%s1408_s1] sm:$0xff]   ;;  %s1283_s20 = scalar_lea.vmem %s1411_s4, %s952_s24 }
   0xe   : > { %1073 = vmatprep.subr.bf16.mxu0 %v1144_v1  ;;  %1120 = vmatprep.subr.bf16.mxu1 %v1144_v1  ;;  %v1151_v4 = vld [vmem:[%s1225_s27] sm:$0xff]   ;;  %v1153_v10 = vld [vmem:[%s1225_s27 + $0x8] sm:$0xff]   ;;  %v1155_v12 = vld [vmem:[%s1225_s27 + $0x10] sm:$0xff]  }
   0xf   : > { %v1152_v5 = vld [vmem:[%s1225_s27 + $0x40] sm:$0xff]   ;;  %1087 = vmatprep.mubr.bf16.mxu0 %v1151_v4  ;;  %v1154_v11 = vld [vmem:[%s1225_s27 + $0x48] sm:$0xff]   ;;  %v1156_v13 = vld [vmem:[%s1225_s27 + $0x50] sm:$0xff]  }
  0x10   : > { %1103 = vmatprep.mubr.bf16.mxu1 %v1152_v5  ;;  %v1157_v14 = vld [vmem:[%s1225_s27 + $0x18] sm:$0xff]   ;;  %v1159_v16 = vld [vmem:[%s1225_s27 + $0x20] sm:$0xff]   ;;  %v1161_v18 = vld [vmem:[%s1225_s27 + $0x28] sm:$0xff]  }
  0x11   : > { %1074 = vmatpush3.bf16.msra.mxu0 %v1144_v1  ;;  %1128 = vmatpush3.bf16.msra.mxu1 %v1144_v1  ;;  %v1158_v15 = vld [vmem:[%s1225_s27 + $0x58] sm:$0xff]   ;;  %v1160_v17 = vld [vmem:[%s1225_s27 + $0x60] sm:$0xff]   ;;  %v1162_v19 = vld [vmem:[%s1225_s27 + $0x68] sm:$0xff]  }
  0x12   : > { %1075 = vmatprep.subr.bf16.mxu0 %v1145_v2  ;;  %1121 = vmatprep.subr.bf16.mxu1 %v1145_v2  ;;  %v1163_v20 = vld [vmem:[%s1225_s27 + $0x30] sm:$0xff]   ;;  %v1165_v22 = vld [vmem:[%s1225_s27 + $0x38] sm:$0xff]   ;;  %v1261_v24 = vld [vmem:[%s1409_s2] ss:$0 sm:$0xff] }
  0x13   : > { %v1164_v21 = vld [vmem:[%s1225_s27 + $0x70] sm:$0xff]   ;;  %v1166_v23 = vld [vmem:[%s1225_s27 + $0x78] sm:$0xff]   ;;  %v1266_v26 = vld [vmem:[%s1410_s3] ss:$0 sm:$0xff] }
  0x15   : > { %1076 = vmatpush3.bf16.msra.mxu0 %v1145_v2  ;;  %1129 = vmatpush3.bf16.msra.mxu1 %v1145_v2 }
  0x16   : > { %1077 = vmatprep.subr.bf16.mxu0 %v1146_v3  ;;  %1122 = vmatprep.subr.bf16.mxu1 %v1146_v3 }
  0x19   : > { %1078 = vmatpush3.bf16.msra.mxu0 %v1146_v3  ;;  %1130 = vmatpush3.bf16.msra.mxu1 %v1146_v3 }
  0x1a   : > { %1079 = vmatprep.subr.bf16.mxu0 %v1147_v6  ;;  %1123 = vmatprep.subr.bf16.mxu1 %v1147_v6 }
  0x1d   : > { %1080 = vmatpush3.bf16.msra.mxu0 %v1147_v6  ;;  %1131 = vmatpush3.bf16.msra.mxu1 %v1147_v6 }
  0x1e   : > { %1081 = vmatprep.subr.bf16.mxu0 %v1148_v7  ;;  %1124 = vmatprep.subr.bf16.mxu1 %v1148_v7 }
  0x21   : > { %1082 = vmatpush3.bf16.msra.mxu0 %v1148_v7  ;;  %1132 = vmatpush3.bf16.msra.mxu1 %v1148_v7 }
  0x22   : > { %1083 = vmatprep.subr.bf16.mxu0 %v1149_v8  ;;  %1125 = vmatprep.subr.bf16.mxu1 %v1149_v8 }
  0x25   : > { %1084 = vmatpush3.bf16.msra.mxu0 %v1149_v8  ;;  %1133 = vmatpush3.bf16.msra.mxu1 %v1149_v8 }
  0x26   : > { %1085 = vmatprep.subr.bf16.mxu0 %v1150_v9  ;;  %1126 = vmatprep.subr.bf16.mxu1 %v1150_v9 }
  0x29   : > { %1086 = vmatpush3.bf16.msra.mxu0 %v1150_v9  ;;  %1134 = vmatpush3.bf16.msra.mxu1 %v1150_v9 }
  0x2c   : > { %1088 = vmatmul.mubr.bf16.vlgmr.msra.gmra.mxu0 %v1153_v10  ;;  %1104 = vmatmul.mubr.bf16.vlgmr.msra.gmra.mxu1 %v1154_v11 }
  0x2d   : > { %1091 = vmatprep.mubr.bf16.mxu0 %v1155_v12  ;;  %1107 = vmatprep.mubr.bf16.mxu1 %v1156_v13 }
  0x34   : > { %1092 = vmatmul.mubr.bf16.gmra.mxu0 %v1157_v14  ;;  %1108 = vmatmul.mubr.bf16.gmra.mxu1 %v1158_v15 }
  0x35   : > { %1095 = vmatprep.mubr.bf16.mxu0 %v1159_v16  ;;  %1111 = vmatprep.mubr.bf16.mxu1 %v1160_v17 }
  0x3c   : > { %1096 = vmatmul.mubr.bf16.gmra.mxu0 %v1161_v18  ;;  %1112 = vmatmul.mubr.bf16.gmra.mxu1 %v1162_v19 }
  0x3d   : > { %1099 = vmatprep.mubr.bf16.mxu0 %v1163_v20  ;;  %1115 = vmatprep.mubr.bf16.mxu1 %v1164_v21 }
  0x44   : > { %1100 = vmatmul.mubr.bf16.gmra.mxu0 %v1165_v22  ;;  %1116 = vmatmul.mubr.bf16.gmra.mxu1 %v1166_v23 }
  0xec   : > { %v1089_v25 = vpop.f32.mrf.mxu0  ;;  %v1105_v27 = vpop.f32.mrf.mxu1 }
  0xed   : > { %v564_v28 = vmul.f32 %v1089_v25, %v1261_v24  ;;  %v580_v29 = vmul.f32 %v1105_v27, %v1261_v24 }
  0xee   : > { %v428_v30 = vpop.f32.mrf.mxu0  ;;  %v492_v31 = vpop.f32.mrf.mxu1 }
  0xef   : > { %v603_v32 = vadd.f32 %v1266_v26, %v564_v28  ;;  %v619_v33 = vadd.f32 %v1266_v26, %v580_v29  ;;  %v562_v34 = vmul.f32 %v1261_v24, %v428_v30  ;;  %v578_v35 = vmul.f32 %v1261_v24, %v492_v31 }
  0xf0   : > { %v1090_v36 = vpop.f32.mrf.mxu0  ;;  %v1106_v37 = vpop.f32.mrf.mxu1 }
  0xf1   : > { %vm635_vm1 = vcmp.ge.f32.partialorder %v603_v32, 0.0  ;;  %v667_v38 = vmul.f32 0.2, %v603_v32  ;;  %vm651_vm2 = vcmp.ge.f32.partialorder %v619_v33, 0.0  ;;  %v683_v39 = vmul.f32 0.2, %v619_v33 }
  0xf2   : > { %v601_v40 = vadd.f32 %v1266_v26, %v562_v34  ;;  %v617_v41 = vadd.f32 %v1266_v26, %v578_v35  ;;  %v565_v42 = vmul.f32 %v1090_v36, %v1261_v24  ;;  %v581_v43 = vmul.f32 %v1106_v37, %v1261_v24  ;;  %v431_v44 = vpop.f32.mrf.mxu0  ;;  %v495_v45 = vpop.f32.mrf.mxu1 }
  0xf3   : > { %v699_v46 = vsel %vm635_vm1, %v603_v32, %v667_v38  ;;  %v715_v47 = vsel %vm651_vm2, %v619_v33, %v683_v39  ;;  %v563_v48 = vmul.f32 %v1261_v24, %v431_v44  ;;  %v579_v49 = vmul.f32 %v1261_v24, %v495_v45 }
  0xf4   : > { %v1017_v50 = vpack.c.bf16 %v699_v46, %v699_v46  ;;  %v1033_v51 = vpack.c.bf16 %v715_v47, %v715_v47  ;;  %vm633_vm3 = vcmp.ge.f32.partialorder %v601_v40, 0.0  ;;  %v665_v52 = vmul.f32 0.2, %v601_v40  ;;  %v1093_v53 = vpop.f32.mrf.mxu0  ;;  %v1109_v54 = vpop.f32.mrf.mxu1 }
  0xf5   : > { %vm649_vm4 = vcmp.ge.f32.partialorder %v617_v41, 0.0  ;;  %v681_v55 = vmul.f32 0.2, %v617_v41  ;;  %v604_v56 = vadd.f32 %v1266_v26, %v565_v42  ;;  %v620_v57 = vadd.f32 %v1266_v26, %v581_v43 }
  0xf6   : > { %860 = vst.msk [vmem:[%s1283_s20 + $0x8] sm:$0xf] %vm857_vm0, %v1017_v50  ;;  %876 = vst.msk [vmem:[%s1283_s20 + $0x48] sm:$0xf] %vm857_vm0, %v1033_v51  ;;  %v697_v58 = vsel %vm633_vm3, %v601_v40, %v665_v52  ;;  %v602_v59 = vadd.f32 %v1266_v26, %v563_v48  ;;  %v618_v60 = vadd.f32 %v1266_v26, %v579_v49  ;;  %v444_v62 = vpop.f32.mrf.mxu0  ;;  %v508_v63 = vpop.f32.mrf.mxu1 }
  0xf7   : > { %v568_v61 = vmul.f32 %v1093_v53, %v1261_v24  ;;  %v1015_v0 = vpack.c.bf16 %v697_v58, %v697_v58  ;;  %v713_v1 = vsel %vm649_vm4, %v617_v41, %v681_v55  ;;  %vm636_vm5 = vcmp.ge.f32.partialorder %v604_v56, 0.0 }
  0xf8   : > { %v668_v2 = vmul.f32 0.2, %v604_v56  ;;  %v1031_v3 = vpack.c.bf16 %v713_v1, %v713_v1  ;;  %vm652_vm6 = vcmp.ge.f32.partialorder %v620_v57, 0.0  ;;  %v684_v4 = vmul.f32 0.2, %v620_v57  ;;  %v1094_v5 = vpop.f32.mrf.mxu0  ;;  %v1110_v6 = vpop.f32.mrf.mxu1 }
  0xf9   : > { %vm634_vm7 = vcmp.ge.f32.partialorder %v602_v59, 0.0  ;;  %858 = vst.msk [vmem:[%s1283_s20] sm:$0xf] %vm857_vm0, %v1015_v0  ;;  %v666_v8 = vmul.f32 0.2, %v602_v59  ;;  %vm650_vm8 = vcmp.ge.f32.partialorder %v618_v60, 0.0  ;;  %v607_v12 = vadd.f32 %v1266_v26, %v568_v61 }
  0xfa   : > { %v700_v7 = vsel %vm636_vm5, %v604_v56, %v668_v2  ;;  %v682_v9 = vmul.f32 0.2, %v618_v60  ;;  %874 = vst.msk [vmem:[%s1283_s20 + $0x40] sm:$0xf] %vm857_vm0, %v1031_v3  ;;  %v716_v11 = vsel %vm652_vm6, %v620_v57, %v684_v4  ;;  %v584_v13 = vmul.f32 %v1109_v54, %v1261_v24  ;;  %v447_v14 = vpop.f32.mrf.mxu0  ;;  %v511_v15 = vpop.f32.mrf.mxu1 }
  0xfb   : > { %v1018_v10 = vpack.c.bf16 %v700_v7, %v700_v7  ;;  %v1034_v16 = vpack.c.bf16 %v716_v11, %v716_v11  ;;  %v698_v17 = vsel %vm634_vm7, %v602_v59, %v666_v8  ;;  %v566_v19 = vmul.f32 %v1261_v24, %v444_v62 }
  0xfc   : > { %v714_v18 = vsel %vm650_vm8, %v618_v60, %v682_v9  ;;  %v1016_v20 = vpack.c.bf16 %v698_v17, %v698_v17  ;;  %vm639_vm9 = vcmp.ge.f32.partialorder %v607_v12, 0.0  ;;  %v671_v22 = vmul.f32 0.2, %v607_v12  ;;  %v1097_v23 = vpop.f32.mrf.mxu0  ;;  %v1113_v25 = vpop.f32.mrf.mxu1 }
  0xfd   : > { %861 = vst.msk [vmem:[%s1283_s20 + $0xc] sm:$0xf] %vm857_vm0, %v1018_v10  ;;  %v1032_v21 = vpack.c.bf16 %v714_v18, %v714_v18  ;;  %877 = vst.msk [vmem:[%s1283_s20 + $0x4c] sm:$0xf] %vm857_vm0, %v1034_v16  ;;  %v623_v27 = vadd.f32 %v1266_v26, %v584_v13  ;;  %v605_v28 = vadd.f32 %v1266_v26, %v566_v19 }
  0xfe   : > { %v582_v29 = vmul.f32 %v1261_v24, %v508_v63  ;;  %v569_v30 = vmul.f32 %v1094_v5, %v1261_v24  ;;  %859 = vst.msk [vmem:[%s1283_s20 + $0x4] sm:$0xf] %vm857_vm0, %v1016_v20  ;;  %v703_v31 = vsel %vm639_vm9, %v607_v12, %v671_v22  ;;  %v585_v32 = vmul.f32 %v1110_v6, %v1261_v24  ;;  %v460_v35 = vpop.f32.mrf.mxu0  ;;  %v524_v36 = vpop.f32.mrf.mxu1 }
  0xff   : > { %875 = vst.msk [vmem:[%s1283_s20 + $0x44] sm:$0xf] %vm857_vm0, %v1032_v21  ;;  %v567_v33 = vmul.f32 %v1261_v24, %v447_v14  ;;  %v583_v34 = vmul.f32 %v1261_v24, %v511_v15  ;;  %v1021_v37 = vpack.c.bf16 %v703_v31, %v703_v31  ;;  %vm655_vm10 = vcmp.ge.f32.partialorder %v623_v27, 0.0 }
 0x100   : > { %v687_v38 = vmul.f32 0.2, %v623_v27  ;;  %vm637_vm11 = vcmp.ge.f32.partialorder %v605_v28, 0.0  ;;  %v669_v39 = vmul.f32 0.2, %v605_v28  ;;  %v621_v40 = vadd.f32 %v1266_v26, %v582_v29  ;;  %v1098_v47 = vpop.f32.mrf.mxu0  ;;  %v1114_v51 = vpop.f32.mrf.mxu1 }
 0x101   : > { %v608_v41 = vadd.f32 %v1266_v26, %v569_v30  ;;  %v624_v42 = vadd.f32 %v1266_v26, %v585_v32  ;;  %864 = vst.msk [vmem:[%s1283_s20 + $0x18] sm:$0xf] %vm857_vm0, %v1021_v37  ;;  %v606_v44 = vadd.f32 %v1266_v26, %v567_v33  ;;  %v622_v45 = vadd.f32 %v1266_v26, %v583_v34 }
 0x102   : > { %v719_v43 = vsel %vm655_vm10, %v623_v27, %v687_v38  ;;  %v572_v46 = vmul.f32 %v1097_v23, %v1261_v24  ;;  %v701_v49 = vsel %vm637_vm11, %v605_v28, %v669_v39  ;;  %vm653_vm12 = vcmp.ge.f32.partialorder %v621_v40, 0.0  ;;  %v463_v60 = vpop.f32.mrf.mxu0  ;;  %v527_v1 = vpop.f32.mrf.mxu1 }
 0x103   : > { %v1037_v48 = vpack.c.bf16 %v719_v43, %v719_v43  ;;  %v685_v50 = vmul.f32 0.2, %v621_v40  ;;  %v1019_v52 = vpack.c.bf16 %v701_v49, %v701_v49  ;;  %vm640_vm13 = vcmp.ge.f32.partialorder %v608_v41, 0.0 }
 0x104   : > { %v672_v53 = vmul.f32 0.2, %v608_v41  ;;  %vm656_vm14 = vcmp.ge.f32.partialorder %v624_v42, 0.0  ;;  %v688_v55 = vmul.f32 0.2, %v624_v42  ;;  %vm638_vm15 = vcmp.ge.f32.partialorder %v606_v44, 0.0  ;;  %v1101_v13 = vpop.f32.mrf.mxu0  ;;  %v1117_v18 = vpop.f32.mrf.mxu1 }
 0x105   : > { %880 = vst.msk [vmem:[%s1283_s20 + $0x58] sm:$0xf] %vm857_vm0, %v1037_v48  ;;  %v717_v54 = vsel %vm653_vm12, %v621_v40, %v685_v50  ;;  %v670_v56 = vmul.f32 0.2, %v606_v44  ;;  %862 = vst.msk [vmem:[%s1283_s20 + $0x10] sm:$0xf] %vm857_vm0, %v1019_v52  ;;  %v611_v0 = vadd.f32 %v1266_v26, %v572_v46  ;;  %v588_v5 = vmul.f32 %v1113_v25, %v1261_v24 }
 0x106   : > { %v1035_v57 = vpack.c.bf16 %v717_v54, %v717_v54  ;;  %v704_v58 = vsel %vm640_vm13, %v608_v41, %v672_v53  ;;  %vm654_vm1 = vcmp.ge.f32.partialorder %v622_v45, 0.0  ;;  %v686_v59 = vmul.f32 0.2, %v622_v45  ;;  %v476_v30 = vpop.f32.mrf.mxu0  ;;  %v540_v34 = vpop.f32.mrf.mxu1 }
 0x107   : > { %v1022_v61 = vpack.c.bf16 %v704_v58, %v704_v58  ;;  %v720_v62 = vsel %vm656_vm14, %v624_v42, %v688_v55  ;;  %v702_v63 = vsel %vm638_vm15, %v606_v44, %v670_v56  ;;  %vm643_vm2 = vcmp.ge.f32.partialorder %v611_v0, 0.0 }
 0x108   : > { %878 = vst.msk [vmem:[%s1283_s20 + $0x50] sm:$0xf] %vm857_vm0, %v1035_v57  ;;  %v1038_v2 = vpack.c.bf16 %v720_v62, %v720_v62  ;;  %v1020_v3 = vpack.c.bf16 %v702_v63, %v702_v63  ;;  %v718_v4 = vsel %vm654_vm1, %v622_v45, %v686_v59  ;;  %v675_v7 = vmul.f32 0.2, %v611_v0  ;;  %v1102_v45 = vpop.f32.mrf.mxu0  ;;  %v1118_v50 = vpop.f32.mrf.mxu1 }
 0x109   : > { %865 = vst.msk [vmem:[%s1283_s20 + $0x1c] sm:$0xf] %vm857_vm0, %v1022_v61  ;;  %v1036_v6 = vpack.c.bf16 %v718_v4, %v718_v4  ;;  %v570_v8 = vmul.f32 %v1261_v24, %v460_v35  ;;  %v627_v9 = vadd.f32 %v1266_v26, %v588_v5  ;;  %v586_v10 = vmul.f32 %v1261_v24, %v524_v36 }
 0x10a   : > { %881 = vst.msk [vmem:[%s1283_s20 + $0x5c] sm:$0xf] %vm857_vm0, %v1038_v2  ;;  %863 = vst.msk [vmem:[%s1283_s20 + $0x14] sm:$0xf] %vm857_vm0, %v1020_v3  ;;  %v573_v11 = vmul.f32 %v1098_v47, %v1261_v24  ;;  %v589_v12 = vmul.f32 %v1114_v51, %v1261_v24  ;;  %v707_v14 = vsel %vm643_vm2, %v611_v0, %v675_v7  ;;  %v479_v61 = vpop.f32.mrf.mxu0 }
 0x10b   : > { %879 = vst.msk [vmem:[%s1283_s20 + $0x54] sm:$0xf] %vm857_vm0, %v1036_v6  ;;  %v609_v15 = vadd.f32 %v1266_v26, %v570_v8  ;;  %v571_v16 = vmul.f32 %v1261_v24, %v463_v60  ;;  %v587_v17 = vmul.f32 %v1261_v24, %v527_v1  ;;  %v1025_v19 = vpack.c.bf16 %v707_v14, %v707_v14  ;;  %v543_v8 = vpop.f32.mrf.mxu1 }
 0x10c   : > { %vm659_vm3 = vcmp.ge.f32.partialorder %v627_v9, 0.0  ;;  %v691_v20 = vmul.f32 0.2, %v627_v9  ;;  %v625_v21 = vadd.f32 %v1266_v26, %v586_v10  ;;  %v612_v23 = vadd.f32 %v1266_v26, %v573_v11 }
 0x10d   : > { %vm641_vm4 = vcmp.ge.f32.partialorder %v609_v15, 0.0  ;;  %v673_v22 = vmul.f32 0.2, %v609_v15  ;;  %v628_v25 = vadd.f32 %v1266_v26, %v589_v12  ;;  %868 = vst.msk [vmem:[%s1283_s20 + $0x28] sm:$0xf] %vm857_vm0, %v1025_v19  ;;  %v610_v29 = vadd.f32 %v1266_v26, %v571_v16 }
 0x10e   : > { %v723_v27 = vsel %vm659_vm3, %v627_v9, %v691_v20  ;;  %vm657_vm5 = vcmp.ge.f32.partialorder %v625_v21, 0.0  ;;  %v689_v28 = vmul.f32 0.2, %v625_v21  ;;  %vm644_vm6 = vcmp.ge.f32.partialorder %v612_v23, 0.0 }
 0x10f   : > { %v1041_v31 = vpack.c.bf16 %v723_v27, %v723_v27  ;;  %v705_v32 = vsel %vm641_vm4, %v609_v15, %v673_v22  ;;  %v676_v33 = vmul.f32 0.2, %v612_v23  ;;  %vm660_vm7 = vcmp.ge.f32.partialorder %v628_v25, 0.0 }
 0x110   : > { %v1023_v35 = vpack.c.bf16 %v705_v32, %v705_v32  ;;  %v721_v36 = vsel %vm657_vm5, %v625_v21, %v689_v28  ;;  %v692_v37 = vmul.f32 0.2, %v628_v25  ;;  %vm642_vm8 = vcmp.ge.f32.partialorder %v610_v29, 0.0 }
 0x111   : > { %884 = vst.msk [vmem:[%s1283_s20 + $0x68] sm:$0xf] %vm857_vm0, %v1041_v31  ;;  %v1039_v38 = vpack.c.bf16 %v721_v36, %v721_v36  ;;  %v708_v39 = vsel %vm644_vm6, %v612_v23, %v676_v33  ;;  %v674_v40 = vmul.f32 0.2, %v610_v29  ;;  %v626_v43 = vadd.f32 %v1266_v26, %v587_v17 }
 0x112   : > { %866 = vst.msk [vmem:[%s1283_s20 + $0x20] sm:$0xf] %vm857_vm0, %v1023_v35  ;;  %v1026_v41 = vpack.c.bf16 %v708_v39, %v708_v39  ;;  %v724_v42 = vsel %vm660_vm7, %v628_v25, %v692_v37  ;;  %v576_v44 = vmul.f32 %v1101_v13, %v1261_v24  ;;  %v592_v48 = vmul.f32 %v1117_v18, %v1261_v24 }
 0x113   : > { %882 = vst.msk [vmem:[%s1283_s20 + $0x60] sm:$0xf] %vm857_vm0, %v1039_v38  ;;  %v1042_v46 = vpack.c.bf16 %v724_v42, %v724_v42  ;;  %v706_v47 = vsel %vm642_vm8, %v610_v29, %v674_v40  ;;  %v574_v49 = vmul.f32 %v1261_v24, %v476_v30  ;;  %vm658_vm9 = vcmp.ge.f32.partialorder %v626_v43, 0.0 }
 0x114   : > { %869 = vst.msk [vmem:[%s1283_s20 + $0x2c] sm:$0xf] %vm857_vm0, %v1026_v41  ;;  %v1024_v51 = vpack.c.bf16 %v706_v47, %v706_v47  ;;  %v690_v52 = vmul.f32 0.2, %v626_v43  ;;  %v615_v53 = vadd.f32 %v1266_v26, %v576_v44  ;;  %v631_v54 = vadd.f32 %v1266_v26, %v592_v48 }
 0x115   : > { %885 = vst.msk [vmem:[%s1283_s20 + $0x6c] sm:$0xf] %vm857_vm0, %v1042_v46  ;;  %v613_v55 = vadd.f32 %v1266_v26, %v574_v49  ;;  %v590_v56 = vmul.f32 %v1261_v24, %v540_v34  ;;  %v577_v57 = vmul.f32 %v1102_v45, %v1261_v24  ;;  %v593_v60 = vmul.f32 %v1118_v50, %v1261_v24 }
 0x116   : > { %867 = vst.msk [vmem:[%s1283_s20 + $0x24] sm:$0xf] %vm857_vm0, %v1024_v51  ;;  %v722_v58 = vsel %vm658_vm9, %v626_v43, %v690_v52  ;;  %vm647_vm10 = vcmp.ge.f32.partialorder %v615_v53, 0.0  ;;  %v679_v59 = vmul.f32 0.2, %v615_v53  ;;  %vm663_vm11 = vcmp.ge.f32.partialorder %v631_v54, 0.0 }
 0x117   : > { %v1040_v62 = vpack.c.bf16 %v722_v58, %v722_v58  ;;  %v695_v63 = vmul.f32 0.2, %v631_v54  ;;  %vm645_vm12 = vcmp.ge.f32.partialorder %v613_v55, 0.0  ;;  %v677_v1 = vmul.f32 0.2, %v613_v55 }
 0x118   : > { %v711_v0 = vsel %vm647_vm10, %v615_v53, %v679_v59  ;;  %v629_v2 = vadd.f32 %v1266_v26, %v590_v56  ;;  %v616_v3 = vadd.f32 %v1266_v26, %v577_v57  ;;  %v632_v6 = vadd.f32 %v1266_v26, %v593_v60 }
 0x119   : > { %883 = vst.msk [vmem:[%s1283_s20 + $0x64] sm:$0xf] %vm857_vm0, %v1040_v62  ;;  %v1029_v4 = vpack.c.bf16 %v711_v0, %v711_v0  ;;  %v727_v5 = vsel %vm663_vm11, %v631_v54, %v695_v63  ;;  %v575_v7 = vmul.f32 %v1261_v24, %v479_v61  ;;  %v709_v10 = vsel %vm645_vm12, %v613_v55, %v677_v1 }
 0x11a   : > { %v1045_v9 = vpack.c.bf16 %v727_v5, %v727_v5  ;;  %vm661_vm13 = vcmp.ge.f32.partialorder %v629_v2, 0.0  ;;  %v693_v11 = vmul.f32 0.2, %v629_v2  ;;  %v1027_v12 = vpack.c.bf16 %v709_v10, %v709_v10 }
 0x11b   : > { %872 = vst.msk [vmem:[%s1283_s20 + $0x38] sm:$0xf] %vm857_vm0, %v1029_v4  ;;  %vm648_vm14 = vcmp.ge.f32.partialorder %v616_v3, 0.0  ;;  %v680_v13 = vmul.f32 0.2, %v616_v3  ;;  %vm664_vm15 = vcmp.ge.f32.partialorder %v632_v6, 0.0  ;;  %v614_v16 = vadd.f32 %v1266_v26, %v575_v7 }
 0x11c   : > { %888 = vst.msk [vmem:[%s1283_s20 + $0x78] sm:$0xf] %vm857_vm0, %v1045_v9  ;;  %v725_v14 = vsel %vm661_vm13, %v629_v2, %v693_v11  ;;  %v696_v15 = vmul.f32 0.2, %v632_v6  ;;  %v591_v17 = vmul.f32 %v1261_v24, %v543_v8  ;;  %870 = vst.msk [vmem:[%s1283_s20 + $0x30] sm:$0xf] %vm857_vm0, %v1027_v12 }
 0x11d   : > { %v1043_v18 = vpack.c.bf16 %v725_v14, %v725_v14  ;;  %v712_v19 = vsel %vm648_vm14, %v616_v3, %v680_v13  ;;  %vm646_vm1 = vcmp.ge.f32.partialorder %v614_v16, 0.0  ;;  %v678_v22 = vmul.f32 0.2, %v614_v16 }
 0x11e   : > { %v1030_v20 = vpack.c.bf16 %v712_v19, %v712_v19  ;;  %v728_v21 = vsel %vm664_vm15, %v632_v6, %v696_v15  ;;  %v630_v25 = vadd.f32 %v1266_v26, %v591_v17 }
 0x11f   : > { %886 = vst.msk [vmem:[%s1283_s20 + $0x70] sm:$0xf] %vm857_vm0, %v1043_v18  ;;  %v1046_v23 = vpack.c.bf16 %v728_v21, %v728_v21  ;;  %v710_v27 = vsel %vm646_vm1, %v614_v16, %v678_v22 }
 0x120   : > { %873 = vst.msk [vmem:[%s1283_s20 + $0x3c] sm:$0xf] %vm857_vm0, %v1030_v20  ;;  %v1028_v24 = vpack.c.bf16 %v710_v27, %v710_v27  ;;  %vm662_vm2 = vcmp.ge.f32.partialorder %v630_v25, 0.0  ;;  %v694_v28 = vmul.f32 0.2, %v630_v25 }
 0x121   : > { %889 = vst.msk [vmem:[%s1283_s20 + $0x7c] sm:$0xf] %vm857_vm0, %v1046_v23 }
 0x122   : > { %871 = vst.msk [vmem:[%s1283_s20 + $0x34] sm:$0xf] %vm857_vm0, %v1028_v24  ;;  %v726_v29 = vsel %vm662_vm2, %v630_v25, %v694_v28 }
 0x123   : > { %v1044_v30 = vpack.c.bf16 %v726_v29, %v726_v29 }
 0x125   : > { %887 = vst.msk [vmem:[%s1283_s20 + $0x74] sm:$0xf] %vm857_vm0, %v1044_v30 }
 0x126 PF: > { %s14_s15 = sadd.s32 1, %s1173_s15  }
 0x127   : > { %p11_p4 = scmp.ge.s32.totalorder %s14_s15, 4  }
 0x129   :  { %13 = sbr.rel (!%p11_p4) target bundleno = 1 (0x1), region = 66 }

// kernel: encoder_forward.4
= control target key start
LH: loop header
LB: loop body
LE: loop exit
PB: predicated region body
PF: predicated region fallthrough
CT: control target
= control target key end

     0   :  { %s2604_s1 = inlined_call_operand.vmem [shape: bf16[1024,128], index: 1, kind: input, shape index: {}]   ;;  %s2605_s0 = inlined_call_operand.vmem [shape: bf16[128,1024], index: 0, kind: input, shape index: {}]   ;;  %s2606_s2 = inlined_call_operand.vmem [shape: f32[1,128], index: 2, kind: input, shape index: {}]   ;;  %s2607_s3 = inlined_call_operand.vmem [shape: f32[1,128], index: 3, kind: input, shape index: {}]   ;;  %s2608_s4 = inlined_call_operand.vmem [shape: bf16[128,128], index: 4, kind: output, shape index: {}]  }
   0x1   :  { %v1945_v0 = vld [vmem:[%s2604_s1 + $0x78] sm:$0xff]   ;;  %v1949_v4 = vld [vmem:[%s2604_s1 + $0x70] sm:$0xff]   ;;  %v1953_v8 = vld [vmem:[%s2604_s1 + $0x68] sm:$0xff]  }
   0x2   :  { %v1946_v1 = vld [vmem:[%s2604_s1 + $0xf8] sm:$0xff]   ;;  %1689 = vmatprep.subr.bf16.mxu0 %v1945_v0  ;;  %v1950_v5 = vld [vmem:[%s2604_s1 + $0xf0] sm:$0xff]   ;;  %v1954_v9 = vld [vmem:[%s2604_s1 + $0xe8] sm:$0xff]  }
   0x3   :  { %v1947_v2 = vld [vmem:[%s2604_s1 + $0x38] sm:$0xff]   ;;  %1753 = vmatprep.subr.bf16.mxu1 %v1946_v1  ;;  %v1951_v6 = vld [vmem:[%s2604_s1 + $0x30] sm:$0xff]   ;;  %v1955_v10 = vld [vmem:[%s2604_s1 + $0x28] sm:$0xff]  }
   0x4   :  { %v1948_v3 = vld [vmem:[%s2604_s1 + $0xb8] sm:$0xff]   ;;  %1690 = vmatpush3.bf16.msra.mxu0 %v1947_v2  ;;  %v1952_v7 = vld [vmem:[%s2604_s1 + $0xb0] sm:$0xff]   ;;  %v1956_v11 = vld [vmem:[%s2604_s1 + $0xa8] sm:$0xff]  }
   0x5   :  { %1754 = vmatpush3.bf16.msra.mxu1 %v1948_v3  ;;  %1691 = vmatprep.subr.bf16.mxu0 %v1949_v4  ;;  %v1957_v12 = vld [vmem:[%s2604_s1 + $0x60] sm:$0xff]   ;;  %v1961_v16 = vld [vmem:[%s2604_s1 + $0x58] sm:$0xff]   ;;  %v1965_v20 = vld [vmem:[%s2604_s1 + $0x50] sm:$0xff]  }
   0x6   :  { %1755 = vmatprep.subr.bf16.mxu1 %v1950_v5  ;;  %v1958_v13 = vld [vmem:[%s2604_s1 + $0xe0] sm:$0xff]   ;;  %v1962_v17 = vld [vmem:[%s2604_s1 + $0xd8] sm:$0xff]   ;;  %v1966_v21 = vld [vmem:[%s2604_s1 + $0xd0] sm:$0xff]  }
   0x7   :  { %v1959_v14 = vld [vmem:[%s2604_s1 + $0x20] sm:$0xff]   ;;  %v1963_v18 = vld [vmem:[%s2604_s1 + $0x18] sm:$0xff]   ;;  %v1967_v22 = vld [vmem:[%s2604_s1 + $0x10] sm:$0xff]  }
   0x8   :  { %1692 = vmatpush3.bf16.msra.mxu0 %v1951_v6  ;;  %v1960_v15 = vld [vmem:[%s2604_s1 + $0xa0] sm:$0xff]   ;;  %v1964_v19 = vld [vmem:[%s2604_s1 + $0x98] sm:$0xff]   ;;  %v1968_v23 = vld [vmem:[%s2604_s1 + $0x90] sm:$0xff]  }
   0x9   :  { %1756 = vmatpush3.bf16.msra.mxu1 %v1952_v7  ;;  %1693 = vmatprep.subr.bf16.mxu0 %v1953_v8  ;;  %v1969_v24 = vld [vmem:[%s2604_s1 + $0x48] sm:$0xff]   ;;  %v1973_v28 = vld [vmem:[%s2604_s1 + $0x40] sm:$0xff]   ;;  %v1977_v40 = vld [vmem:[%s2604_s1 + $0x178] sm:$0xff]  }
   0xa   :  { %1757 = vmatprep.subr.bf16.mxu1 %v1954_v9  ;;  %v1970_v25 = vld [vmem:[%s2604_s1 + $0xc8] sm:$0xff]   ;;  %v1974_v29 = vld [vmem:[%s2604_s1 + $0xc0] sm:$0xff]   ;;  %v1978_v41 = vld [vmem:[%s2604_s1 + $0x138] sm:$0xff]  }
   0xb   :  { %v1971_v26 = vld [vmem:[%s2604_s1 + $0x8] sm:$0xff]   ;;  %v1975_v30 = vld [vmem:[%s2604_s1] sm:$0xff]   ;;  %v1979_v42 = vld [vmem:[%s2604_s1 + $0x1f8] sm:$0xff]  }
   0xc   :  { %1694 = vmatpush3.bf16.msra.mxu0 %v1955_v10  ;;  %v1972_v27 = vld [vmem:[%s2604_s1 + $0x88] sm:$0xff]   ;;  %v1976_v31 = vld [vmem:[%s2604_s1 + $0x80] sm:$0xff]   ;;  %v1980_v43 = vld [vmem:[%s2604_s1 + $0x1b8] sm:$0xff]  }
   0xd   :  { %1758 = vmatpush3.bf16.msra.mxu1 %v1956_v11  ;;  %1695 = vmatprep.subr.bf16.mxu0 %v1957_v12  ;;  %v18_v32 = vld [vmem:[%s2605_s0] sm:$0xff]  ;;  %v19_v34 = vld [vmem:[%s2605_s0 + $0x8] sm:$0xff]  ;;  %v1981_v50 = vld [vmem:[%s2604_s1 + $0x170] sm:$0xff]  }
   0xe   :  { %1759 = vmatprep.subr.bf16.mxu1 %v1958_v13  ;;  %v22_v33 = vld [vmem:[%s2605_s0 + $0x20] sm:$0xff]  ;;  %v23_v37 = vld [vmem:[%s2605_s0 + $0x28] sm:$0xff]  ;;  %v1982_v52 = vld [vmem:[%s2604_s1 + $0x130] sm:$0xff]  }
   0xf   :  { %v1480_v35 = vcombine.low %v18_v32, %v22_v33  ;;  %v1481_v36 = vcombine.high %v18_v32, %v22_v33  ;;  %v1482_v38 = vcombine.low %v19_v34, %v23_v37  ;;  %v1483_v39 = vcombine.high %v19_v34, %v23_v37  ;;  %v26_v44 = vld [vmem:[%s2605_s0 + $0x40] sm:$0xff]  ;;  %v27_v47 = vld [vmem:[%s2605_s0 + $0x48] sm:$0xff]  ;;  %v1983_v54 = vld [vmem:[%s2604_s1 + $0x1f0] sm:$0xff]  }
  0x10   :  { %1696 = vmatpush3.bf16.msra.mxu0 %v1959_v14  ;;  %v30_v45 = vld [vmem:[%s2605_s0 + $0x60] sm:$0xff]  ;;  %v31_v48 = vld [vmem:[%s2605_s0 + $0x68] sm:$0xff]  ;;  %v1984_v55 = vld [vmem:[%s2604_s1 + $0x1b0] sm:$0xff]  }
  0x11   :  { %1760 = vmatpush3.bf16.msra.mxu1 %v1960_v15  ;;  %1697 = vmatprep.subr.bf16.mxu0 %v1961_v16  ;;  %v1489_v46 = vcombine.high %v26_v44, %v30_v45  ;;  %v1491_v49 = vcombine.high %v27_v47, %v31_v48  ;;  %v1488_v51 = vcombine.low %v26_v44, %v30_v45  ;;  %v34_v56 = vld [vmem:[%s2605_s0 + $0x80] sm:$0xff]  ;;  %v35_v58 = vld [vmem:[%s2605_s0 + $0x88] sm:$0xff]  ;;  %v1999_v32 = vld [vmem:[%s2604_s1 + $0x1d0] sm:$0xff]  }
  0x12   :  { %1761 = vmatprep.subr.bf16.mxu1 %v1962_v17  ;;  %946 = vmatprep.mubr.bf16.mxu0 %v1481_v36  ;;  %v1490_v53 = vcombine.low %v27_v47, %v31_v48  ;;  %v38_v57 = vld [vmem:[%s2605_s0 + $0xa0] sm:$0xff]  ;;  %v39_v59 = vld [vmem:[%s2605_s0 + $0xa8] sm:$0xff]  ;;  %v2000_v33 = vld [vmem:[%s2604_s1 + $0x190] sm:$0xff]  }
  0x13   :  { %1043 = vmatprep.mubr.bf16.mxu1 %v1483_v39  ;;  %v1497_v60 = vcombine.high %v34_v56, %v38_v57  ;;  %v1499_v61 = vcombine.high %v35_v58, %v39_v59  ;;  %v1985_v62 = vld [vmem:[%s2604_s1 + $0x168] sm:$0xff]   ;;  %v1496_v2 = vcombine.low %v34_v56, %v38_v57  ;;  %v42_v3 = vld [vmem:[%s2605_s0 + $0xc0] sm:$0xff]  ;;  %v1498_v6 = vcombine.low %v35_v58, %v39_v59 }
  0x14   :  { %1698 = vmatpush3.bf16.msra.mxu0 %v1963_v18  ;;  %v1986_v63 = vld [vmem:[%s2604_s1 + $0x128] sm:$0xff]   ;;  %v46_v4 = vld [vmem:[%s2605_s0 + $0xe0] sm:$0xff]  ;;  %v1993_v18 = vld [vmem:[%s2604_s1 + $0x158] sm:$0xff]  }
  0x15   :  { %1762 = vmatpush3.bf16.msra.mxu1 %v1964_v19  ;;  %1699 = vmatprep.subr.bf16.mxu0 %v1965_v20  ;;  %v1987_v0 = vld [vmem:[%s2604_s1 + $0x1e8] sm:$0xff]   ;;  %v1505_v7 = vcombine.high %v42_v3, %v46_v4  ;;  %v1989_v10 = vld [vmem:[%s2604_s1 + $0x160] sm:$0xff]   ;;  %v1504_v19 = vcombine.low %v42_v3, %v46_v4  ;;  %v1994_v20 = vld [vmem:[%s2604_s1 + $0x118] sm:$0xff]  }
  0x16   :  { %1763 = vmatprep.subr.bf16.mxu1 %v1966_v21  ;;  %v1988_v1 = vld [vmem:[%s2604_s1 + $0x1a8] sm:$0xff]   ;;  %v1990_v11 = vld [vmem:[%s2604_s1 + $0x120] sm:$0xff]  }
  0x17   :  { %v43_v5 = vld [vmem:[%s2605_s0 + $0xc8] sm:$0xff]  ;;  %v1991_v12 = vld [vmem:[%s2604_s1 + $0x1e0] sm:$0xff]  }
  0x18   :  { %1700 = vmatpush3.bf16.msra.mxu0 %v1967_v22  ;;  %v47_v8 = vld [vmem:[%s2605_s0 + $0xe8] sm:$0xff]  ;;  %v1992_v13 = vld [vmem:[%s2604_s1 + $0x1a0] sm:$0xff]  }
  0x19   :  { %1764 = vmatpush3.bf16.msra.mxu1 %v1968_v23  ;;  %1701 = vmatprep.subr.bf16.mxu0 %v1969_v24  ;;  %v1507_v9 = vcombine.high %v43_v5, %v47_v8  ;;  %v50_v14 = vld [vmem:[%s2605_s0 + $0x100] sm:$0xff]  ;;  %v51_v16 = vld [vmem:[%s2605_s0 + $0x108] sm:$0xff]  ;;  %v1506_v21 = vcombine.low %v43_v5, %v47_v8  ;;  %v1995_v23 = vld [vmem:[%s2604_s1 + $0x1d8] sm:$0xff]  }
  0x1a   :  { %1765 = vmatprep.subr.bf16.mxu1 %v1970_v25  ;;  %v54_v15 = vld [vmem:[%s2605_s0 + $0x120] sm:$0xff]  ;;  %v55_v17 = vld [vmem:[%s2605_s0 + $0x128] sm:$0xff]  ;;  %v1996_v25 = vld [vmem:[%s2604_s1 + $0x198] sm:$0xff]  }
  0x1b   :  { %v1513_v22 = vcombine.high %v50_v14, %v54_v15  ;;  %v1515_v24 = vcombine.high %v51_v16, %v55_v17  ;;  %v1512_v34 = vcombine.low %v50_v14, %v54_v15  ;;  %v2002_v39 = vld [vmem:[%s2604_s1 + $0x108] sm:$0xff]   ;;  %v2006_v48 = vld [vmem:[%s2604_s1 + $0x100] sm:$0xff]   ;;  %v29_v8 = vld [vmem:[%s2605_s0 + $0x58] sm:$0xff] }
  0x1c   :  { %1702 = vmatpush3.bf16.msra.mxu0 %v1971_v26  ;;  %v58_v26 = vld [vmem:[%s2605_s0 + $0x140] sm:$0xff]  ;;  %v67_v44 = vld [vmem:[%s2605_s0 + $0x188] sm:$0xff]  ;;  %v36_v14 = vld [vmem:[%s2605_s0 + $0x90] sm:$0xff] }
  0x1d   :  { %1766 = vmatpush3.bf16.msra.mxu1 %v1972_v27  ;;  %1703 = vmatprep.subr.bf16.mxu0 %v1973_v28  ;;  %v62_v27 = vld [vmem:[%s2605_s0 + $0x160] sm:$0xff]  ;;  %v1997_v28 = vld [vmem:[%s2604_s1 + $0x150] sm:$0xff]   ;;  %v71_v45 = vld [vmem:[%s2605_s0 + $0x1a8] sm:$0xff] }
  0x1e   :  { %1767 = vmatprep.subr.bf16.mxu1 %v1974_v29  ;;  %v59_v29 = vld [vmem:[%s2605_s0 + $0x148] sm:$0xff]  ;;  %v1521_v36 = vcombine.high %v58_v26, %v62_v27  ;;  %v1520_v47 = vcombine.low %v58_v26, %v62_v27  ;;  %v1530_v59 = vcombine.low %v67_v44, %v71_v45  ;;  %v40_v15 = vld [vmem:[%s2605_s0 + $0xb0] sm:$0xff] }
  0x1f   :  { %v75_v56 = vld [vmem:[%s2605_s0 + $0x1c8] sm:$0xff]  ;;  %v1500_v26 = vcombine.low %v36_v14, %v40_v15 }
  0x20   :  { %1704 = vmatpush3.bf16.msra.mxu0 %v1975_v30  ;;  %v63_v30 = vld [vmem:[%s2605_s0 + $0x168] sm:$0xff] }
  0x21   :  { %1768 = vmatpush3.bf16.msra.mxu1 %v1976_v31  ;;  %1817 = vmatprep.subr.bf16.mxu0 %v1977_v40  ;;  %v1998_v31 = vld [vmem:[%s2604_s1 + $0x110] sm:$0xff]   ;;  %v1523_v37 = vcombine.high %v59_v29, %v63_v30  ;;  %v2003_v40 = vld [vmem:[%s2604_s1 + $0x1c8] sm:$0xff]  }
  0x22   :  { %1881 = vmatprep.subr.bf16.mxu1 %v1979_v42  ;;  %v70_v42 = vld [vmem:[%s2605_s0 + $0x1a0] sm:$0xff]  ;;  %v79_v57 = vld [vmem:[%s2605_s0 + $0x1e8] sm:$0xff] }
  0x23   :  { %947 = vmatmul.mubr.bf16.vlgmr.msra.gmra.mxu0 %v1480_v35  ;;  %v1514_v35 = vcombine.low %v51_v16, %v55_v17  ;;  %v1538_v3 = vcombine.low %v75_v56, %v79_v57  ;;  %v37_v16 = vld [vmem:[%s2605_s0 + $0x98] sm:$0xff] }
  0x24   :  { %1044 = vmatmul.mubr.bf16.vlgmr.msra.gmra.mxu1 %v1482_v38  ;;  %1818 = vmatpush3.bf16.msra.mxu0 %v1978_v41  ;;  %v2001_v38 = vld [vmem:[%s2604_s1 + $0x148] sm:$0xff]   ;;  %v66_v41 = vld [vmem:[%s2605_s0 + $0x180] sm:$0xff]  ;;  %v41_v17 = vld [vmem:[%s2605_s0 + $0xb8] sm:$0xff] }
  0x25   :  { %1882 = vmatpush3.bf16.msra.mxu1 %v1980_v43  ;;  %954 = vmatprep.mubr.bf16.mxu0 %v1489_v46  ;;  %v2004_v43 = vld [vmem:[%s2604_s1 + $0x188] sm:$0xff]   ;;  %v2005_v46 = vld [vmem:[%s2604_s1 + $0x140] sm:$0xff]   ;;  %v1528_v58 = vcombine.low %v66_v41, %v70_v42  ;;  %v1502_v27 = vcombine.low %v37_v16, %v41_v17 }
  0x26   :  { %1051 = vmatprep.mubr.bf16.mxu1 %v1491_v49  ;;  %1819 = vmatprep.subr.bf16.mxu0 %v1981_v50  ;;  %v1522_v49 = vcombine.low %v59_v29, %v63_v30  ;;  %v1529_v50 = vcombine.high %v66_v41, %v70_v42  ;;  %v52_v30 = vld [vmem:[%s2605_s0 + $0x110] sm:$0xff]  ;;  %v65_v41 = vld [vmem:[%s2605_s0 + $0x178] sm:$0xff] }
  0x27   :  { %1883 = vmatprep.subr.bf16.mxu1 %v1983_v54  ;;  %v74_v54 = vld [vmem:[%s2605_s0 + $0x1c0] sm:$0xff] }
  0x28   :  { %1820 = vmatpush3.bf16.msra.mxu0 %v1982_v52  ;;  %v1531_v52 = vcombine.high %v67_v44, %v71_v45 }
  0x29   :  { %1884 = vmatpush3.bf16.msra.mxu1 %v1984_v55  ;;  %1821 = vmatprep.subr.bf16.mxu0 %v1985_v62  ;;  %v78_v55 = vld [vmem:[%s2605_s0 + $0x1e0] sm:$0xff]  ;;  %v20_v62 = vld [vmem:[%s2605_s0 + $0x10] sm:$0xff] }
  0x2a   :  { %1885 = vmatprep.subr.bf16.mxu1 %v1987_v0  ;;  %v21_v0 = vld [vmem:[%s2605_s0 + $0x18] sm:$0xff] }
  0x2b   :  { %955 = vmatmul.mubr.bf16.gmra.mxu0 %v1488_v51  ;;  %v2007_v51 = vld [vmem:[%s2604_s1 + $0x1c0] sm:$0xff]  }
  0x2c   :  { %1052 = vmatmul.mubr.bf16.gmra.mxu1 %v1490_v53  ;;  %962 = vmatprep.mubr.bf16.mxu0 %v1497_v60  ;;  %v2008_v53 = vld [vmem:[%s2604_s1 + $0x180] sm:$0xff]   ;;  %v1537_v60 = vcombine.high %v74_v54, %v78_v55 }
  0x2d   :  { %1059 = vmatprep.mubr.bf16.mxu1 %v1499_v61  ;;  %1822 = vmatpush3.bf16.msra.mxu0 %v1986_v63  ;;  %v1539_v61 = vcombine.high %v75_v56, %v79_v57  ;;  %v24_v63 = vld [vmem:[%s2605_s0 + $0x30] sm:$0xff]  ;;  %v77_v56 = vld [vmem:[%s2605_s0 + $0x1d8] sm:$0xff] }
  0x2e   :  { %1886 = vmatpush3.bf16.msra.mxu1 %v1988_v1  ;;  %1823 = vmatprep.subr.bf16.mxu0 %v1989_v10  ;;  %v25_v1 = vld [vmem:[%s2605_s0 + $0x38] sm:$0xff]  ;;  %v1485_v4 = vcombine.high %v20_v62, %v24_v63  ;;  %v1484_v10 = vcombine.low %v20_v62, %v24_v63 }
  0x2f   :  { %1887 = vmatprep.subr.bf16.mxu1 %v1991_v12  ;;  %v1487_v5 = vcombine.high %v21_v0, %v25_v1  ;;  %v81_v57 = vld [vmem:[%s2605_s0 + $0x1f8] sm:$0xff] }
  0x30   :  { %v1542_v63 = vcombine.low %v77_v56, %v81_v57 }
  0x31   :  { %1824 = vmatpush3.bf16.msra.mxu0 %v1990_v11  ;;  %v1486_v11 = vcombine.low %v21_v0, %v25_v1 }
  0x32   :  { %1888 = vmatpush3.bf16.msra.mxu1 %v1992_v13  ;;  %1825 = vmatprep.subr.bf16.mxu0 %v1993_v18 }
  0x33   :  { %963 = vmatmul.mubr.bf16.gmra.mxu0 %v1496_v2  ;;  %1889 = vmatprep.subr.bf16.mxu1 %v1995_v23  ;;  %v1536_v2 = vcombine.low %v74_v54, %v78_v55  ;;  %v48_v23 = vld [vmem:[%s2605_s0 + $0xf0] sm:$0xff] }
  0x34   :  { %1060 = vmatmul.mubr.bf16.gmra.mxu1 %v1498_v6  ;;  %970 = vmatprep.mubr.bf16.mxu0 %v1505_v7  ;;  %v28_v6 = vld [vmem:[%s2605_s0 + $0x50] sm:$0xff] }
  0x35   :  { %1067 = vmatprep.mubr.bf16.mxu1 %v1507_v9  ;;  %1826 = vmatpush3.bf16.msra.mxu0 %v1994_v20  ;;  %v32_v7 = vld [vmem:[%s2605_s0 + $0x70] sm:$0xff]  ;;  %v33_v9 = vld [vmem:[%s2605_s0 + $0x78] sm:$0xff]  ;;  %v1501_v20 = vcombine.high %v36_v14, %v40_v15 }
  0x36   :  { %1890 = vmatpush3.bf16.msra.mxu1 %v1996_v25  ;;  %1827 = vmatprep.subr.bf16.mxu0 %v1997_v28  ;;  %v1493_v12 = vcombine.high %v28_v6, %v32_v7  ;;  %v1495_v13 = vcombine.high %v29_v8, %v33_v9  ;;  %v1492_v18 = vcombine.low %v28_v6, %v32_v7  ;;  %v49_v25 = vld [vmem:[%s2605_s0 + $0xf8] sm:$0xff]  ;;  %v76_v54 = vld [vmem:[%s2605_s0 + $0x1d0] sm:$0xff] }
  0x37   :  { %1891 = vmatprep.subr.bf16.mxu1 %v1999_v32  ;;  %v53_v32 = vld [vmem:[%s2605_s0 + $0x118] sm:$0xff]  ;;  %v80_v55 = vld [vmem:[%s2605_s0 + $0x1f0] sm:$0xff] }
  0x38   :  { %v1540_v62 = vcombine.low %v76_v54, %v80_v55 }
  0x39   :  { %1828 = vmatpush3.bf16.msra.mxu0 %v1998_v31  ;;  %v56_v31 = vld [vmem:[%s2605_s0 + $0x130] sm:$0xff] }
  0x3a   :  { %1892 = vmatpush3.bf16.msra.mxu1 %v2000_v33  ;;  %1829 = vmatprep.subr.bf16.mxu0 %v2001_v38  ;;  %v57_v33 = vld [vmem:[%s2605_s0 + $0x138] sm:$0xff]  ;;  %v60_v38 = vld [vmem:[%s2605_s0 + $0x150] sm:$0xff]  ;;  %v1516_v42 = vcombine.low %v52_v30, %v56_v31 }
  0x3b   :  { %971 = vmatmul.mubr.bf16.gmra.mxu0 %v1504_v19  ;;  %1893 = vmatprep.subr.bf16.mxu1 %v2003_v40  ;;  %v1494_v19 = vcombine.low %v29_v8, %v33_v9  ;;  %v61_v40 = vld [vmem:[%s2605_s0 + $0x158] sm:$0xff] }
  0x3c   :  { %1068 = vmatmul.mubr.bf16.gmra.mxu1 %v1506_v21  ;;  %978 = vmatprep.mubr.bf16.mxu0 %v1513_v22  ;;  %v1503_v21 = vcombine.high %v37_v16, %v41_v17  ;;  %v44_v22 = vld [vmem:[%s2605_s0 + $0xd0] sm:$0xff]  ;;  %v1527_v45 = vcombine.high %v61_v40, %v65_v41 }
  0x3d   :  { %1075 = vmatprep.mubr.bf16.mxu1 %v1515_v24  ;;  %1830 = vmatpush3.bf16.msra.mxu0 %v2002_v39  ;;  %v45_v24 = vld [vmem:[%s2605_s0 + $0xd8] sm:$0xff]  ;;  %v1509_v28 = vcombine.high %v44_v22, %v48_v23  ;;  %v64_v39 = vld [vmem:[%s2605_s0 + $0x170] sm:$0xff] }
  0x3e   :  { %1894 = vmatpush3.bf16.msra.mxu1 %v2004_v43  ;;  %1831 = vmatprep.subr.bf16.mxu0 %v2005_v46  ;;  %v1511_v29 = vcombine.high %v45_v24, %v49_v25  ;;  %v1518_v43 = vcombine.low %v53_v32, %v57_v33  ;;  %v1525_v44 = vcombine.high %v60_v38, %v64_v39  ;;  %v68_v46 = vld [vmem:[%s2605_s0 + $0x190] sm:$0xff] }
  0x3f   :  { %1895 = vmatprep.subr.bf16.mxu1 %v2007_v51  ;;  %v1526_v51 = vcombine.low %v61_v40, %v65_v41 }
  0x41   :  { %1832 = vmatpush3.bf16.msra.mxu0 %v2006_v48  ;;  %v69_v48 = vld [vmem:[%s2605_s0 + $0x198] sm:$0xff] }
  0x42   :  { %1896 = vmatpush3.bf16.msra.mxu1 %v2008_v53 }
  0x43   :  { %979 = vmatmul.mubr.bf16.gmra.mxu0 %v1512_v34  ;;  %v1508_v34 = vcombine.low %v44_v22, %v48_v23 }
  0x44   :  { %1076 = vmatmul.mubr.bf16.gmra.mxu1 %v1514_v35  ;;  %986 = vmatprep.mubr.bf16.mxu0 %v1521_v36  ;;  %v1510_v35 = vcombine.low %v45_v24, %v49_v25  ;;  %v1517_v36 = vcombine.high %v52_v30, %v56_v31 }
  0x45   :  { %1083 = vmatprep.mubr.bf16.mxu1 %v1523_v37  ;;  %v1519_v37 = vcombine.high %v53_v32, %v57_v33 }
  0x4b   :  { %987 = vmatmul.mubr.bf16.gmra.mxu0 %v1520_v47  ;;  %v72_v47 = vld [vmem:[%s2605_s0 + $0x1b0] sm:$0xff] }
  0x4c   :  { %1084 = vmatmul.mubr.bf16.gmra.mxu1 %v1522_v49  ;;  %994 = vmatprep.mubr.bf16.mxu0 %v1529_v50  ;;  %v73_v49 = vld [vmem:[%s2605_s0 + $0x1b8] sm:$0xff]  ;;  %v1524_v50 = vcombine.low %v60_v38, %v64_v39 }
  0x4d   :  { %1091 = vmatprep.mubr.bf16.mxu1 %v1531_v52  ;;  %v1533_v52 = vcombine.high %v68_v46, %v72_v47  ;;  %v1535_v53 = vcombine.high %v69_v48, %v73_v49 }
  0x53   :  { %995 = vmatmul.mubr.bf16.gmra.mxu0 %v1528_v58  ;;  %v1532_v58 = vcombine.low %v68_v46, %v72_v47 }
  0x54   :  { %1092 = vmatmul.mubr.bf16.gmra.mxu1 %v1530_v59  ;;  %1002 = vmatprep.mubr.bf16.mxu0 %v1537_v60  ;;  %v1534_v59 = vcombine.low %v69_v48, %v73_v49  ;;  %v1541_v60 = vcombine.high %v76_v54, %v80_v55 }
  0x55   :  { %1099 = vmatprep.mubr.bf16.mxu1 %v1539_v61  ;;  %v1543_v61 = vcombine.high %v77_v56, %v81_v57 }
  0x5b   :  { %1003 = vmatmul.mubr.bf16.gmra.mxu0 %v1536_v2 }
  0x5c   :  { %1100 = vmatmul.mubr.bf16.gmra.mxu1 %v1538_v3  ;;  %1140 = vmatprep.mubr.bf16.mxu0 %v1485_v4 }
  0x5d   :  { %1237 = vmatprep.mubr.bf16.mxu1 %v1487_v5 }
  0x63   :  { %1141 = vmatmul.mubr.bf16.vlgmr.msra.gmra.mxu0 %v1484_v10 }
  0x64   :  { %1238 = vmatmul.mubr.bf16.vlgmr.msra.gmra.mxu1 %v1486_v11  ;;  %1148 = vmatprep.mubr.bf16.mxu0 %v1493_v12 }
  0x65   :  { %1245 = vmatprep.mubr.bf16.mxu1 %v1495_v13 }
  0x6b   :  { %1149 = vmatmul.mubr.bf16.gmra.mxu0 %v1492_v18 }
  0x6c   :  { %1246 = vmatmul.mubr.bf16.gmra.mxu1 %v1494_v19  ;;  %1156 = vmatprep.mubr.bf16.mxu0 %v1501_v20 }
  0x6d   :  { %1253 = vmatprep.mubr.bf16.mxu1 %v1503_v21 }
  0x73   :  { %1157 = vmatmul.mubr.bf16.gmra.mxu0 %v1500_v26 }
  0x74   :  { %1254 = vmatmul.mubr.bf16.gmra.mxu1 %v1502_v27  ;;  %1164 = vmatprep.mubr.bf16.mxu0 %v1509_v28 }
  0x75   :  { %1261 = vmatprep.mubr.bf16.mxu1 %v1511_v29 }
  0x7b   :  { %1165 = vmatmul.mubr.bf16.gmra.mxu0 %v1508_v34 }
  0x7c   :  { %1262 = vmatmul.mubr.bf16.gmra.mxu1 %v1510_v35  ;;  %1172 = vmatprep.mubr.bf16.mxu0 %v1517_v36 }
  0x7d   :  { %1269 = vmatprep.mubr.bf16.mxu1 %v1519_v37 }
  0x83   :  { %1173 = vmatmul.mubr.bf16.gmra.mxu0 %v1516_v42 }
  0x84   :  { %1270 = vmatmul.mubr.bf16.gmra.mxu1 %v1518_v43  ;;  %1180 = vmatprep.mubr.bf16.mxu0 %v1525_v44 }
  0x85   :  { %1277 = vmatprep.mubr.bf16.mxu1 %v1527_v45 }
  0x8b   :  { %1181 = vmatmul.mubr.bf16.gmra.mxu0 %v1524_v50 }
  0x8c   :  { %1278 = vmatmul.mubr.bf16.gmra.mxu1 %v1526_v51  ;;  %1188 = vmatprep.mubr.bf16.mxu0 %v1533_v52 }
  0x8d   :  { %1285 = vmatprep.mubr.bf16.mxu1 %v1535_v53 }
  0x93   :  { %1189 = vmatmul.mubr.bf16.gmra.mxu0 %v1532_v58 }
  0x94   :  { %1286 = vmatmul.mubr.bf16.gmra.mxu1 %v1534_v59  ;;  %1196 = vmatprep.mubr.bf16.mxu0 %v1541_v60 }
  0x95   :  { %1293 = vmatprep.mubr.bf16.mxu1 %v1543_v61 }
  0x9b   :  { %1197 = vmatmul.mubr.bf16.gmra.mxu0 %v1540_v62 }
  0x9c   :  { %1294 = vmatmul.mubr.bf16.gmra.mxu1 %v1542_v63 }
  0xe3   :  { %v1705_v0 = vpop.f32.mrf.mxu0 }
  0xe4   :  { %v1769_v1 = vpop.f32.mrf.mxu1 }
  0xe5   :  { %v1706_v2 = vpop.f32.mrf.mxu0 }
  0xe6   :  { %v1707_v3 = vadd.f32 %v1706_v2, %v1705_v0  ;;  %v1770_v4 = vpop.f32.mrf.mxu1 }
  0xe7   :  { %v1771_v5 = vadd.f32 %v1770_v4, %v1769_v1  ;;  %v2418_v6 = vpop.f32.mrf.mxu0 }
  0xe8   :  { %v2420_v7 = vpop.f32.mrf.mxu1 }
  0xe9   :  { %v2422_v8 = vadd.f32 %v1771_v5, %v1707_v3  ;;  %v2424_v9 = vpop.f32.mrf.mxu0 }
  0xea   :  { %v2426_v10 = vpop.f32.mrf.mxu1 }
  0xeb   :  { %v1711_v11 = vpop.f32.mrf.mxu0 }
  0xec   :  { %v1775_v12 = vpop.f32.mrf.mxu1 }
  0xed   :  { %v1712_v13 = vpop.f32.mrf.mxu0 }
  0xee   :  { %v1713_v14 = vadd.f32 %v1712_v13, %v1711_v11  ;;  %v1776_v15 = vpop.f32.mrf.mxu1 }
  0xef   :  { %v1777_v16 = vadd.f32 %v1776_v15, %v1775_v12  ;;  %v2428_v17 = vpop.f32.mrf.mxu0 }
  0xf0   :  { %v2430_v18 = vpop.f32.mrf.mxu1 }
  0xf1   :  { %v2432_v19 = vadd.f32 %v1777_v16, %v1713_v14  ;;  %v2434_v20 = vpop.f32.mrf.mxu0 }
  0xf2   :  { %v2436_v21 = vpop.f32.mrf.mxu1 }
  0xf3   :  { %v1717_v22 = vpop.f32.mrf.mxu0 }
  0xf4   :  { %v1781_v23 = vpop.f32.mrf.mxu1 }
  0xf5   :  { %v1718_v24 = vpop.f32.mrf.mxu0 }
  0xf6   :  { %v1719_v25 = vadd.f32 %v1718_v24, %v1717_v22  ;;  %v1782_v26 = vpop.f32.mrf.mxu1 }
  0xf7   :  { %v1783_v27 = vadd.f32 %v1782_v26, %v1781_v23  ;;  %v2438_v28 = vpop.f32.mrf.mxu0 }
  0xf8   :  { %v2440_v29 = vpop.f32.mrf.mxu1 }
  0xf9   :  { %v2442_v30 = vadd.f32 %v1783_v27, %v1719_v25  ;;  %v2444_v31 = vpop.f32.mrf.mxu0 }
  0xfa   :  { %v2446_v32 = vpop.f32.mrf.mxu1 }
  0xfb   :  { %v1723_v33 = vpop.f32.mrf.mxu0 }
  0xfc   :  { %v1787_v34 = vpop.f32.mrf.mxu1 }
  0xfd   :  { %v1724_v35 = vpop.f32.mrf.mxu0 }
  0xfe   :  { %v1725_v36 = vadd.f32 %v1724_v35, %v1723_v33  ;;  %v1788_v37 = vpop.f32.mrf.mxu1 }
  0xff   :  { %v1789_v38 = vadd.f32 %v1788_v37, %v1787_v34  ;;  %v2448_v39 = vpop.f32.mrf.mxu0 }
 0x100   :  { %v2450_v40 = vpop.f32.mrf.mxu1 }
 0x101   :  { %v2452_v41 = vadd.f32 %v1789_v38, %v1725_v36  ;;  %v2454_v42 = vpop.f32.mrf.mxu0 }
 0x102   :  { %v2456_v43 = vpop.f32.mrf.mxu1 }
 0x103   :  { %v1729_v44 = vpop.f32.mrf.mxu0 }
 0x104   :  { %v1793_v45 = vpop.f32.mrf.mxu1 }
 0x105   :  { %v1730_v46 = vpop.f32.mrf.mxu0 }
 0x106   :  { %v1731_v47 = vadd.f32 %v1730_v46, %v1729_v44  ;;  %v1794_v48 = vpop.f32.mrf.mxu1 }
 0x107   :  { %v1795_v49 = vadd.f32 %v1794_v48, %v1793_v45  ;;  %v2458_v50 = vpop.f32.mrf.mxu0  ;;  %v1774_v48 = vadd.f32 %v2426_v10, %v2420_v7  ;;  %v2511_v7 = vld [vmem:[%s2607_s3] ss:$0 sm:$0xff] }
 0x108   :  { %v2460_v51 = vpop.f32.mrf.mxu1 }
 0x109   :  { %v2462_v52 = vadd.f32 %v1795_v49, %v1731_v47  ;;  %v2464_v53 = vpop.f32.mrf.mxu0  ;;  %v1710_v47 = vadd.f32 %v2424_v9, %v2418_v6 }
 0x10a   :  { %v2466_v54 = vpop.f32.mrf.mxu1 }
 0x10b   :  { %v1735_v55 = vpop.f32.mrf.mxu0 }
 0x10c   :  { %v1799_v56 = vpop.f32.mrf.mxu1 }
 0x10d   :  { %v1736_v57 = vpop.f32.mrf.mxu0 }
 0x10e   :  { %v1737_v58 = vadd.f32 %v1736_v57, %v1735_v55  ;;  %v1800_v59 = vpop.f32.mrf.mxu1 }
 0x10f   :  { %v1801_v60 = vadd.f32 %v1800_v59, %v1799_v56  ;;  %v2468_v61 = vpop.f32.mrf.mxu0 }
 0x110   :  { %v2470_v62 = vpop.f32.mrf.mxu1 }
 0x111   :  { %v2472_v63 = vadd.f32 %v1801_v60, %v1737_v58  ;;  %v2474_v0 = vpop.f32.mrf.mxu0  ;;  %v2506_v60 = vld [vmem:[%s2606_s2] ss:$0 sm:$0xff] }
 0x112   :  { %v2476_v1 = vpop.f32.mrf.mxu1 }
 0x113   :  { %v1741_v2 = vpop.f32.mrf.mxu0 }
 0x114   :  { %v1805_v3 = vpop.f32.mrf.mxu1 }
 0x115   :  { %v1742_v4 = vpop.f32.mrf.mxu0 }
 0x116   :  { %v1743_v5 = vadd.f32 %v1742_v4, %v1741_v2  ;;  %v1806_v11 = vpop.f32.mrf.mxu1 }
 0x117   :  { %v1807_v12 = vadd.f32 %v1806_v11, %v1805_v3  ;;  %v2478_v13 = vpop.f32.mrf.mxu0  ;;  %v1049_v3 = vadd.f32 %v1774_v48, %v1710_v47 }
 0x118   :  { %v2480_v14 = vpop.f32.mrf.mxu1 }
 0x119   :  { %v2482_v15 = vadd.f32 %v1807_v12, %v1743_v5  ;;  %v2484_v16 = vpop.f32.mrf.mxu0 }
 0x11a   :  { %v2486_v22 = vpop.f32.mrf.mxu1 }
 0x11b   :  { %v1747_v23 = vpop.f32.mrf.mxu0 }
 0x11c   :  { %v1811_v24 = vpop.f32.mrf.mxu1 }
 0x11d   :  { %v1748_v25 = vpop.f32.mrf.mxu0 }
 0x11e   :  { %v1749_v26 = vadd.f32 %v1748_v25, %v1747_v23  ;;  %v1812_v27 = vpop.f32.mrf.mxu1  ;;  %v1716_v23 = vadd.f32 %v2434_v20, %v2428_v17 }
 0x11f   :  { %v1813_v33 = vadd.f32 %v1812_v27, %v1811_v24  ;;  %v2488_v34 = vpop.f32.mrf.mxu0  ;;  %v1780_v24 = vadd.f32 %v2436_v21, %v2430_v18 }
 0x120   :  { %v2490_v35 = vpop.f32.mrf.mxu1 }
 0x121   :  { %v2492_v36 = vadd.f32 %v1813_v33, %v1749_v26  ;;  %v2494_v37 = vpop.f32.mrf.mxu0 }
 0x122   :  { %v2496_v38 = vpop.f32.mrf.mxu1 }
 0x123   :  { %v1833_v44 = vpop.f32.mrf.mxu0 }
 0x124   :  { %v1897_v45 = vpop.f32.mrf.mxu1 }
 0x125   :  { %v1834_v46 = vpop.f32.mrf.mxu0 }
 0x126   :  { %v1835_v49 = vadd.f32 %v1834_v46, %v1833_v44  ;;  %v1898_v55 = vpop.f32.mrf.mxu1 }
 0x127   :  { %v1836_v56 = vpop.f32.mrf.mxu0  ;;  %v1899_v58 = vadd.f32 %v1898_v55, %v1897_v45  ;;  %v1057_v55 = vadd.f32 %v1780_v24, %v1716_v23 }
 0x128   :  { %v1143_v57 = vadd.f32 %v1835_v49, %v2422_v8  ;;  %v1900_v59 = vpop.f32.mrf.mxu1 }
 0x129   :  { %v1837_v2 = vpop.f32.mrf.mxu0 }
 0x12a   :  { %v1240_v4 = vadd.f32 %v1899_v58, %v1143_v57  ;;  %v1838_v5 = vadd.f32 %v1837_v2, %v1836_v56  ;;  %v1901_v6 = vpop.f32.mrf.mxu1 }
 0x12b   :  { %v1839_v9 = vpop.f32.mrf.mxu0  ;;  %v1902_v11 = vadd.f32 %v1901_v6, %v1900_v59  ;;  %v1786_v6 = vadd.f32 %v2446_v32, %v2440_v29 }
 0x12c   :  { %v1309_v8 = vmul.f32 %v2506_v60, %v1240_v4  ;;  %v1146_v10 = vadd.f32 %v1838_v5, %v1049_v3  ;;  %v1903_v12 = vpop.f32.mrf.mxu1 }
 0x12d   :  { %v1840_v25 = vpop.f32.mrf.mxu0 }
 0x12e   :  { %v1332_v26 = vadd.f32 %v2511_v7, %v1309_v8  ;;  %v1243_v27 = vadd.f32 %v1902_v11, %v1146_v10  ;;  %v1841_v33 = vadd.f32 %v1840_v25, %v1839_v9  ;;  %v1904_v44 = vpop.f32.mrf.mxu1 }
 0x12f   :  { %v1842_v45 = vpop.f32.mrf.mxu0  ;;  %v1905_v48 = vadd.f32 %v1904_v44, %v1903_v12 }
 0x130   :  { %v1310_v46 = vmul.f32 %v2506_v60, %v1243_v27  ;;  %v1151_v47 = vadd.f32 %v1841_v33, %v2432_v19  ;;  %v1906_v49 = vpop.f32.mrf.mxu1  ;;  %v1364_v56 = vmul.f32 0.2, %v1332_v26  ;;  %vm1348_vm0 = vcmp.ge.f32.partialorder %v1332_v26, 0.0 }
 0x131   :  { %v1843_v57 = vpop.f32.mrf.mxu0  ;;  %v1722_v19 = vadd.f32 %v2444_v31, %v2438_v28 }
 0x132   :  { %v1333_v17 = vadd.f32 %v2511_v7, %v1310_v46  ;;  %v1248_v18 = vadd.f32 %v1905_v48, %v1151_v47  ;;  %v1844_v20 = vadd.f32 %v1843_v57, %v1842_v45  ;;  %v1907_v21 = vpop.f32.mrf.mxu1  ;;  %v1380_v9 = vsel %vm1348_vm0, %v1332_v26, %v1364_v56 }
 0x133   :  { %v1908_v58 = vadd.f32 %v1907_v21, %v1906_v49  ;;  %v1845_v59 = vpop.f32.mrf.mxu0  ;;  %v1065_v28 = vadd.f32 %v1786_v6, %v1722_v19 }
 0x134   :  { %vm1349_vm1 = vcmp.ge.f32.partialorder %v1333_v17, 0.0  ;;  %v1365_v2 = vmul.f32 0.2, %v1333_v17  ;;  %v1311_v3 = vmul.f32 %v2506_v60, %v1248_v18  ;;  %v1154_v4 = vadd.f32 %v1844_v20, %v1057_v55  ;;  %v1909_v5 = vpop.f32.mrf.mxu1 }
 0x135   :  { %v1846_v8 = vpop.f32.mrf.mxu0  ;;  %v1728_v18 = vadd.f32 %v2454_v42, %v2448_v39  ;;  %v1792_v20 = vadd.f32 %v2456_v43, %v2450_v40 }
 0x136   :  { %v1381_v10 = vsel %vm1349_vm1, %v1333_v17, %v1365_v2  ;;  %v1334_v11 = vadd.f32 %v2511_v7, %v1311_v3  ;;  %v1251_v12 = vadd.f32 %v1908_v58, %v1154_v4  ;;  %v1847_v23 = vadd.f32 %v1846_v8, %v1845_v59  ;;  %v1910_v24 = vpop.f32.mrf.mxu1 }
 0x137   :  { %v1645_v25 = vpack.c.bf16 %v1381_v10, %v1380_v9  ;;  %v1848_v27 = vpop.f32.mrf.mxu0  ;;  %v1911_v45 = vadd.f32 %v1910_v24, %v1909_v5  ;;  %v1073_v39 = vadd.f32 %v1792_v20, %v1728_v18 }
 0x138   :  { %v1312_v33 = vmul.f32 %v2506_v60, %v1251_v12  ;;  %v1159_v44 = vadd.f32 %v1847_v23, %v2442_v30  ;;  %v1912_v46 = vpop.f32.mrf.mxu1  ;;  %v1366_v29 = vmul.f32 0.2, %v1334_v11  ;;  %vm1350_vm2 = vcmp.ge.f32.partialorder %v1334_v11, 0.0 }
 0x139   :  { %1646 = vst [vmem:[%s2608_s4] sm:$0xff] %v1645_v25   ;;  %v1849_v31 = vpop.f32.mrf.mxu0 }
 0x13a   :  { %v1335_v32 = vadd.f32 %v2511_v7, %v1312_v33  ;;  %v1256_v26 = vadd.f32 %v1911_v45, %v1159_v44  ;;  %v1850_v47 = vadd.f32 %v1849_v31, %v1848_v27  ;;  %v1913_v48 = vpop.f32.mrf.mxu1  ;;  %v1382_v21 = vsel %vm1350_vm2, %v1334_v11, %v1366_v29 }
 0x13b   :  { %v1914_v49 = vadd.f32 %v1913_v48, %v1912_v46  ;;  %v1851_v55 = vpop.f32.mrf.mxu0  ;;  %v1734_v46 = vadd.f32 %v2464_v53, %v2458_v50 }
 0x13c   :  { %vm1351_vm3 = vcmp.ge.f32.partialorder %v1335_v32, 0.0  ;;  %v1367_v56 = vmul.f32 0.2, %v1335_v32  ;;  %v1313_v30 = vmul.f32 %v2506_v60, %v1256_v26  ;;  %v1162_v57 = vadd.f32 %v1850_v47, %v1065_v28  ;;  %v1915_v17 = vpop.f32.mrf.mxu1 }
 0x13d   :  { %v1852_v58 = vpop.f32.mrf.mxu0  ;;  %v1798_v28 = vadd.f32 %v2466_v54, %v2460_v51 }
 0x13e   :  { %v1383_v59 = vsel %vm1351_vm3, %v1335_v32, %v1367_v56  ;;  %v1336_v2 = vadd.f32 %v2511_v7, %v1313_v30  ;;  %v1259_v3 = vadd.f32 %v1914_v49, %v1162_v57  ;;  %v1853_v4 = vadd.f32 %v1852_v58, %v1851_v55  ;;  %v1916_v5 = vpop.f32.mrf.mxu1 }
 0x13f   :  { %v1650_v19 = vpack.c.bf16 %v1383_v59, %v1382_v21  ;;  %v1854_v6 = vpop.f32.mrf.mxu0  ;;  %v1917_v10 = vadd.f32 %v1916_v5, %v1915_v17  ;;  %v1081_v50 = vadd.f32 %v1798_v28, %v1734_v46 }
 0x140   :  { %v1314_v9 = vmul.f32 %v2506_v60, %v1259_v3  ;;  %v1167_v8 = vadd.f32 %v1853_v4, %v2452_v41  ;;  %v1918_v12 = vpop.f32.mrf.mxu1  ;;  %v1368_v40 = vmul.f32 0.2, %v1336_v2  ;;  %vm1352_vm4 = vcmp.ge.f32.partialorder %v1336_v2, 0.0 }
 0x141   :  { %1682 = vst [vmem:[%s2608_s4 + $0x8] sm:$0xff] %v1650_v19   ;;  %v1855_v42 = vpop.f32.mrf.mxu0  ;;  %v1740_v19 = vadd.f32 %v2474_v0, %v2468_v61 }
 0x142   :  { %v1337_v43 = vadd.f32 %v2511_v7, %v1314_v9  ;;  %v1264_v11 = vadd.f32 %v1917_v10, %v1167_v8  ;;  %v1856_v23 = vadd.f32 %v1855_v42, %v1854_v6  ;;  %v1919_v24 = vpop.f32.mrf.mxu1  ;;  %v1384_v29 = vsel %vm1352_vm4, %v1336_v2, %v1368_v40 }
 0x143   :  { %v1920_v25 = vadd.f32 %v1919_v24, %v1918_v12  ;;  %v1857_v27 = vpop.f32.mrf.mxu0  ;;  %v1804_v6 = vadd.f32 %v2476_v1, %v2470_v62 }
 0x144   :  { %vm1353_vm5 = vcmp.ge.f32.partialorder %v1337_v43, 0.0  ;;  %v1369_v33 = vmul.f32 0.2, %v1337_v43  ;;  %v1315_v41 = vmul.f32 %v2506_v60, %v1264_v11  ;;  %v1170_v44 = vadd.f32 %v1856_v23, %v1073_v39  ;;  %v1921_v45 = vpop.f32.mrf.mxu1 }
 0x145   :  { %v1858_v31 = vpop.f32.mrf.mxu0  ;;  %v1089_v61 = vadd.f32 %v1804_v6, %v1740_v19  ;;  %v1816_v19 = vadd.f32 %v2496_v38, %v2490_v35 }
 0x146   :  { %v1385_v32 = vsel %vm1353_vm5, %v1337_v43, %v1369_v33  ;;  %v1338_v26 = vadd.f32 %v2511_v7, %v1315_v41  ;;  %v1267_v47 = vadd.f32 %v1920_v25, %v1170_v44  ;;  %v1859_v48 = vadd.f32 %v1858_v31, %v1857_v27  ;;  %v1922_v49 = vpop.f32.mrf.mxu1 }
 0x147   :  { %v1655_v55 = vpack.c.bf16 %v1385_v32, %v1384_v29  ;;  %v1860_v56 = vpop.f32.mrf.mxu0  ;;  %v1923_v17 = vadd.f32 %v1922_v49, %v1921_v45  ;;  %v1746_v32 = vadd.f32 %v2484_v16, %v2478_v13 }
 0x148   :  { %v1316_v30 = vmul.f32 %v2506_v60, %v1267_v47  ;;  %v1175_v57 = vadd.f32 %v1859_v48, %v2462_v52  ;;  %v1924_v18 = vpop.f32.mrf.mxu1  ;;  %v1370_v51 = vmul.f32 0.2, %v1338_v26  ;;  %vm1354_vm6 = vcmp.ge.f32.partialorder %v1338_v26, 0.0 }
 0x149   :  { %1683 = vst [vmem:[%s2608_s4 + $0x10] sm:$0xff] %v1655_v55   ;;  %v1861_v53 = vpop.f32.mrf.mxu0 }
 0x14a   :  { %v1339_v54 = vadd.f32 %v2511_v7, %v1316_v30  ;;  %v1272_v20 = vadd.f32 %v1923_v17, %v1175_v57  ;;  %v1862_v21 = vadd.f32 %v1861_v53, %v1860_v56  ;;  %v1925_v58 = vpop.f32.mrf.mxu1  ;;  %v1386_v9 = vsel %vm1354_vm6, %v1338_v26, %v1370_v51 }
 0x14b   :  { %v1926_v59 = vadd.f32 %v1925_v58, %v1924_v18  ;;  %v1863_v2 = vpop.f32.mrf.mxu0  ;;  %v1810_v26 = vadd.f32 %v2486_v22, %v2480_v14 }
 0x14c   :  { %vm1355_vm7 = vcmp.ge.f32.partialorder %v1339_v54, 0.0  ;;  %v1371_v3 = vmul.f32 0.2, %v1339_v54  ;;  %v1317_v52 = vmul.f32 %v2506_v60, %v1272_v20  ;;  %v1178_v4 = vadd.f32 %v1862_v21, %v1081_v50  ;;  %v1927_v5 = vpop.f32.mrf.mxu1 }
 0x14d   :  { %v1864_v8 = vpop.f32.mrf.mxu0  ;;  %v1097_v13 = vadd.f32 %v1810_v26, %v1746_v32 }
 0x14e   :  { %v1387_v10 = vsel %vm1355_vm7, %v1339_v54, %v1371_v3  ;;  %v1340_v12 = vadd.f32 %v2511_v7, %v1317_v52  ;;  %v1275_v39 = vadd.f32 %v1926_v59, %v1178_v4  ;;  %v1865_v40 = vadd.f32 %v1864_v8, %v1863_v2  ;;  %v1928_v42 = vpop.f32.mrf.mxu1 }
 0x14f   :  { %v1660_v43 = vpack.c.bf16 %v1387_v10, %v1386_v9  ;;  %v1866_v11 = vpop.f32.mrf.mxu0  ;;  %v1929_v25 = vadd.f32 %v1928_v42, %v1927_v5  ;;  %v1752_v5 = vadd.f32 %v2494_v37, %v2488_v34 }
 0x150   :  { %v1318_v23 = vmul.f32 %v2506_v60, %v1275_v39  ;;  %v1183_v24 = vadd.f32 %v1865_v40, %v2472_v63  ;;  %v1930_v27 = vpop.f32.mrf.mxu1  ;;  %v1372_v62 = vmul.f32 0.2, %v1340_v12  ;;  %vm1356_vm8 = vcmp.ge.f32.partialorder %v1340_v12, 0.0 }
 0x151   :  { %1684 = vst [vmem:[%s2608_s4 + $0x18] sm:$0xff] %v1660_v43   ;;  %v1867_v0 = vpop.f32.mrf.mxu0  ;;  %v1105_v34 = vadd.f32 %v1816_v19, %v1752_v5 }
 0x152   :  { %v1341_v1 = vadd.f32 %v2511_v7, %v1318_v23  ;;  %v1280_v33 = vadd.f32 %v1929_v25, %v1183_v24  ;;  %v1868_v41 = vadd.f32 %v1867_v0, %v1866_v11  ;;  %v1931_v44 = vpop.f32.mrf.mxu1  ;;  %v1388_v47 = vsel %vm1356_vm8, %v1340_v12, %v1372_v62 }
 0x153   :  { %v1932_v45 = vadd.f32 %v1931_v44, %v1930_v27  ;;  %v1869_v46 = vpop.f32.mrf.mxu0 }
 0x154   :  { %vm1357_vm9 = vcmp.ge.f32.partialorder %v1341_v1, 0.0  ;;  %v1373_v28 = vmul.f32 0.2, %v1341_v1  ;;  %v1319_v63 = vmul.f32 %v2506_v60, %v1280_v33  ;;  %v1186_v29 = vadd.f32 %v1868_v41, %v1089_v61  ;;  %v1933_v31 = vpop.f32.mrf.mxu1 }
 0x155   :  { %v1870_v48 = vpop.f32.mrf.mxu0 }
 0x156   :  { %v1389_v49 = vsel %vm1357_vm9, %v1341_v1, %v1373_v28  ;;  %v1342_v55 = vadd.f32 %v2511_v7, %v1319_v63  ;;  %v1283_v56 = vadd.f32 %v1932_v45, %v1186_v29  ;;  %v1871_v30 = vadd.f32 %v1870_v48, %v1869_v46  ;;  %v1934_v57 = vpop.f32.mrf.mxu1 }
 0x157   :  { %v1665_v17 = vpack.c.bf16 %v1389_v49, %v1388_v47  ;;  %v1872_v18 = vpop.f32.mrf.mxu0  ;;  %v1935_v53 = vadd.f32 %v1934_v57, %v1933_v31 }
 0x158   :  { %v1320_v50 = vmul.f32 %v2506_v60, %v1283_v56  ;;  %v1191_v51 = vadd.f32 %v1871_v30, %v2482_v15  ;;  %v1936_v54 = vpop.f32.mrf.mxu1  ;;  %v1374_v14 = vmul.f32 0.2, %v1342_v55  ;;  %vm1358_vm10 = vcmp.ge.f32.partialorder %v1342_v55, 0.0 }
 0x159   :  { %1685 = vst [vmem:[%s2608_s4 + $0x20] sm:$0xff] %v1665_v17   ;;  %v1873_v16 = vpop.f32.mrf.mxu0 }
 0x15a   :  { %v1343_v22 = vadd.f32 %v2511_v7, %v1320_v50  ;;  %v1288_v20 = vadd.f32 %v1935_v53, %v1191_v51  ;;  %v1874_v21 = vadd.f32 %v1873_v16, %v1872_v18  ;;  %v1937_v58 = vpop.f32.mrf.mxu1  ;;  %v1390_v6 = vsel %vm1358_vm10, %v1342_v55, %v1374_v14 }
 0x15b   :  { %v1938_v59 = vadd.f32 %v1937_v58, %v1936_v54  ;;  %v1875_v2 = vpop.f32.mrf.mxu0 }
 0x15c   :  { %vm1359_vm11 = vcmp.ge.f32.partialorder %v1343_v22, 0.0  ;;  %v1375_v3 = vmul.f32 0.2, %v1343_v22  ;;  %v1321_v15 = vmul.f32 %v2506_v60, %v1288_v20  ;;  %v1194_v52 = vadd.f32 %v1874_v21, %v1097_v13  ;;  %v1939_v4 = vpop.f32.mrf.mxu1 }
 0x15d   :  { %v1876_v9 = vpop.f32.mrf.mxu0 }
 0x15e   :  { %v1391_v8 = vsel %vm1359_vm11, %v1343_v22, %v1375_v3  ;;  %v1344_v10 = vadd.f32 %v2511_v7, %v1321_v15  ;;  %v1291_v12 = vadd.f32 %v1938_v59, %v1194_v52  ;;  %v1877_v39 = vadd.f32 %v1876_v9, %v1875_v2  ;;  %v1940_v40 = vpop.f32.mrf.mxu1 }
 0x15f   :  { %v1670_v42 = vpack.c.bf16 %v1391_v8, %v1390_v6  ;;  %v1878_v43 = vpop.f32.mrf.mxu0  ;;  %v1941_v24 = vadd.f32 %v1940_v40, %v1939_v4 }
 0x160   :  { %v1322_v11 = vmul.f32 %v2506_v60, %v1291_v12  ;;  %v1199_v23 = vadd.f32 %v1877_v39, %v2492_v36  ;;  %v1942_v25 = vpop.f32.mrf.mxu1  ;;  %v1376_v37 = vmul.f32 0.2, %v1344_v10  ;;  %vm1360_vm12 = vcmp.ge.f32.partialorder %v1344_v10, 0.0 }
 0x161   :  { %1686 = vst [vmem:[%s2608_s4 + $0x28] sm:$0xff] %v1670_v42   ;;  %v1879_v35 = vpop.f32.mrf.mxu0 }
 0x162   :  { %v1345_v38 = vadd.f32 %v2511_v7, %v1322_v11  ;;  %v1296_v27 = vadd.f32 %v1941_v24, %v1199_v23  ;;  %v1880_v61 = vadd.f32 %v1879_v35, %v1878_v43  ;;  %v1943_v62 = vpop.f32.mrf.mxu1  ;;  %v1392_v41 = vsel %vm1360_vm12, %v1344_v10, %v1376_v37 }
 0x163   :  { %v1944_v0 = vadd.f32 %v1943_v62, %v1942_v25 }
 0x164   :  { %vm1361_vm13 = vcmp.ge.f32.partialorder %v1345_v38, 0.0  ;;  %v1377_v1 = vmul.f32 0.2, %v1345_v38  ;;  %v1323_v36 = vmul.f32 %v2506_v60, %v1296_v27  ;;  %v1202_v33 = vadd.f32 %v1880_v61, %v1105_v34 }
 0x166   :  { %v1393_v44 = vsel %vm1361_vm13, %v1345_v38, %v1377_v1  ;;  %v1346_v45 = vadd.f32 %v2511_v7, %v1323_v36  ;;  %v1299_v46 = vadd.f32 %v1944_v0, %v1202_v33 }
 0x167   :  { %v1675_v28 = vpack.c.bf16 %v1393_v44, %v1392_v41 }
 0x168   :  { %v1324_v63 = vmul.f32 %v2506_v60, %v1299_v46  ;;  %v1378_v29 = vmul.f32 0.2, %v1346_v45  ;;  %vm1362_vm14 = vcmp.ge.f32.partialorder %v1346_v45, 0.0 }
 0x169   :  { %1687 = vst [vmem:[%s2608_s4 + $0x30] sm:$0xff] %v1675_v28  }
 0x16a   :  { %v1347_v31 = vadd.f32 %v2511_v7, %v1324_v63  ;;  %v1394_v26 = vsel %vm1362_vm14, %v1346_v45, %v1378_v29 }
 0x16c   :  { %vm1363_vm15 = vcmp.ge.f32.partialorder %v1347_v31, 0.0  ;;  %v1379_v32 = vmul.f32 0.2, %v1347_v31 }
 0x16e   :  { %v1395_v47 = vsel %vm1363_vm15, %v1347_v31, %v1379_v32 }
 0x16f   :  { %v1680_v48 = vpack.c.bf16 %v1395_v47, %v1394_v26 }
 0x171   :  { %1688 = vst [vmem:[%s2608_s4 + $0x38] sm:$0xff] %v1680_v48  }

// kernel: encoder_forward.5
= control target key start
LH: loop header
LB: loop body
LE: loop exit
PB: predicated region body
PF: predicated region fallthrough
CT: control target
= control target key end

     0   :  { %s5560_s17 = smov 0   ;;  %s7085_s0 = inlined_call_operand.vmem [shape: bf16[16,8,2048], index: 0, kind: input, shape index: {}]   ;;  %s7086_s1 = inlined_call_operand.vmem [shape: bf16[2048,256], index: 1, kind: input, shape index: {}]   ;;  %s7087_s2 = inlined_call_operand.vmem [shape: f32[1,256], index: 2, kind: input, shape index: {}]   ;;  %s7088_s3 = inlined_call_operand.vmem [shape: f32[1,256], index: 3, kind: input, shape index: {}]   ;;  %s7089_s4 = inlined_call_operand.vmem [shape: bf16[16,256,256], index: 4, kind: input, shape index: {}]   ;;  %s7090_s5 = inlined_call_operand.vmem [shape: f32[1,256], index: 5, kind: input, shape index: {}]   ;;  %s7091_s6 = inlined_call_operand.vmem [shape: f32[1,256], index: 6, kind: input, shape index: {}]   ;;  %s7092_s7 = inlined_call_operand.vmem [shape: bf16[256,1024], index: 7, kind: input, shape index: {}]   ;;  %s7093_s8 = inlined_call_operand.vmem [shape: f32[1,1024], index: 8, kind: input, shape index: {}]   ;;  %s7094_s9 = inlined_call_operand.vmem [shape: bf16[1024,64], index: 9, kind: input, shape index: {}]   ;;  %s7095_s10 = inlined_call_operand.vmem [shape: f32[1,64], index: 10, kind: input, shape index: {}]   ;;  %s7096_s11 = inlined_call_operand.vmem [shape: f32[8,64], index: 11, kind: output, shape index: {}]  }
   0x1 LB: > { %s5566_s18 = sadd.s32 4294967295, %s5497_s17   ;;  %p4374_p0 = scmp.ge.s32.totalorder %s5497_s17, 1  ;;  %s5497_s17 = sphi %s5560_s17, %s21_s17  }
   0x2   : > { %p342_p1 = scmp.lt.s32.totalorder %s5497_s17, 17 }
   0x4   : > { %p343_p2 = pnand %p4374_p0, %p342_p1 }
   0x5   : > { %p382_p3 = scmp.lt.s32.totalorder (!%p343_p2), %s5566_s18, 15  ;;  %p4379_p4 = scmp.ne.s32.totalorder (!%p343_p2), %s5566_s18, 0 }
   0x6   : > { %346 = sbr.rel (%p343_p2) target bundleno = 1221 (0x4c5), region = 64 }
   0xb   : > { %s383_s19 = scalar_select %p382_p3, %s5566_s18, 15 }
   0xc   : > { %396 = sbr.rel (%p4379_p4) target bundleno = 19 (0x13), region = 68 }
   0xd   : > { %s4880_s20 = sshll.u32 %s383_s19, 6  ;;  %s4881_s21 = sshll.u32 %s383_s19, 8 }
   0xe   : > { %s5575_s24 = scalar_lea.vmem %s7085_s0, %s4880_s20  ;;  %s5580_s27 = scalar_lea.vmem %s7089_s4, %s4881_s21 }
  0x11   : > { %v5499_v0 = vmov 0.0  }
  0x12   : > { %397 = vst [vmem:[#allocation2] sm:$0xff] %v5499_v0  ;;  %398 = vst [vmem:[#allocation2 + $0x8] sm:$0xff] %v5499_v0 }
  0x13 PF: > { %v4979_v1 = vld [vmem:[%s7086_s1 + $0x74] ss:$8 sps:$4 sm:$0xff]   ;;  %v4983_v3 = vld [vmem:[%s7086_s1 + $0x70] ss:$8 sps:$4 sm:$0xff]   ;;  %v4985_v5 = vld [vmem:[%s7086_s1 + $0x64] ss:$8 sps:$4 sm:$0xff]  }
  0x14   : > { %v4981_v2 = vld [vmem:[%s7086_s1 + $0x174] ss:$8 sps:$4 sm:$0xff]   ;;  %1999 = vmatprep.subr.bf16.mxu0 %v4979_v1  ;;  %v4984_v4 = vld [vmem:[%s7086_s1 + $0x170] ss:$8 sps:$4 sm:$0xff]   ;;  %v4987_v6 = vld [vmem:[%s7086_s1 + $0x164] ss:$8 sps:$4 sm:$0xff]  }
  0x15   : > { %2040 = vmatprep.subr.bf16.mxu1 %v4981_v2  ;;  %2000 = vmatpush1.bf16.msra.mxu0 %v4983_v3  ;;  %v4989_v7 = vld [vmem:[%s7086_s1 + $0x60] ss:$8 sps:$4 sm:$0xff]   ;;  %v4991_v9 = vld [vmem:[%s7086_s1 + $0x54] ss:$8 sps:$4 sm:$0xff]   ;;  %v4995_v11 = vld [vmem:[%s7086_s1 + $0x50] ss:$8 sps:$4 sm:$0xff]  }
  0x16   : > { %2041 = vmatpush1.bf16.msra.mxu1 %v4984_v4  ;;  %2001 = vmatprep.subr.bf16.mxu0 %v4985_v5  ;;  %v4990_v8 = vld [vmem:[%s7086_s1 + $0x160] ss:$8 sps:$4 sm:$0xff]   ;;  %v4993_v10 = vld [vmem:[%s7086_s1 + $0x154] ss:$8 sps:$4 sm:$0xff]   ;;  %v4996_v12 = vld [vmem:[%s7086_s1 + $0x150] ss:$8 sps:$4 sm:$0xff]  }
  0x17   : > { %2042 = vmatprep.subr.bf16.mxu1 %v4987_v6  ;;  %v4997_v13 = vld [vmem:[%s7086_s1 + $0x44] ss:$8 sps:$4 sm:$0xff]   ;;  %v5001_v15 = vld [vmem:[%s7086_s1 + $0x40] ss:$8 sps:$4 sm:$0xff]   ;;  %v5003_v17 = vld [vmem:[%s7086_s1 + $0x34] ss:$8 sps:$4 sm:$0xff]  }
  0x18   : > { %v4999_v14 = vld [vmem:[%s7086_s1 + $0x144] ss:$8 sps:$4 sm:$0xff]   ;;  %v5002_v16 = vld [vmem:[%s7086_s1 + $0x140] ss:$8 sps:$4 sm:$0xff]   ;;  %v5005_v18 = vld [vmem:[%s7086_s1 + $0x134] ss:$8 sps:$4 sm:$0xff]  }
  0x19   : > { %2002 = vmatpush1.bf16.msra.mxu0 %v4989_v7  ;;  %v5007_v19 = vld [vmem:[%s7086_s1 + $0x30] ss:$8 sps:$4 sm:$0xff]   ;;  %v5009_v21 = vld [vmem:[%s7086_s1 + $0x24] ss:$8 sps:$4 sm:$0xff]   ;;  %v5013_v23 = vld [vmem:[%s7086_s1 + $0x20] ss:$8 sps:$4 sm:$0xff]  }
  0x1a   : > { %2043 = vmatpush1.bf16.msra.mxu1 %v4990_v8  ;;  %2003 = vmatprep.subr.bf16.mxu0 %v4991_v9  ;;  %v5008_v20 = vld [vmem:[%s7086_s1 + $0x130] ss:$8 sps:$4 sm:$0xff]   ;;  %v5011_v22 = vld [vmem:[%s7086_s1 + $0x124] ss:$8 sps:$4 sm:$0xff]   ;;  %v5014_v24 = vld [vmem:[%s7086_s1 + $0x120] ss:$8 sps:$4 sm:$0xff]  }
  0x1b   : > { %2044 = vmatprep.subr.bf16.mxu1 %v4993_v10  ;;  %v5015_v25 = vld [vmem:[%s7086_s1 + $0x14] ss:$8 sps:$4 sm:$0xff]   ;;  %v5019_v27 = vld [vmem:[%s7086_s1 + $0x10] ss:$8 sps:$4 sm:$0xff]   ;;  %v5021_v29 = vld [vmem:[%s7086_s1 + $0x4] ss:$8 sps:$4 sm:$0xff]  }
  0x1c   : > { %v5017_v26 = vld [vmem:[%s7086_s1 + $0x114] ss:$8 sps:$4 sm:$0xff]   ;;  %v5020_v28 = vld [vmem:[%s7086_s1 + $0x110] ss:$8 sps:$4 sm:$0xff]   ;;  %v5023_v30 = vld [vmem:[%s7086_s1 + $0x104] ss:$8 sps:$4 sm:$0xff]  }
  0x1d   : > { %2004 = vmatpush1.bf16.msra.mxu0 %v4995_v11  ;;  %v5025_v31 = vld [vmem:[%s7086_s1] ss:$8 sps:$4 sm:$0xff]   ;;  %v5027_v33 = vld [vmem:[%s7086_s1 + $0xf4] ss:$8 sps:$4 sm:$0xff]   ;;  %v5031_v35 = vld [vmem:[%s7086_s1 + $0xf0] ss:$8 sps:$4 sm:$0xff]  }
  0x1e   : > { %2045 = vmatpush1.bf16.msra.mxu1 %v4996_v12  ;;  %2005 = vmatprep.subr.bf16.mxu0 %v4997_v13  ;;  %v5026_v32 = vld [vmem:[%s7086_s1 + $0x100] ss:$8 sps:$4 sm:$0xff]   ;;  %v5029_v34 = vld [vmem:[%s7086_s1 + $0x1f4] ss:$8 sps:$4 sm:$0xff]   ;;  %v5032_v36 = vld [vmem:[%s7086_s1 + $0x1f0] ss:$8 sps:$4 sm:$0xff]  }
  0x1f   : > { %2046 = vmatprep.subr.bf16.mxu1 %v4999_v14  ;;  %v5033_v37 = vld [vmem:[%s7086_s1 + $0xe4] ss:$8 sps:$4 sm:$0xff]   ;;  %v5037_v39 = vld [vmem:[%s7086_s1 + $0xe0] ss:$8 sps:$4 sm:$0xff]   ;;  %v5039_v41 = vld [vmem:[%s7086_s1 + $0xd4] ss:$8 sps:$4 sm:$0xff]  }
  0x20   : > { %v5035_v38 = vld [vmem:[%s7086_s1 + $0x1e4] ss:$8 sps:$4 sm:$0xff]   ;;  %v5038_v40 = vld [vmem:[%s7086_s1 + $0x1e0] ss:$8 sps:$4 sm:$0xff]   ;;  %v5041_v42 = vld [vmem:[%s7086_s1 + $0x1d4] ss:$8 sps:$4 sm:$0xff]  }
  0x21   : > { %2006 = vmatpush1.bf16.msra.mxu0 %v5001_v15  ;;  %v5043_v43 = vld [vmem:[%s7086_s1 + $0xd0] ss:$8 sps:$4 sm:$0xff]   ;;  %v5045_v45 = vld [vmem:[%s7086_s1 + $0xc4] ss:$8 sps:$4 sm:$0xff]   ;;  %v5049_v50 = vld [vmem:[%s7086_s1 + $0xc0] ss:$8 sps:$4 sm:$0xff]  }
  0x22   : > { %2047 = vmatpush1.bf16.msra.mxu1 %v5002_v16  ;;  %2007 = vmatprep.subr.bf16.mxu0 %v5003_v17  ;;  %v5044_v44 = vld [vmem:[%s7086_s1 + $0x1d0] ss:$8 sps:$4 sm:$0xff]   ;;  %v5047_v46 = vld [vmem:[%s7086_s1 + $0x1c4] ss:$8 sps:$4 sm:$0xff]   ;;  %v5050_v51 = vld [vmem:[%s7086_s1 + $0x1c0] ss:$8 sps:$4 sm:$0xff]  }
  0x23   : > { %2048 = vmatprep.subr.bf16.mxu1 %v5005_v18  ;;  %v399_v47 = vld [vmem:[%s5575_s24] sm:$0xff]  ;;  %v400_v49 = vld [vmem:[%s5575_s24 + $0x8] sm:$0xff]  ;;  %v5051_v53 = vld [vmem:[%s7086_s1 + $0xb4] ss:$8 sps:$4 sm:$0xff]   ;;  %p4684_p5 = scmp.ne.s32.totalorder %s5566_s18, 15 }
  0x24   : > { %v4381_v48 = vcombine.high %v399_v47, %v399_v47  ;;  %v4383_v52 = vcombine.high %v400_v49, %v400_v49  ;;  %v5053_v54 = vld [vmem:[%s7086_s1 + $0x1b4] ss:$8 sps:$4 sm:$0xff]   ;;  %v5055_v55 = vld [vmem:[%s7086_s1 + $0xb0] ss:$8 sps:$4 sm:$0xff]   ;;  %v5057_v57 = vld [vmem:[%s7086_s1 + $0xa4] ss:$8 sps:$4 sm:$0xff]   ;;  %v4380_v7 = vcombine.low %v399_v47, %v399_v47  ;;  %v4382_v8 = vcombine.low %v400_v49, %v400_v49 }
  0x25   : > { %2008 = vmatpush1.bf16.msra.mxu0 %v5007_v19  ;;  %v5056_v56 = vld [vmem:[%s7086_s1 + $0x1b0] ss:$8 sps:$4 sm:$0xff]   ;;  %v5059_v58 = vld [vmem:[%s7086_s1 + $0x1a4] ss:$8 sps:$4 sm:$0xff]   ;;  %v5061_v59 = vld [vmem:[%s7086_s1 + $0xa0] ss:$8 sps:$4 sm:$0xff]  }
  0x26   : > { %2049 = vmatpush1.bf16.msra.mxu1 %v5008_v20  ;;  %2009 = vmatprep.subr.bf16.mxu0 %v5009_v21  ;;  %v5062_v60 = vld [vmem:[%s7086_s1 + $0x1a0] ss:$8 sps:$4 sm:$0xff]   ;;  %v5063_v61 = vld [vmem:[%s7086_s1 + $0x94] ss:$8 sps:$4 sm:$0xff]   ;;  %v5067_v63 = vld [vmem:[%s7086_s1 + $0x90] ss:$8 sps:$4 sm:$0xff]  }
  0x27   : > { %2050 = vmatprep.subr.bf16.mxu1 %v5011_v22  ;;  %2031 = vmatprep.mubr.bf16.mxu0 %v4381_v48  ;;  %v5065_v62 = vld [vmem:[%s7086_s1 + $0x194] ss:$8 sps:$4 sm:$0xff]   ;;  %v5068_v0 = vld [vmem:[%s7086_s1 + $0x190] ss:$8 sps:$4 sm:$0xff]   ;;  %v5069_v1 = vld [vmem:[%s7086_s1 + $0x84] ss:$8 sps:$4 sm:$0xff]  }
  0x28   : > { %2072 = vmatprep.mubr.bf16.mxu1 %v4383_v52  ;;  %v5071_v2 = vld [vmem:[%s7086_s1 + $0x184] ss:$8 sps:$4 sm:$0xff]   ;;  %v5073_v3 = vld [vmem:[%s7086_s1 + $0x80] ss:$8 sps:$4 sm:$0xff]   ;;  %v5081_v5 = vld [vmem:[%s7086_s1 + $0x274] ss:$8 sps:$4 sm:$0xff]  }
  0x29   : > { %2010 = vmatpush1.bf16.msra.mxu0 %v5013_v23  ;;  %v5074_v4 = vld [vmem:[%s7086_s1 + $0x180] ss:$8 sps:$4 sm:$0xff]   ;;  %v5084_v6 = vld [vmem:[%s7086_s1 + $0x374] ss:$8 sps:$4 sm:$0xff]   ;;  %v5079_v9 = vld [vmem:[%s7086_s1 + $0x270] ss:$8 sps:$4 sm:$0xff]  }
  0x2a   : > { %2051 = vmatpush1.bf16.msra.mxu1 %v5014_v24  ;;  %2011 = vmatprep.subr.bf16.mxu0 %v5015_v25  ;;  %v5082_v10 = vld [vmem:[%s7086_s1 + $0x370] ss:$8 sps:$4 sm:$0xff]   ;;  %v5087_v11 = vld [vmem:[%s7086_s1 + $0x264] ss:$8 sps:$4 sm:$0xff]   ;;  %v5085_v13 = vld [vmem:[%s7086_s1 + $0x260] ss:$8 sps:$4 sm:$0xff]  }
  0x2b   : > { %2052 = vmatprep.subr.bf16.mxu1 %v5017_v26  ;;  %v5090_v12 = vld [vmem:[%s7086_s1 + $0x364] ss:$8 sps:$4 sm:$0xff]   ;;  %v5088_v14 = vld [vmem:[%s7086_s1 + $0x360] ss:$8 sps:$4 sm:$0xff]   ;;  %v5093_v15 = vld [vmem:[%s7086_s1 + $0x254] ss:$8 sps:$4 sm:$0xff]  }
  0x2c   : > { %v5096_v16 = vld [vmem:[%s7086_s1 + $0x354] ss:$8 sps:$4 sm:$0xff]   ;;  %v5091_v17 = vld [vmem:[%s7086_s1 + $0x250] ss:$8 sps:$4 sm:$0xff]   ;;  %v5099_v19 = vld [vmem:[%s7086_s1 + $0x244] ss:$8 sps:$4 sm:$0xff]  }
  0x2d   : > { %2012 = vmatpush1.bf16.msra.mxu0 %v5019_v27  ;;  %v5094_v18 = vld [vmem:[%s7086_s1 + $0x350] ss:$8 sps:$4 sm:$0xff]   ;;  %v5102_v20 = vld [vmem:[%s7086_s1 + $0x344] ss:$8 sps:$4 sm:$0xff]   ;;  %v5097_v21 = vld [vmem:[%s7086_s1 + $0x240] ss:$8 sps:$4 sm:$0xff]  }
  0x2e   : > { %2053 = vmatpush1.bf16.msra.mxu1 %v5020_v28  ;;  %2013 = vmatprep.subr.bf16.mxu0 %v5021_v29  ;;  %v5100_v22 = vld [vmem:[%s7086_s1 + $0x340] ss:$8 sps:$4 sm:$0xff]   ;;  %v5105_v23 = vld [vmem:[%s7086_s1 + $0x234] ss:$8 sps:$4 sm:$0xff]   ;;  %v5103_v25 = vld [vmem:[%s7086_s1 + $0x230] ss:$8 sps:$4 sm:$0xff]  }
  0x2f   : > { %2054 = vmatprep.subr.bf16.mxu1 %v5023_v30  ;;  %v5108_v24 = vld [vmem:[%s7086_s1 + $0x334] ss:$8 sps:$4 sm:$0xff]   ;;  %v5106_v26 = vld [vmem:[%s7086_s1 + $0x330] ss:$8 sps:$4 sm:$0xff]   ;;  %v5111_v27 = vld [vmem:[%s7086_s1 + $0x224] ss:$8 sps:$4 sm:$0xff]  }
  0x30   : > { %v5114_v28 = vld [vmem:[%s7086_s1 + $0x324] ss:$8 sps:$4 sm:$0xff]   ;;  %v5109_v29 = vld [vmem:[%s7086_s1 + $0x220] ss:$8 sps:$4 sm:$0xff]   ;;  %v5144_v52 = vld [vmem:[%s7086_s1 + $0x3d4] ss:$8 sps:$4 sm:$0xff]  }
  0x31   : > { %2014 = vmatpush1.bf16.msra.mxu0 %v5025_v31  ;;  %v5112_v30 = vld [vmem:[%s7086_s1 + $0x320] ss:$8 sps:$4 sm:$0xff]   ;;  %v5117_v31 = vld [vmem:[%s7086_s1 + $0x214] ss:$8 sps:$4 sm:$0xff]   ;;  %v5135_v47 = vld [vmem:[%s7086_s1 + $0x2e4] ss:$8 sps:$4 sm:$0xff]  }
  0x32   : > { %2055 = vmatpush1.bf16.msra.mxu1 %v5026_v32  ;;  %2015 = vmatprep.subr.bf16.mxu0 %v5027_v33  ;;  %v5120_v32 = vld [vmem:[%s7086_s1 + $0x314] ss:$8 sps:$4 sm:$0xff]   ;;  %v5138_v48 = vld [vmem:[%s7086_s1 + $0x3e4] ss:$8 sps:$4 sm:$0xff]   ;;  %v5133_v49 = vld [vmem:[%s7086_s1 + $0x2e0] ss:$8 sps:$4 sm:$0xff]  }
  0x33   : > { %2056 = vmatprep.subr.bf16.mxu1 %v5029_v34  ;;  %v5856_v33 = vld [vmem:[%s5575_s24 + $0x10] sm:$0xff]  ;;  %v5859_v34 = vld [vmem:[%s5575_s24 + $0x18] sm:$0xff] }
  0x35   : > { %2016 = vmatpush2.bf16.msra.mxu0 %v5031_v35  ;;  %v5115_v35 = vld [vmem:[%s7086_s1 + $0x210] ss:$8 sps:$4 sm:$0xff]  }
  0x36   : > { %2057 = vmatpush2.bf16.msra.mxu1 %v5032_v36  ;;  %2017 = vmatprep.subr.bf16.mxu0 %v5033_v37  ;;  %v5118_v36 = vld [vmem:[%s7086_s1 + $0x310] ss:$8 sps:$4 sm:$0xff]   ;;  %v4385_v37 = vcombine.high %v5856_v33, %v5856_v33 }
  0x37   : > { %2058 = vmatprep.subr.bf16.mxu1 %v5035_v38  ;;  %v4387_v38 = vcombine.high %v5859_v34, %v5859_v34 }
  0x39   : > { %2018 = vmatpush2.bf16.msra.mxu0 %v5037_v39  ;;  %v5123_v39 = vld [vmem:[%s7086_s1 + $0x204] ss:$8 sps:$4 sm:$0xff]  }
  0x3a   : > { %2059 = vmatpush2.bf16.msra.mxu1 %v5038_v40  ;;  %2019 = vmatprep.subr.bf16.mxu0 %v5039_v41  ;;  %v5126_v40 = vld [vmem:[%s7086_s1 + $0x304] ss:$8 sps:$4 sm:$0xff]   ;;  %v5121_v41 = vld [vmem:[%s7086_s1 + $0x200] ss:$8 sps:$4 sm:$0xff]  }
  0x3b   : > { %2060 = vmatprep.subr.bf16.mxu1 %v5041_v42  ;;  %v5124_v42 = vld [vmem:[%s7086_s1 + $0x300] ss:$8 sps:$4 sm:$0xff]  }
  0x3d   : > { %2020 = vmatpush2.bf16.msra.mxu0 %v5043_v43  ;;  %v5129_v43 = vld [vmem:[%s7086_s1 + $0x2f4] ss:$8 sps:$4 sm:$0xff]  }
  0x3e   : > { %2061 = vmatpush2.bf16.msra.mxu1 %v5044_v44  ;;  %2021 = vmatprep.subr.bf16.mxu0 %v5045_v45  ;;  %v5132_v44 = vld [vmem:[%s7086_s1 + $0x3f4] ss:$8 sps:$4 sm:$0xff]   ;;  %v5127_v45 = vld [vmem:[%s7086_s1 + $0x2f0] ss:$8 sps:$4 sm:$0xff]  }
  0x3f   : > { %2062 = vmatprep.subr.bf16.mxu1 %v5047_v46  ;;  %v5130_v46 = vld [vmem:[%s7086_s1 + $0x3f0] ss:$8 sps:$4 sm:$0xff]  }
  0x41   : > { %2022 = vmatpush2.bf16.msra.mxu0 %v5049_v50  ;;  %v5136_v50 = vld [vmem:[%s7086_s1 + $0x3e0] ss:$8 sps:$4 sm:$0xff]  }
  0x42   : > { %2063 = vmatpush2.bf16.msra.mxu1 %v5050_v51  ;;  %2023 = vmatprep.subr.bf16.mxu0 %v5051_v53  ;;  %v5141_v51 = vld [vmem:[%s7086_s1 + $0x2d4] ss:$8 sps:$4 sm:$0xff]   ;;  %v5139_v53 = vld [vmem:[%s7086_s1 + $0x2d0] ss:$8 sps:$4 sm:$0xff]  }
  0x43   : > { %2064 = vmatprep.subr.bf16.mxu1 %v5053_v54  ;;  %v5142_v54 = vld [vmem:[%s7086_s1 + $0x3d0] ss:$8 sps:$4 sm:$0xff]  }
  0x45   : > { %2024 = vmatpush2.bf16.msra.mxu0 %v5055_v55  ;;  %v5147_v55 = vld [vmem:[%s7086_s1 + $0x2c4] ss:$8 sps:$4 sm:$0xff]  }
  0x46   : > { %2065 = vmatpush2.bf16.msra.mxu1 %v5056_v56  ;;  %2025 = vmatprep.subr.bf16.mxu0 %v5057_v57  ;;  %v5150_v56 = vld [vmem:[%s7086_s1 + $0x3c4] ss:$8 sps:$4 sm:$0xff]   ;;  %v5145_v57 = vld [vmem:[%s7086_s1 + $0x2c0] ss:$8 sps:$4 sm:$0xff]  }
  0x47   : > { %2066 = vmatprep.subr.bf16.mxu1 %v5059_v58  ;;  %v5148_v58 = vld [vmem:[%s7086_s1 + $0x3c0] ss:$8 sps:$4 sm:$0xff]  }
  0x49   : > { %2026 = vmatpush2.bf16.msra.mxu0 %v5061_v59  ;;  %v5153_v59 = vld [vmem:[%s7086_s1 + $0x2b4] ss:$8 sps:$4 sm:$0xff]  }
  0x4a   : > { %2067 = vmatpush2.bf16.msra.mxu1 %v5062_v60  ;;  %2027 = vmatprep.subr.bf16.mxu0 %v5063_v61  ;;  %v5156_v60 = vld [vmem:[%s7086_s1 + $0x3b4] ss:$8 sps:$4 sm:$0xff]   ;;  %v5151_v61 = vld [vmem:[%s7086_s1 + $0x2b0] ss:$8 sps:$4 sm:$0xff]  }
  0x4b   : > { %2068 = vmatprep.subr.bf16.mxu1 %v5065_v62  ;;  %v5154_v62 = vld [vmem:[%s7086_s1 + $0x3b0] ss:$8 sps:$4 sm:$0xff]  }
  0x4d   : > { %2028 = vmatpush2.bf16.msra.mxu0 %v5067_v63  ;;  %v5159_v63 = vld [vmem:[%s7086_s1 + $0x2a4] ss:$8 sps:$4 sm:$0xff]  }
  0x4e   : > { %2069 = vmatpush2.bf16.msra.mxu1 %v5068_v0  ;;  %2029 = vmatprep.subr.bf16.mxu0 %v5069_v1  ;;  %v5162_v0 = vld [vmem:[%s7086_s1 + $0x3a4] ss:$8 sps:$4 sm:$0xff]   ;;  %v5157_v1 = vld [vmem:[%s7086_s1 + $0x2a0] ss:$8 sps:$4 sm:$0xff]  }
  0x4f   : > { %2070 = vmatprep.subr.bf16.mxu1 %v5071_v2  ;;  %v5160_v2 = vld [vmem:[%s7086_s1 + $0x3a0] ss:$8 sps:$4 sm:$0xff]  }
  0x51   : > { %2030 = vmatpush2.bf16.msra.mxu0 %v5073_v3  ;;  %v5165_v3 = vld [vmem:[%s7086_s1 + $0x294] ss:$8 sps:$4 sm:$0xff]  }
  0x52   : > { %2071 = vmatpush2.bf16.msra.mxu1 %v5074_v4  ;;  %2081 = vmatprep.subr.bf16.mxu0 %v5081_v5  ;;  %v5168_v4 = vld [vmem:[%s7086_s1 + $0x394] ss:$8 sps:$4 sm:$0xff]   ;;  %v5163_v5 = vld [vmem:[%s7086_s1 + $0x290] ss:$8 sps:$4 sm:$0xff]  }
  0x53   : > { %2122 = vmatprep.subr.bf16.mxu1 %v5084_v6  ;;  %v5166_v6 = vld [vmem:[%s7086_s1 + $0x390] ss:$8 sps:$4 sm:$0xff]  }
  0x54   : > { %2032 = vmatmul.mubr.bf16.vlgmr.msra.gmra.mxu0 %v4380_v7  ;;  %v5171_v7 = vld [vmem:[%s7086_s1 + $0x284] ss:$8 sps:$4 sm:$0xff]  }
  0x55   : > { %2073 = vmatmul.mubr.bf16.vlgmr.msra.gmra.mxu1 %v4382_v8  ;;  %2082 = vmatpush1.bf16.msra.mxu0 %v5079_v9  ;;  %v5174_v8 = vld [vmem:[%s7086_s1 + $0x384] ss:$8 sps:$4 sm:$0xff]   ;;  %v5169_v9 = vld [vmem:[%s7086_s1 + $0x280] ss:$8 sps:$4 sm:$0xff]  }
  0x56   : > { %2123 = vmatpush1.bf16.msra.mxu1 %v5082_v10  ;;  %2083 = vmatprep.subr.bf16.mxu0 %v5087_v11  ;;  %v5172_v10 = vld [vmem:[%s7086_s1 + $0x380] ss:$8 sps:$4 sm:$0xff]   ;;  %v5181_v11 = vld [vmem:[%s7086_s1 + $0x474] ss:$8 sps:$4 sm:$0xff]  }
  0x57   : > { %2124 = vmatprep.subr.bf16.mxu1 %v5090_v12  ;;  %2113 = vmatprep.mubr.bf16.mxu0 %v4385_v37  ;;  %v5184_v12 = vld [vmem:[%s7086_s1 + $0x574] ss:$8 sps:$4 sm:$0xff]   ;;  %v5211_v37 = vld [vmem:[%s7086_s1 + $0x424] ss:$8 sps:$4 sm:$0xff]  }
  0x58   : > { %2154 = vmatprep.mubr.bf16.mxu1 %v4387_v38  ;;  %v5214_v38 = vld [vmem:[%s7086_s1 + $0x524] ss:$8 sps:$4 sm:$0xff]  }
  0x59   : > { %2084 = vmatpush1.bf16.msra.mxu0 %v5085_v13  ;;  %v4384_v13 = vcombine.low %v5856_v33, %v5856_v33  ;;  %v5205_v33 = vld [vmem:[%s7086_s1 + $0x434] ss:$8 sps:$4 sm:$0xff]  }
  0x5a   : > { %2125 = vmatpush1.bf16.msra.mxu1 %v5088_v14  ;;  %2085 = vmatprep.subr.bf16.mxu0 %v5093_v15  ;;  %v4386_v14 = vcombine.low %v5859_v34, %v5859_v34  ;;  %v5179_v15 = vld [vmem:[%s7086_s1 + $0x470] ss:$8 sps:$4 sm:$0xff]   ;;  %v5208_v34 = vld [vmem:[%s7086_s1 + $0x534] ss:$8 sps:$4 sm:$0xff]  }
  0x5b   : > { %2126 = vmatprep.subr.bf16.mxu1 %v5096_v16  ;;  %v5182_v16 = vld [vmem:[%s7086_s1 + $0x570] ss:$8 sps:$4 sm:$0xff]  }
  0x5d   : > { %2086 = vmatpush1.bf16.msra.mxu0 %v5091_v17  ;;  %v5187_v17 = vld [vmem:[%s7086_s1 + $0x464] ss:$8 sps:$4 sm:$0xff]  }
  0x5e   : > { %2127 = vmatpush1.bf16.msra.mxu1 %v5094_v18  ;;  %2087 = vmatprep.subr.bf16.mxu0 %v5099_v19  ;;  %v5190_v18 = vld [vmem:[%s7086_s1 + $0x564] ss:$8 sps:$4 sm:$0xff]  }
  0x5f   : > { %2128 = vmatprep.subr.bf16.mxu1 %v5102_v20  ;;  %v6002_v19 = vld [vmem:[%s5575_s24 + $0x20] sm:$0xff]  ;;  %v6005_v20 = vld [vmem:[%s5575_s24 + $0x28] sm:$0xff] }
  0x61   : > { %2088 = vmatpush1.bf16.msra.mxu0 %v5097_v21  ;;  %v4389_v21 = vcombine.high %v6002_v19, %v6002_v19 }
  0x62   : > { %2129 = vmatpush1.bf16.msra.mxu1 %v5100_v22  ;;  %2089 = vmatprep.subr.bf16.mxu0 %v5105_v23  ;;  %v4391_v22 = vcombine.high %v6005_v20, %v6005_v20  ;;  %v5185_v23 = vld [vmem:[%s7086_s1 + $0x460] ss:$8 sps:$4 sm:$0xff]  }
  0x63   : > { %2130 = vmatprep.subr.bf16.mxu1 %v5108_v24  ;;  %v5188_v24 = vld [vmem:[%s7086_s1 + $0x560] ss:$8 sps:$4 sm:$0xff]  }
  0x65   : > { %2090 = vmatpush1.bf16.msra.mxu0 %v5103_v25  ;;  %v5193_v25 = vld [vmem:[%s7086_s1 + $0x454] ss:$8 sps:$4 sm:$0xff]  }
  0x66   : > { %2131 = vmatpush1.bf16.msra.mxu1 %v5106_v26  ;;  %2091 = vmatprep.subr.bf16.mxu0 %v5111_v27  ;;  %v5196_v26 = vld [vmem:[%s7086_s1 + $0x554] ss:$8 sps:$4 sm:$0xff]   ;;  %v5191_v27 = vld [vmem:[%s7086_s1 + $0x450] ss:$8 sps:$4 sm:$0xff]  }
  0x67   : > { %2132 = vmatprep.subr.bf16.mxu1 %v5114_v28  ;;  %v5194_v28 = vld [vmem:[%s7086_s1 + $0x550] ss:$8 sps:$4 sm:$0xff]  }
  0x69   : > { %2092 = vmatpush1.bf16.msra.mxu0 %v5109_v29  ;;  %v5199_v29 = vld [vmem:[%s7086_s1 + $0x444] ss:$8 sps:$4 sm:$0xff]  }
  0x6a   : > { %2133 = vmatpush1.bf16.msra.mxu1 %v5112_v30  ;;  %2093 = vmatprep.subr.bf16.mxu0 %v5117_v31  ;;  %v5202_v30 = vld [vmem:[%s7086_s1 + $0x544] ss:$8 sps:$4 sm:$0xff]   ;;  %v5197_v31 = vld [vmem:[%s7086_s1 + $0x440] ss:$8 sps:$4 sm:$0xff]  }
  0x6b   : > { %2134 = vmatprep.subr.bf16.mxu1 %v5120_v32  ;;  %v5200_v32 = vld [vmem:[%s7086_s1 + $0x540] ss:$8 sps:$4 sm:$0xff]  }
  0x6d   : > { %2094 = vmatpush1.bf16.msra.mxu0 %v5115_v35  ;;  %v5203_v35 = vld [vmem:[%s7086_s1 + $0x430] ss:$8 sps:$4 sm:$0xff]  }
  0x6e   : > { %2135 = vmatpush1.bf16.msra.mxu1 %v5118_v36  ;;  %2095 = vmatprep.subr.bf16.mxu0 %v5123_v39  ;;  %v5206_v36 = vld [vmem:[%s7086_s1 + $0x530] ss:$8 sps:$4 sm:$0xff]   ;;  %v5209_v39 = vld [vmem:[%s7086_s1 + $0x420] ss:$8 sps:$4 sm:$0xff]  }
  0x6f   : > { %2136 = vmatprep.subr.bf16.mxu1 %v5126_v40  ;;  %v5212_v40 = vld [vmem:[%s7086_s1 + $0x520] ss:$8 sps:$4 sm:$0xff]  }
  0x71   : > { %2096 = vmatpush1.bf16.msra.mxu0 %v5121_v41  ;;  %v5217_v41 = vld [vmem:[%s7086_s1 + $0x414] ss:$8 sps:$4 sm:$0xff]  }
  0x72   : > { %2137 = vmatpush1.bf16.msra.mxu1 %v5124_v42  ;;  %2097 = vmatprep.subr.bf16.mxu0 %v5129_v43  ;;  %v5220_v42 = vld [vmem:[%s7086_s1 + $0x514] ss:$8 sps:$4 sm:$0xff]   ;;  %v5215_v43 = vld [vmem:[%s7086_s1 + $0x410] ss:$8 sps:$4 sm:$0xff]  }
  0x73   : > { %2138 = vmatprep.subr.bf16.mxu1 %v5132_v44  ;;  %v5218_v44 = vld [vmem:[%s7086_s1 + $0x510] ss:$8 sps:$4 sm:$0xff]  }
  0x75   : > { %2098 = vmatpush2.bf16.msra.mxu0 %v5127_v45  ;;  %v5223_v45 = vld [vmem:[%s7086_s1 + $0x404] ss:$8 sps:$4 sm:$0xff]  }
  0x76   : > { %2139 = vmatpush2.bf16.msra.mxu1 %v5130_v46  ;;  %2099 = vmatprep.subr.bf16.mxu0 %v5135_v47  ;;  %v5226_v46 = vld [vmem:[%s7086_s1 + $0x504] ss:$8 sps:$4 sm:$0xff]   ;;  %v5221_v47 = vld [vmem:[%s7086_s1 + $0x400] ss:$8 sps:$4 sm:$0xff]  }
  0x77   : > { %2140 = vmatprep.subr.bf16.mxu1 %v5138_v48  ;;  %v5224_v48 = vld [vmem:[%s7086_s1 + $0x500] ss:$8 sps:$4 sm:$0xff]  }
  0x79   : > { %2100 = vmatpush2.bf16.msra.mxu0 %v5133_v49  ;;  %v5229_v49 = vld [vmem:[%s7086_s1 + $0x4f4] ss:$8 sps:$4 sm:$0xff]  }
  0x7a   : > { %2141 = vmatpush2.bf16.msra.mxu1 %v5136_v50  ;;  %2101 = vmatprep.subr.bf16.mxu0 %v5141_v51  ;;  %v5232_v50 = vld [vmem:[%s7086_s1 + $0x5f4] ss:$8 sps:$4 sm:$0xff]   ;;  %v5227_v51 = vld [vmem:[%s7086_s1 + $0x4f0] ss:$8 sps:$4 sm:$0xff]  }
  0x7b   : > { %2142 = vmatprep.subr.bf16.mxu1 %v5144_v52  ;;  %v5230_v52 = vld [vmem:[%s7086_s1 + $0x5f0] ss:$8 sps:$4 sm:$0xff]  }
  0x7d   : > { %2102 = vmatpush2.bf16.msra.mxu0 %v5139_v53  ;;  %v5235_v53 = vld [vmem:[%s7086_s1 + $0x4e4] ss:$8 sps:$4 sm:$0xff]  }
  0x7e   : > { %2143 = vmatpush2.bf16.msra.mxu1 %v5142_v54  ;;  %2103 = vmatprep.subr.bf16.mxu0 %v5147_v55  ;;  %v5238_v54 = vld [vmem:[%s7086_s1 + $0x5e4] ss:$8 sps:$4 sm:$0xff]   ;;  %v5233_v55 = vld [vmem:[%s7086_s1 + $0x4e0] ss:$8 sps:$4 sm:$0xff]  }
  0x7f   : > { %2144 = vmatprep.subr.bf16.mxu1 %v5150_v56  ;;  %v5236_v56 = vld [vmem:[%s7086_s1 + $0x5e0] ss:$8 sps:$4 sm:$0xff]  }
  0x81   : > { %2104 = vmatpush2.bf16.msra.mxu0 %v5145_v57  ;;  %v5241_v57 = vld [vmem:[%s7086_s1 + $0x4d4] ss:$8 sps:$4 sm:$0xff]  }
  0x82   : > { %2145 = vmatpush2.bf16.msra.mxu1 %v5148_v58  ;;  %2105 = vmatprep.subr.bf16.mxu0 %v5153_v59  ;;  %v5244_v58 = vld [vmem:[%s7086_s1 + $0x5d4] ss:$8 sps:$4 sm:$0xff]   ;;  %v5239_v59 = vld [vmem:[%s7086_s1 + $0x4d0] ss:$8 sps:$4 sm:$0xff]  }
  0x83   : > { %2146 = vmatprep.subr.bf16.mxu1 %v5156_v60  ;;  %v5242_v60 = vld [vmem:[%s7086_s1 + $0x5d0] ss:$8 sps:$4 sm:$0xff]  }
  0x85   : > { %2106 = vmatpush2.bf16.msra.mxu0 %v5151_v61  ;;  %v5247_v61 = vld [vmem:[%s7086_s1 + $0x4c4] ss:$8 sps:$4 sm:$0xff]  }
  0x86   : > { %2147 = vmatpush2.bf16.msra.mxu1 %v5154_v62  ;;  %2107 = vmatprep.subr.bf16.mxu0 %v5159_v63  ;;  %v5250_v62 = vld [vmem:[%s7086_s1 + $0x5c4] ss:$8 sps:$4 sm:$0xff]   ;;  %v5245_v63 = vld [vmem:[%s7086_s1 + $0x4c0] ss:$8 sps:$4 sm:$0xff]  }
  0x87   : > { %2148 = vmatprep.subr.bf16.mxu1 %v5162_v0  ;;  %v5248_v0 = vld [vmem:[%s7086_s1 + $0x5c0] ss:$8 sps:$4 sm:$0xff]  }
  0x89   : > { %2108 = vmatpush2.bf16.msra.mxu0 %v5157_v1  ;;  %v5253_v1 = vld [vmem:[%s7086_s1 + $0x4b4] ss:$8 sps:$4 sm:$0xff]  }
  0x8a   : > { %2149 = vmatpush2.bf16.msra.mxu1 %v5160_v2  ;;  %2109 = vmatprep.subr.bf16.mxu0 %v5165_v3  ;;  %v5256_v2 = vld [vmem:[%s7086_s1 + $0x5b4] ss:$8 sps:$4 sm:$0xff]   ;;  %v5251_v3 = vld [vmem:[%s7086_s1 + $0x4b0] ss:$8 sps:$4 sm:$0xff]  }
  0x8b   : > { %2150 = vmatprep.subr.bf16.mxu1 %v5168_v4  ;;  %v5254_v4 = vld [vmem:[%s7086_s1 + $0x5b0] ss:$8 sps:$4 sm:$0xff]  }
  0x8d   : > { %2110 = vmatpush2.bf16.msra.mxu0 %v5163_v5  ;;  %v5259_v5 = vld [vmem:[%s7086_s1 + $0x4a4] ss:$8 sps:$4 sm:$0xff]  }
  0x8e   : > { %2151 = vmatpush2.bf16.msra.mxu1 %v5166_v6  ;;  %2111 = vmatprep.subr.bf16.mxu0 %v5171_v7  ;;  %v5262_v6 = vld [vmem:[%s7086_s1 + $0x5a4] ss:$8 sps:$4 sm:$0xff]   ;;  %v5257_v7 = vld [vmem:[%s7086_s1 + $0x4a0] ss:$8 sps:$4 sm:$0xff]  }
  0x8f   : > { %2152 = vmatprep.subr.bf16.mxu1 %v5174_v8  ;;  %v5260_v8 = vld [vmem:[%s7086_s1 + $0x5a0] ss:$8 sps:$4 sm:$0xff]  }
  0x91   : > { %2112 = vmatpush2.bf16.msra.mxu0 %v5169_v9  ;;  %v5265_v9 = vld [vmem:[%s7086_s1 + $0x494] ss:$8 sps:$4 sm:$0xff]  }
  0x92   : > { %2153 = vmatpush2.bf16.msra.mxu1 %v5172_v10  ;;  %2163 = vmatprep.subr.bf16.mxu0 %v5181_v11  ;;  %v5268_v10 = vld [vmem:[%s7086_s1 + $0x594] ss:$8 sps:$4 sm:$0xff]   ;;  %v5263_v11 = vld [vmem:[%s7086_s1 + $0x490] ss:$8 sps:$4 sm:$0xff]  }
  0x93   : > { %2204 = vmatprep.subr.bf16.mxu1 %v5184_v12  ;;  %v5266_v12 = vld [vmem:[%s7086_s1 + $0x590] ss:$8 sps:$4 sm:$0xff]  }
  0x94   : > { %2114 = vmatmul.mubr.bf16.vlgmr.msra.gmra.mxu0 %v4384_v13  ;;  %v5271_v13 = vld [vmem:[%s7086_s1 + $0x484] ss:$8 sps:$4 sm:$0xff]  }
  0x95   : > { %2155 = vmatmul.mubr.bf16.vlgmr.msra.gmra.mxu1 %v4386_v14  ;;  %2164 = vmatpush1.bf16.msra.mxu0 %v5179_v15  ;;  %v5274_v14 = vld [vmem:[%s7086_s1 + $0x584] ss:$8 sps:$4 sm:$0xff]   ;;  %v5269_v15 = vld [vmem:[%s7086_s1 + $0x480] ss:$8 sps:$4 sm:$0xff]  }
  0x96   : > { %2205 = vmatpush1.bf16.msra.mxu1 %v5182_v16  ;;  %2165 = vmatprep.subr.bf16.mxu0 %v5187_v17  ;;  %v5272_v16 = vld [vmem:[%s7086_s1 + $0x580] ss:$8 sps:$4 sm:$0xff]   ;;  %v5281_v17 = vld [vmem:[%s7086_s1 + $0x674] ss:$8 sps:$4 sm:$0xff]  }
  0x97   : > { %2206 = vmatprep.subr.bf16.mxu1 %v5190_v18  ;;  %2195 = vmatprep.mubr.bf16.mxu0 %v4389_v21  ;;  %v5284_v18 = vld [vmem:[%s7086_s1 + $0x774] ss:$8 sps:$4 sm:$0xff]   ;;  %v4388_v21 = vcombine.low %v6002_v19, %v6002_v19  ;;  %v5287_v19 = vld [vmem:[%s7086_s1 + $0x664] ss:$8 sps:$4 sm:$0xff]  }
  0x98   : > { %2236 = vmatprep.mubr.bf16.mxu1 %v4391_v22  ;;  %v4390_v22 = vcombine.low %v6005_v20, %v6005_v20  ;;  %v5290_v20 = vld [vmem:[%s7086_s1 + $0x764] ss:$8 sps:$4 sm:$0xff]  }
  0x99   : > { %2166 = vmatpush1.bf16.msra.mxu0 %v5185_v23  ;;  %v6196_v23 = vld [vmem:[%s5575_s24 + $0x30] sm:$0xff] }
  0x9a   : > { %2207 = vmatpush1.bf16.msra.mxu1 %v5188_v24  ;;  %2167 = vmatprep.subr.bf16.mxu0 %v5193_v25  ;;  %v6199_v24 = vld [vmem:[%s5575_s24 + $0x38] sm:$0xff] }
  0x9b   : > { %2208 = vmatprep.subr.bf16.mxu1 %v5196_v26  ;;  %v5279_v25 = vld [vmem:[%s7086_s1 + $0x670] ss:$8 sps:$4 sm:$0xff]  }
  0x9c   : > { %v5282_v26 = vld [vmem:[%s7086_s1 + $0x770] ss:$8 sps:$4 sm:$0xff]  }
  0x9d   : > { %2168 = vmatpush1.bf16.msra.mxu0 %v5191_v27  ;;  %v4393_v27 = vcombine.high %v6196_v23, %v6196_v23 }
  0x9e   : > { %2209 = vmatpush1.bf16.msra.mxu1 %v5194_v28  ;;  %2169 = vmatprep.subr.bf16.mxu0 %v5199_v29  ;;  %v4395_v28 = vcombine.high %v6199_v24, %v6199_v24  ;;  %v5285_v29 = vld [vmem:[%s7086_s1 + $0x660] ss:$8 sps:$4 sm:$0xff]  }
  0x9f   : > { %2210 = vmatprep.subr.bf16.mxu1 %v5202_v30  ;;  %v5288_v30 = vld [vmem:[%s7086_s1 + $0x760] ss:$8 sps:$4 sm:$0xff]  }
  0xa1   : > { %2170 = vmatpush1.bf16.msra.mxu0 %v5197_v31  ;;  %v5293_v31 = vld [vmem:[%s7086_s1 + $0x654] ss:$8 sps:$4 sm:$0xff]  }
  0xa2   : > { %2211 = vmatpush1.bf16.msra.mxu1 %v5200_v32  ;;  %2171 = vmatprep.subr.bf16.mxu0 %v5205_v33  ;;  %v5296_v32 = vld [vmem:[%s7086_s1 + $0x754] ss:$8 sps:$4 sm:$0xff]   ;;  %v5291_v33 = vld [vmem:[%s7086_s1 + $0x650] ss:$8 sps:$4 sm:$0xff]  }
  0xa3   : > { %2212 = vmatprep.subr.bf16.mxu1 %v5208_v34  ;;  %v5294_v34 = vld [vmem:[%s7086_s1 + $0x750] ss:$8 sps:$4 sm:$0xff]  }
  0xa5   : > { %2172 = vmatpush1.bf16.msra.mxu0 %v5203_v35  ;;  %v5299_v35 = vld [vmem:[%s7086_s1 + $0x644] ss:$8 sps:$4 sm:$0xff]  }
  0xa6   : > { %2213 = vmatpush1.bf16.msra.mxu1 %v5206_v36  ;;  %2173 = vmatprep.subr.bf16.mxu0 %v5211_v37  ;;  %v5302_v36 = vld [vmem:[%s7086_s1 + $0x744] ss:$8 sps:$4 sm:$0xff]   ;;  %v5297_v37 = vld [vmem:[%s7086_s1 + $0x640] ss:$8 sps:$4 sm:$0xff]  }
  0xa7   : > { %2214 = vmatprep.subr.bf16.mxu1 %v5214_v38  ;;  %v5300_v38 = vld [vmem:[%s7086_s1 + $0x740] ss:$8 sps:$4 sm:$0xff]  }
  0xa9   : > { %2174 = vmatpush1.bf16.msra.mxu0 %v5209_v39  ;;  %v5305_v39 = vld [vmem:[%s7086_s1 + $0x634] ss:$8 sps:$4 sm:$0xff]  }
  0xaa   : > { %2215 = vmatpush1.bf16.msra.mxu1 %v5212_v40  ;;  %2175 = vmatprep.subr.bf16.mxu0 %v5217_v41  ;;  %v5308_v40 = vld [vmem:[%s7086_s1 + $0x734] ss:$8 sps:$4 sm:$0xff]   ;;  %v5303_v41 = vld [vmem:[%s7086_s1 + $0x630] ss:$8 sps:$4 sm:$0xff]  }
  0xab   : > { %2216 = vmatprep.subr.bf16.mxu1 %v5220_v42  ;;  %v5306_v42 = vld [vmem:[%s7086_s1 + $0x730] ss:$8 sps:$4 sm:$0xff]  }
  0xad   : > { %2176 = vmatpush1.bf16.msra.mxu0 %v5215_v43  ;;  %v5311_v43 = vld [vmem:[%s7086_s1 + $0x624] ss:$8 sps:$4 sm:$0xff]  }
  0xae   : > { %2217 = vmatpush1.bf16.msra.mxu1 %v5218_v44  ;;  %2177 = vmatprep.subr.bf16.mxu0 %v5223_v45  ;;  %v5314_v44 = vld [vmem:[%s7086_s1 + $0x724] ss:$8 sps:$4 sm:$0xff]   ;;  %v5309_v45 = vld [vmem:[%s7086_s1 + $0x620] ss:$8 sps:$4 sm:$0xff]  }
  0xaf   : > { %2218 = vmatprep.subr.bf16.mxu1 %v5226_v46  ;;  %v5312_v46 = vld [vmem:[%s7086_s1 + $0x720] ss:$8 sps:$4 sm:$0xff]  }
  0xb1   : > { %2178 = vmatpush1.bf16.msra.mxu0 %v5221_v47  ;;  %v5317_v47 = vld [vmem:[%s7086_s1 + $0x614] ss:$8 sps:$4 sm:$0xff]  }
  0xb2   : > { %2219 = vmatpush1.bf16.msra.mxu1 %v5224_v48  ;;  %2179 = vmatprep.subr.bf16.mxu0 %v5229_v49  ;;  %v5320_v48 = vld [vmem:[%s7086_s1 + $0x714] ss:$8 sps:$4 sm:$0xff]   ;;  %v5315_v49 = vld [vmem:[%s7086_s1 + $0x610] ss:$8 sps:$4 sm:$0xff]  }
  0xb3   : > { %2220 = vmatprep.subr.bf16.mxu1 %v5232_v50  ;;  %v5318_v50 = vld [vmem:[%s7086_s1 + $0x710] ss:$8 sps:$4 sm:$0xff]  }
  0xb5   : > { %2180 = vmatpush2.bf16.msra.mxu0 %v5227_v51  ;;  %v5323_v51 = vld [vmem:[%s7086_s1 + $0x604] ss:$8 sps:$4 sm:$0xff]  }
  0xb6   : > { %2221 = vmatpush2.bf16.msra.mxu1 %v5230_v52  ;;  %2181 = vmatprep.subr.bf16.mxu0 %v5235_v53  ;;  %v5326_v52 = vld [vmem:[%s7086_s1 + $0x704] ss:$8 sps:$4 sm:$0xff]   ;;  %v5321_v53 = vld [vmem:[%s7086_s1 + $0x600] ss:$8 sps:$4 sm:$0xff]  }
  0xb7   : > { %2222 = vmatprep.subr.bf16.mxu1 %v5238_v54  ;;  %v5324_v54 = vld [vmem:[%s7086_s1 + $0x700] ss:$8 sps:$4 sm:$0xff]  }
  0xb9   : > { %2182 = vmatpush2.bf16.msra.mxu0 %v5233_v55  ;;  %v5329_v55 = vld [vmem:[%s7086_s1 + $0x6f4] ss:$8 sps:$4 sm:$0xff]  }
  0xba   : > { %2223 = vmatpush2.bf16.msra.mxu1 %v5236_v56  ;;  %2183 = vmatprep.subr.bf16.mxu0 %v5241_v57  ;;  %v5332_v56 = vld [vmem:[%s7086_s1 + $0x7f4] ss:$8 sps:$4 sm:$0xff]   ;;  %v5327_v57 = vld [vmem:[%s7086_s1 + $0x6f0] ss:$8 sps:$4 sm:$0xff]  }
  0xbb   : > { %2224 = vmatprep.subr.bf16.mxu1 %v5244_v58  ;;  %v5330_v58 = vld [vmem:[%s7086_s1 + $0x7f0] ss:$8 sps:$4 sm:$0xff]  }
  0xbd   : > { %2184 = vmatpush2.bf16.msra.mxu0 %v5239_v59  ;;  %v5335_v59 = vld [vmem:[%s7086_s1 + $0x6e4] ss:$8 sps:$4 sm:$0xff]  }
  0xbe   : > { %2225 = vmatpush2.bf16.msra.mxu1 %v5242_v60  ;;  %2185 = vmatprep.subr.bf16.mxu0 %v5247_v61  ;;  %v5338_v60 = vld [vmem:[%s7086_s1 + $0x7e4] ss:$8 sps:$4 sm:$0xff]   ;;  %v5333_v61 = vld [vmem:[%s7086_s1 + $0x6e0] ss:$8 sps:$4 sm:$0xff]  }
  0xbf   : > { %2226 = vmatprep.subr.bf16.mxu1 %v5250_v62  ;;  %v5336_v62 = vld [vmem:[%s7086_s1 + $0x7e0] ss:$8 sps:$4 sm:$0xff]  }
  0xc1   : > { %2186 = vmatpush2.bf16.msra.mxu0 %v5245_v63  ;;  %v5341_v63 = vld [vmem:[%s7086_s1 + $0x6d4] ss:$8 sps:$4 sm:$0xff]  }
  0xc2   : > { %2227 = vmatpush2.bf16.msra.mxu1 %v5248_v0  ;;  %2187 = vmatprep.subr.bf16.mxu0 %v5253_v1  ;;  %v5344_v0 = vld [vmem:[%s7086_s1 + $0x7d4] ss:$8 sps:$4 sm:$0xff]   ;;  %v5339_v1 = vld [vmem:[%s7086_s1 + $0x6d0] ss:$8 sps:$4 sm:$0xff]  }
  0xc3   : > { %2228 = vmatprep.subr.bf16.mxu1 %v5256_v2  ;;  %v5342_v2 = vld [vmem:[%s7086_s1 + $0x7d0] ss:$8 sps:$4 sm:$0xff]  }
  0xc5   : > { %2188 = vmatpush2.bf16.msra.mxu0 %v5251_v3  ;;  %v5347_v3 = vld [vmem:[%s7086_s1 + $0x6c4] ss:$8 sps:$4 sm:$0xff]  }
  0xc6   : > { %2229 = vmatpush2.bf16.msra.mxu1 %v5254_v4  ;;  %2189 = vmatprep.subr.bf16.mxu0 %v5259_v5  ;;  %v5350_v4 = vld [vmem:[%s7086_s1 + $0x7c4] ss:$8 sps:$4 sm:$0xff]   ;;  %v5345_v5 = vld [vmem:[%s7086_s1 + $0x6c0] ss:$8 sps:$4 sm:$0xff]  }
  0xc7   : > { %2230 = vmatprep.subr.bf16.mxu1 %v5262_v6  ;;  %v5348_v6 = vld [vmem:[%s7086_s1 + $0x7c0] ss:$8 sps:$4 sm:$0xff]  }
  0xc9   : > { %2190 = vmatpush2.bf16.msra.mxu0 %v5257_v7  ;;  %v5353_v7 = vld [vmem:[%s7086_s1 + $0x6b4] ss:$8 sps:$4 sm:$0xff]  }
  0xca   : > { %2231 = vmatpush2.bf16.msra.mxu1 %v5260_v8  ;;  %2191 = vmatprep.subr.bf16.mxu0 %v5265_v9  ;;  %v5356_v8 = vld [vmem:[%s7086_s1 + $0x7b4] ss:$8 sps:$4 sm:$0xff]   ;;  %v5351_v9 = vld [vmem:[%s7086_s1 + $0x6b0] ss:$8 sps:$4 sm:$0xff]  }
  0xcb   : > { %2232 = vmatprep.subr.bf16.mxu1 %v5268_v10  ;;  %v5354_v10 = vld [vmem:[%s7086_s1 + $0x7b0] ss:$8 sps:$4 sm:$0xff]  }
  0xcd   : > { %2192 = vmatpush2.bf16.msra.mxu0 %v5263_v11  ;;  %v5359_v11 = vld [vmem:[%s7086_s1 + $0x6a4] ss:$8 sps:$4 sm:$0xff]  }
  0xce   : > { %2233 = vmatpush2.bf16.msra.mxu1 %v5266_v12  ;;  %2193 = vmatprep.subr.bf16.mxu0 %v5271_v13  ;;  %v5362_v12 = vld [vmem:[%s7086_s1 + $0x7a4] ss:$8 sps:$4 sm:$0xff]   ;;  %v5357_v13 = vld [vmem:[%s7086_s1 + $0x6a0] ss:$8 sps:$4 sm:$0xff]  }
  0xcf   : > { %2234 = vmatprep.subr.bf16.mxu1 %v5274_v14  ;;  %v5360_v14 = vld [vmem:[%s7086_s1 + $0x7a0] ss:$8 sps:$4 sm:$0xff]  }
  0xd1   : > { %2194 = vmatpush2.bf16.msra.mxu0 %v5269_v15  ;;  %v5365_v15 = vld [vmem:[%s7086_s1 + $0x694] ss:$8 sps:$4 sm:$0xff]  }
  0xd2   : > { %2235 = vmatpush2.bf16.msra.mxu1 %v5272_v16  ;;  %2245 = vmatprep.subr.bf16.mxu0 %v5281_v17  ;;  %v5368_v16 = vld [vmem:[%s7086_s1 + $0x794] ss:$8 sps:$4 sm:$0xff]   ;;  %v5363_v17 = vld [vmem:[%s7086_s1 + $0x690] ss:$8 sps:$4 sm:$0xff]  }
  0xd3   : > { %2286 = vmatprep.subr.bf16.mxu1 %v5284_v18  ;;  %v5366_v18 = vld [vmem:[%s7086_s1 + $0x790] ss:$8 sps:$4 sm:$0xff]  }
  0xd4   : > { %2196 = vmatmul.mubr.bf16.vlgmr.msra.gmra.mxu0 %v4388_v21  ;;  %v5371_v21 = vld [vmem:[%s7086_s1 + $0x684] ss:$8 sps:$4 sm:$0xff]  }
  0xd5   : > { %2237 = vmatmul.mubr.bf16.vlgmr.msra.gmra.mxu1 %v4390_v22  ;;  %2246 = vmatpush1.bf16.msra.mxu0 %v5279_v25  ;;  %v5374_v22 = vld [vmem:[%s7086_s1 + $0x784] ss:$8 sps:$4 sm:$0xff]   ;;  %v5369_v25 = vld [vmem:[%s7086_s1 + $0x680] ss:$8 sps:$4 sm:$0xff]  }
  0xd6   : > { %2287 = vmatpush1.bf16.msra.mxu1 %v5282_v26  ;;  %2247 = vmatprep.subr.bf16.mxu0 %v5287_v19  ;;  %v5372_v26 = vld [vmem:[%s7086_s1 + $0x780] ss:$8 sps:$4 sm:$0xff]   ;;  %v4392_v19 = vcombine.low %v6196_v23, %v6196_v23 }
  0xd7   : > { %2288 = vmatprep.subr.bf16.mxu1 %v5290_v20  ;;  %2277 = vmatprep.mubr.bf16.mxu0 %v4393_v27  ;;  %v4394_v20 = vcombine.low %v6199_v24, %v6199_v24 }
  0xd8   : > { %2318 = vmatprep.mubr.bf16.mxu1 %v4395_v28 }
  0xd9   : > { %2248 = vmatpush1.bf16.msra.mxu0 %v5285_v29 }
  0xda   : > { %2289 = vmatpush1.bf16.msra.mxu1 %v5288_v30  ;;  %2249 = vmatprep.subr.bf16.mxu0 %v5293_v31 }
  0xdb   : > { %2290 = vmatprep.subr.bf16.mxu1 %v5296_v32 }
  0xdd   : > { %2250 = vmatpush1.bf16.msra.mxu0 %v5291_v33 }
  0xde   : > { %2291 = vmatpush1.bf16.msra.mxu1 %v5294_v34  ;;  %2251 = vmatprep.subr.bf16.mxu0 %v5299_v35  ;;  %v5379_v35 = vld [vmem:[%s5580_s27 + $0x70] ss:$8 sps:$4 sm:$0xff]  }
  0xdf   : > { %2292 = vmatprep.subr.bf16.mxu1 %v5302_v36  ;;  %v5381_v36 = vld [vmem:[%s5580_s27 + $0x74] ss:$8 sps:$4 sm:$0xff]  }
  0xe1   : > { %2252 = vmatpush1.bf16.msra.mxu0 %v5297_v37  ;;  %v5384_v37 = vld [vmem:[%s5580_s27 + $0x64] ss:$8 sps:$4 sm:$0xff]  }
  0xe2   : > { %2293 = vmatpush1.bf16.msra.mxu1 %v5300_v38  ;;  %2253 = vmatprep.subr.bf16.mxu0 %v5305_v39  ;;  %v5382_v38 = vld [vmem:[%s5580_s27 + $0x60] ss:$8 sps:$4 sm:$0xff]   ;;  %v5387_v39 = vld [vmem:[%s5580_s27 + $0x54] ss:$8 sps:$4 sm:$0xff]  }
  0xe3   : > { %2294 = vmatprep.subr.bf16.mxu1 %v5308_v40  ;;  %v5385_v40 = vld [vmem:[%s5580_s27 + $0x50] ss:$8 sps:$4 sm:$0xff]  }
  0xe5   : > { %2254 = vmatpush1.bf16.msra.mxu0 %v5303_v41  ;;  %v5390_v41 = vld [vmem:[%s5580_s27 + $0x44] ss:$8 sps:$4 sm:$0xff]  }
  0xe6   : > { %2295 = vmatpush1.bf16.msra.mxu1 %v5306_v42  ;;  %2255 = vmatprep.subr.bf16.mxu0 %v5311_v43  ;;  %v5388_v42 = vld [vmem:[%s5580_s27 + $0x40] ss:$8 sps:$4 sm:$0xff]   ;;  %v5393_v43 = vld [vmem:[%s5580_s27 + $0x34] ss:$8 sps:$4 sm:$0xff]  }
  0xe7   : > { %2296 = vmatprep.subr.bf16.mxu1 %v5314_v44  ;;  %v5391_v44 = vld [vmem:[%s5580_s27 + $0x30] ss:$8 sps:$4 sm:$0xff]  }
  0xe9   : > { %2256 = vmatpush1.bf16.msra.mxu0 %v5309_v45  ;;  %v5396_v45 = vld [vmem:[%s5580_s27 + $0x24] ss:$8 sps:$4 sm:$0xff]  }
  0xea   : > { %2297 = vmatpush1.bf16.msra.mxu1 %v5312_v46  ;;  %2257 = vmatprep.subr.bf16.mxu0 %v5317_v47  ;;  %v5394_v46 = vld [vmem:[%s5580_s27 + $0x20] ss:$8 sps:$4 sm:$0xff]   ;;  %v5399_v47 = vld [vmem:[%s5580_s27 + $0x14] ss:$8 sps:$4 sm:$0xff]  }
  0xeb   : > { %2298 = vmatprep.subr.bf16.mxu1 %v5320_v48  ;;  %v5397_v48 = vld [vmem:[%s5580_s27 + $0x10] ss:$8 sps:$4 sm:$0xff]  }
  0xed   : > { %2258 = vmatpush1.bf16.msra.mxu0 %v5315_v49  ;;  %v5402_v49 = vld [vmem:[%s5580_s27 + $0x4] ss:$8 sps:$4 sm:$0xff]  }
  0xee   : > { %2299 = vmatpush1.bf16.msra.mxu1 %v5318_v50  ;;  %2259 = vmatprep.subr.bf16.mxu0 %v5323_v51  ;;  %v5400_v50 = vld [vmem:[%s5580_s27] ss:$8 sps:$4 sm:$0xff]   ;;  %v5405_v51 = vld [vmem:[%s5580_s27 + $0xf4] ss:$8 sps:$4 sm:$0xff]  }
  0xef   : > { %2300 = vmatprep.subr.bf16.mxu1 %v5326_v52  ;;  %v5403_v52 = vld [vmem:[%s5580_s27 + $0xf0] ss:$8 sps:$4 sm:$0xff]  }
  0xf1   : > { %2260 = vmatpush1.bf16.msra.mxu0 %v5321_v53  ;;  %v5408_v53 = vld [vmem:[%s5580_s27 + $0xe4] ss:$8 sps:$4 sm:$0xff]  }
  0xf2   : > { %2301 = vmatpush1.bf16.msra.mxu1 %v5324_v54  ;;  %2261 = vmatprep.subr.bf16.mxu0 %v5329_v55  ;;  %v5406_v54 = vld [vmem:[%s5580_s27 + $0xe0] ss:$8 sps:$4 sm:$0xff]   ;;  %v5411_v55 = vld [vmem:[%s5580_s27 + $0xd4] ss:$8 sps:$4 sm:$0xff]  }
  0xf3   : > { %2302 = vmatprep.subr.bf16.mxu1 %v5332_v56  ;;  %v5409_v56 = vld [vmem:[%s5580_s27 + $0xd0] ss:$8 sps:$4 sm:$0xff]  }
  0xf5   : > { %2262 = vmatpush2.bf16.msra.mxu0 %v5327_v57  ;;  %v5414_v57 = vld [vmem:[%s5580_s27 + $0xc4] ss:$8 sps:$4 sm:$0xff]  }
  0xf6   : > { %2303 = vmatpush2.bf16.msra.mxu1 %v5330_v58  ;;  %2263 = vmatprep.subr.bf16.mxu0 %v5335_v59  ;;  %v5412_v58 = vld [vmem:[%s5580_s27 + $0xc0] ss:$8 sps:$4 sm:$0xff]   ;;  %v5417_v59 = vld [vmem:[%s5580_s27 + $0xb4] ss:$8 sps:$4 sm:$0xff]  }
  0xf7   : > { %2304 = vmatprep.subr.bf16.mxu1 %v5338_v60 }
  0xf9   : > { %2264 = vmatpush2.bf16.msra.mxu0 %v5333_v61 }
  0xfa   : > { %2305 = vmatpush2.bf16.msra.mxu1 %v5336_v62  ;;  %2265 = vmatprep.subr.bf16.mxu0 %v5341_v63  ;;  %v5415_v62 = vld [vmem:[%s5580_s27 + $0xb0] ss:$8 sps:$4 sm:$0xff]  }
  0xfb   : > { %2306 = vmatprep.subr.bf16.mxu1 %v5344_v0 }
  0xfd   : > { %2266 = vmatpush2.bf16.msra.mxu0 %v5339_v1 }
  0xfe   : > { %2307 = vmatpush2.bf16.msra.mxu1 %v5342_v2  ;;  %2267 = vmatprep.subr.bf16.mxu0 %v5347_v3 }
  0xff   : > { %2308 = vmatprep.subr.bf16.mxu1 %v5350_v4  ;;  %v5420_v4 = vld [vmem:[%s5580_s27 + $0xa4] ss:$8 sps:$4 sm:$0xff]  }
 0x101   : > { %2268 = vmatpush2.bf16.msra.mxu0 %v5345_v5 }
 0x102   : > { %2309 = vmatpush2.bf16.msra.mxu1 %v5348_v6  ;;  %2269 = vmatprep.subr.bf16.mxu0 %v5353_v7  ;;  %v5418_v7 = vld [vmem:[%s5580_s27 + $0xa0] ss:$8 sps:$4 sm:$0xff]  }
 0x103   : > { %2310 = vmatprep.subr.bf16.mxu1 %v5356_v8 }
 0x105   : > { %2270 = vmatpush2.bf16.msra.mxu0 %v5351_v9 }
 0x106   : > { %2311 = vmatpush2.bf16.msra.mxu1 %v5354_v10  ;;  %2271 = vmatprep.subr.bf16.mxu0 %v5359_v11  ;;  %v5423_v11 = vld [vmem:[%s5580_s27 + $0x94] ss:$8 sps:$4 sm:$0xff]  }
 0x107   : > { %2312 = vmatprep.subr.bf16.mxu1 %v5362_v12  ;;  %v5421_v12 = vld [vmem:[%s5580_s27 + $0x90] ss:$8 sps:$4 sm:$0xff]  }
 0x109   : > { %2272 = vmatpush2.bf16.msra.mxu0 %v5357_v13  ;;  %v5426_v13 = vld [vmem:[%s5580_s27 + $0x84] ss:$8 sps:$4 sm:$0xff]  }
 0x10a   : > { %2313 = vmatpush2.bf16.msra.mxu1 %v5360_v14  ;;  %2273 = vmatprep.subr.bf16.mxu0 %v5365_v15  ;;  %v5424_v14 = vld [vmem:[%s5580_s27 + $0x80] ss:$8 sps:$4 sm:$0xff]  }
 0x10b   : > { %2314 = vmatprep.subr.bf16.mxu1 %v5368_v16 }
 0x10d   : > { %2274 = vmatpush2.bf16.msra.mxu0 %v5363_v17 }
 0x10e   : > { %2315 = vmatpush2.bf16.msra.mxu1 %v5366_v18  ;;  %2275 = vmatprep.subr.bf16.mxu0 %v5371_v21 }
 0x10f   : > { %2316 = vmatprep.subr.bf16.mxu1 %v5374_v22 }
 0x111   : > { %2276 = vmatpush2.bf16.msra.mxu0 %v5369_v25 }
 0x112   : > { %2317 = vmatpush2.bf16.msra.mxu1 %v5372_v26  ;;  %2557 = vmatprep.subr.bf16.mxu0 %v5381_v36 }
 0x114   : > { %v2033_v27 = vpop.f32.mrf.mxu0  ;;  %2278 = vmatmul.mubr.bf16.vlgmr.msra.gmra.mxu0 %v4392_v19 }
 0x115   : > { %v2074_v28 = vpop.f32.mrf.mxu1  ;;  %2319 = vmatmul.mubr.bf16.vlgmr.msra.gmra.mxu1 %v4394_v20  ;;  %2558 = vmatpush1.bf16.msra.mxu0 %v5379_v35 }
 0x116   : > { %v2075_v29 = vadd.f32 %v2074_v28, %v2033_v27  ;;  %v2035_v30 = vpop.f32.mrf.mxu0  ;;  %2559 = vmatprep.subr.bf16.mxu0 %v5384_v37  ;;  %v2329_v27 = vlaneseq }
 0x117   : > { %v2076_v31 = vpop.f32.mrf.mxu1 }
 0x118   : > { %v6395_v32 = vadd.f32 %v2076_v31, %v2035_v30  ;;  %v2037_v23 = vpop.f32.mrf.mxu0  ;;  %v6430_v28 = vshrl.u32 %v2329_v27, 7  ;;  %v2327_v31 = vld [vmem:[%s7087_s2] sm:$0x3] }
 0x119   : > { %v2078_v33 = vpop.f32.mrf.mxu1  ;;  %2560 = vmatpush1.bf16.msra.mxu0 %v5382_v38 }
 0x11a   : > { %v2038_v24 = vpop.f32.mrf.mxu0  ;;  %2561 = vmatprep.subr.bf16.mxu0 %v5387_v39  ;;  %v6433_v30 = vsub.s32 0, %v6430_v28 }
 0x11b   : > { %v2079_v34 = vpop.f32.mrf.mxu1  ;;  %v2341_v24 = vld [vmem:[%s7088_s3] sm:$0x3] }
 0x11c   : > { %v2332_v36 = vrot.slane %v2327_v31, %v6433_v30 }
 0x11d   : > { %2562 = vmatpush1.bf16.msra.mxu0 %v5385_v40  ;;  %v2346_v40 = vrot.slane %v2341_v24, %v6433_v30 }
 0x11e   : > { %2563 = vmatprep.subr.bf16.mxu0 %v5390_v41 }
 0x121   : > { %2564 = vmatpush1.bf16.msra.mxu0 %v5388_v42 }
 0x122   : > { %2565 = vmatprep.subr.bf16.mxu0 %v5393_v43 }
 0x125   : > { %2566 = vmatpush1.bf16.msra.mxu0 %v5391_v44 }
 0x126   : > { %2567 = vmatprep.subr.bf16.mxu0 %v5396_v45 }
 0x129   : > { %2568 = vmatpush1.bf16.msra.mxu0 %v5394_v46 }
 0x12a   : > { %2569 = vmatprep.subr.bf16.mxu0 %v5399_v47 }
 0x12d   : > { %2570 = vmatpush1.bf16.msra.mxu0 %v5397_v48 }
 0x12e   : > { %2571 = vmatprep.subr.bf16.mxu0 %v5402_v49 }
 0x131   : > { %2572 = vmatpush1.bf16.msra.mxu0 %v5400_v50 }
 0x132   : > { %2573 = vmatprep.subr.bf16.mxu0 %v5405_v51 }
 0x135   : > { %2574 = vmatpush2.bf16.msra.mxu0 %v5403_v52 }
 0x136   : > { %2575 = vmatprep.subr.bf16.mxu0 %v5408_v53 }
 0x139   : > { %2576 = vmatpush2.bf16.msra.mxu0 %v5406_v54 }
 0x13a   : > { %2577 = vmatprep.subr.bf16.mxu0 %v5411_v55 }
 0x13d   : > { %2578 = vmatpush2.bf16.msra.mxu0 %v5409_v56 }
 0x13e   : > { %2579 = vmatprep.subr.bf16.mxu0 %v5414_v57 }
 0x141   : > { %2580 = vmatpush2.bf16.msra.mxu0 %v5412_v58 }
 0x142   : > { %2581 = vmatprep.subr.bf16.mxu0 %v5417_v59  ;;  %v2361_v59 = vld [vmem:[#allocation2] sm:$0xff] }
 0x145   : > { %2582 = vmatpush2.bf16.msra.mxu0 %v5415_v62 }
 0x146   : > { %2583 = vmatprep.subr.bf16.mxu0 %v5420_v4 }
 0x149   : > { %2584 = vmatpush2.bf16.msra.mxu0 %v5418_v7 }
 0x14a   : > { %2585 = vmatprep.subr.bf16.mxu0 %v5423_v11 }
 0x14d   : > { %2586 = vmatpush2.bf16.msra.mxu0 %v5421_v12 }
 0x14e   : > { %2587 = vmatprep.subr.bf16.mxu0 %v5426_v13 }
 0x151   : > { %2588 = vmatpush2.bf16.msra.mxu0 %v5424_v14 }
 0x154   : > { %v2115_v60 = vpop.f32.mrf.mxu0 }
 0x155   : > { %v2156_v61 = vpop.f32.mrf.mxu1  ;;  %v2116_v63 = vadd.f32 %v2115_v60, %v2075_v29 }
 0x156   : > { %v2117_v0 = vpop.f32.mrf.mxu0 }
 0x157   : > { %v2158_v1 = vpop.f32.mrf.mxu1  ;;  %v2157_v2 = vadd.f32 %v2156_v61, %v2116_v63  ;;  %v2118_v3 = vadd.f32 %v2117_v0, %v6395_v32  ;;  %v6439_v32 = vsub.s32 1, %v6430_v28  ;;  %v2362_v61 = vld [vmem:[#allocation2 + $0x8] sm:$0xff] }
 0x158   : > { %v2119_v5 = vpop.f32.mrf.mxu0 }
 0x159   : > { %v2160_v6 = vpop.f32.mrf.mxu1  ;;  %v2159_v8 = vadd.f32 %v2158_v1, %v2118_v3  ;;  %v2336_v42 = vrot.slane %v2327_v31, %v6439_v32  ;;  %v2350_v47 = vrot.slane %v2341_v24, %v6439_v32 }
 0x15a   : > { %v2120_v9 = vpop.f32.mrf.mxu0 }
 0x15b   : > { %v2161_v10 = vpop.f32.mrf.mxu1 }
 0x194   : > { %v2197_v15 = vpop.f32.mrf.mxu0 }
 0x195   : > { %v2238_v16 = vpop.f32.mrf.mxu1  ;;  %v2198_v17 = vadd.f32 %v2197_v15, %v2157_v2 }
 0x196   : > { %v2199_v18 = vpop.f32.mrf.mxu0 }
 0x197   : > { %v2240_v21 = vpop.f32.mrf.mxu1  ;;  %v2239_v22 = vadd.f32 %v2238_v16, %v2198_v17  ;;  %v2200_v29 = vadd.f32 %v2199_v18, %v2159_v8 }
 0x198   : > { %v2201_v25 = vpop.f32.mrf.mxu0 }
 0x199   : > { %v2242_v26 = vpop.f32.mrf.mxu1  ;;  %v2241_v34 = vadd.f32 %v2240_v21, %v2200_v29 }
 0x19a   : > { %v2202_v19 = vpop.f32.mrf.mxu0 }
 0x19b   : > { %v2243_v20 = vpop.f32.mrf.mxu1 }
 0x1d4   : > { %v2279_v23 = vpop.f32.mrf.mxu0 }
 0x1d5   : > { %v2320_v33 = vpop.f32.mrf.mxu1  ;;  %v2280_v35 = vadd.f32 %v2279_v23, %v2239_v22 }
 0x1d6   : > { %v2281_v37 = vpop.f32.mrf.mxu0 }
 0x1d7   : > { %v2322_v38 = vpop.f32.mrf.mxu1  ;;  %v2321_v39 = vadd.f32 %v2320_v33, %v2280_v35  ;;  %v2282_v41 = vadd.f32 %v2281_v37, %v2241_v34 }
 0x1d8   : > { %v2283_v43 = vpop.f32.mrf.mxu0 }
 0x1d9   : > { %v2324_v44 = vpop.f32.mrf.mxu1  ;;  %v2339_v45 = vmul.f32 %v2332_v36, %v2321_v39  ;;  %v2323_v46 = vadd.f32 %v2322_v38, %v2282_v41 }
 0x1da   : > { %v2284_v48 = vpop.f32.mrf.mxu0 }
 0x1db   : > { %v2325_v49 = vpop.f32.mrf.mxu1  ;;  %v2353_v50 = vadd.f32 %v2346_v40, %v2339_v45  ;;  %v2340_v51 = vmul.f32 %v2336_v42, %v2323_v46 }
 0x1dd   : > { %vm2355_vm0 = vcmp.ge.f32.partialorder %v2353_v50, 0.0  ;;  %v2357_v52 = vmul.f32 0.2, %v2353_v50  ;;  %v2354_v53 = vadd.f32 %v2350_v47, %v2340_v51 }
 0x1df   : > { %vm2356_vm1 = vcmp.ge.f32.partialorder %v2354_v53, 0.0  ;;  %v2358_v54 = vmul.f32 0.2, %v2354_v53  ;;  %v2359_v55 = vsel %vm2355_vm0, %v2353_v50, %v2357_v52 }
 0x1e0   : > { %v2363_v58 = vpack.c.bf16 %v2359_v55, %v2359_v55 }
 0x1e1   : > { %v2360_v56 = vsel %vm2356_vm1, %v2354_v53, %v2358_v54 }
 0x1e2   : > { %v2364_v57 = vpack.c.bf16 %v2360_v56, %v2360_v56 }
 0x1e4   : > { %2589 = vmatprep.mubr.bf16.mxu0 %v2364_v57 }
 0x1e5   : > { %2590 = vmatmul.mubr.bf16.vlgmr.msra.gmra.mxu0 %v2363_v58 }
 0x2a5   : > { %v2591_v60 = vpop.f32.mrf.mxu0 }
 0x2a6   : > { %v2598_v62 = vadd.f32 %v2591_v60, %v2361_v59 }
 0x2a7   : > { %v2593_v63 = vpop.f32.mrf.mxu0  ;;  %2605 = sbr.rel (%p4684_p5) target bundleno = 1221 (0x4c5), region = 72 }
 0x2a8   : > { %2600 = vst [vmem:[#allocation2] sm:$0xff] %v2598_v62  ;;  %v2599_v0 = vadd.f32 %v2593_v63, %v2362_v61 }
 0x2a9   : > { %v2595_v1 = vpop.f32.mrf.mxu0 }
 0x2aa   : > { %2601 = vst [vmem:[#allocation2 + $0x8] sm:$0xff] %v2599_v0 }
 0x2ab   : > { %v2596_v2 = vpop.f32.mrf.mxu0 }
 0x2ac   : > { %v2700_v3 = vld [vmem:[%s7092_s7 + $0x1c0] sm:$0xff]  ;;  %v2701_v5 = vld [vmem:[%s7092_s7 + $0x1c8] sm:$0xff]  ;;  %vm4329_vm12 = vcmask 523264  }
 0x2ad   : > { %v2704_v4 = vld [vmem:[%s7092_s7 + $0x1e0] sm:$0xff]  ;;  %v2705_v7 = vld [vmem:[%s7092_s7 + $0x1e8] sm:$0xff] }
 0x2ae   : > { %v4742_v6 = vcombine.high %v2700_v3, %v2704_v4  ;;  %v4741_v8 = vcombine.low %v2700_v3, %v2704_v4  ;;  %v2692_v9 = vld [vmem:[%s7092_s7 + $0x180] sm:$0xff]  ;;  %v4744_v11 = vcombine.high %v2701_v5, %v2705_v7  ;;  %v4743_v12 = vcombine.low %v2701_v5, %v2705_v7  ;;  %v2693_v14 = vld [vmem:[%s7092_s7 + $0x188] sm:$0xff] }
 0x2af   : > { %v2696_v10 = vld [vmem:[%s7092_s7 + $0x1a0] sm:$0xff]  ;;  %v2697_v15 = vld [vmem:[%s7092_s7 + $0x1a8] sm:$0xff] }
 0x2b0   : > { %v4734_v13 = vcombine.high %v2692_v9, %v2696_v10  ;;  %v2684_v16 = vld [vmem:[%s7092_s7 + $0x140] sm:$0xff]  ;;  %3454 = vmatprep.subr.bf16.mxu0 %v4742_v6  ;;  %v4736_v17 = vcombine.high %v2693_v14, %v2697_v15  ;;  %v2685_v21 = vld [vmem:[%s7092_s7 + $0x148] sm:$0xff]  ;;  %3495 = vmatprep.subr.bf16.mxu1 %v4744_v11  ;;  %v4733_v25 = vcombine.low %v2692_v9, %v2696_v10 }
 0x2b1   : > { %v2688_v18 = vld [vmem:[%s7092_s7 + $0x160] sm:$0xff]  ;;  %v2689_v22 = vld [vmem:[%s7092_s7 + $0x168] sm:$0xff]  ;;  %3455 = vmatpush1.bf16.msra.mxu0 %v4741_v8  ;;  %3496 = vmatpush1.bf16.msra.mxu1 %v4743_v12  ;;  %v4735_v26 = vcombine.low %v2693_v14, %v2697_v15 }
 0x2b2   : > { %3456 = vmatprep.subr.bf16.mxu0 %v4734_v13  ;;  %v4726_v19 = vcombine.high %v2684_v16, %v2688_v18  ;;  %3497 = vmatprep.subr.bf16.mxu1 %v4736_v17  ;;  %v4728_v20 = vcombine.high %v2685_v21, %v2689_v22  ;;  %v2676_v27 = vld [vmem:[%s7092_s7 + $0x100] sm:$0xff]  ;;  %v2677_v31 = vld [vmem:[%s7092_s7 + $0x108] sm:$0xff]  ;;  %v4725_v33 = vcombine.low %v2684_v16, %v2688_v18 }
 0x2b3   : > { %v2680_v29 = vld [vmem:[%s7092_s7 + $0x120] sm:$0xff]  ;;  %v2681_v23 = vld [vmem:[%s7092_s7 + $0x128] sm:$0xff]  ;;  %v4727_v24 = vcombine.low %v2685_v21, %v2689_v22 }
 0x2b4   : > { %v4718_v34 = vcombine.high %v2676_v27, %v2680_v29  ;;  %v4720_v35 = vcombine.high %v2677_v31, %v2681_v23  ;;  %v2668_v36 = vld [vmem:[%s7092_s7 + $0xc0] sm:$0xff]  ;;  %v2669_v38 = vld [vmem:[%s7092_s7 + $0xc8] sm:$0xff]  ;;  %v4717_v40 = vcombine.low %v2676_v27, %v2680_v29  ;;  %v4719_v41 = vcombine.low %v2677_v31, %v2681_v23 }
 0x2b5   : > { %3457 = vmatpush1.bf16.msra.mxu0 %v4733_v25  ;;  %3498 = vmatpush1.bf16.msra.mxu1 %v4735_v26  ;;  %v2672_v37 = vld [vmem:[%s7092_s7 + $0xe0] sm:$0xff]  ;;  %v2673_v39 = vld [vmem:[%s7092_s7 + $0xe8] sm:$0xff] }
 0x2b6   : > { %3458 = vmatprep.subr.bf16.mxu0 %v4726_v19  ;;  %3499 = vmatprep.subr.bf16.mxu1 %v4728_v20  ;;  %v4710_v42 = vcombine.high %v2668_v36, %v2672_v37  ;;  %v4712_v43 = vcombine.high %v2669_v38, %v2673_v39  ;;  %v2660_v44 = vld [vmem:[%s7092_s7 + $0x80] sm:$0xff]  ;;  %v2661_v46 = vld [vmem:[%s7092_s7 + $0x88] sm:$0xff]  ;;  %v4709_v48 = vcombine.low %v2668_v36, %v2672_v37 }
 0x2b7   : > { %v2664_v45 = vld [vmem:[%s7092_s7 + $0xa0] sm:$0xff]  ;;  %v2665_v47 = vld [vmem:[%s7092_s7 + $0xa8] sm:$0xff]  ;;  %v4711_v49 = vcombine.low %v2669_v38, %v2673_v39 }
 0x2b8   : > { %v4702_v50 = vcombine.high %v2660_v44, %v2664_v45  ;;  %v4704_v51 = vcombine.high %v2661_v46, %v2665_v47  ;;  %v2652_v52 = vld [vmem:[%s7092_s7 + $0x40] sm:$0xff]  ;;  %v2653_v54 = vld [vmem:[%s7092_s7 + $0x48] sm:$0xff]  ;;  %v4701_v56 = vcombine.low %v2660_v44, %v2664_v45  ;;  %v4703_v57 = vcombine.low %v2661_v46, %v2665_v47 }
 0x2b9   : > { %3459 = vmatpush1.bf16.msra.mxu0 %v4725_v33  ;;  %3500 = vmatpush1.bf16.msra.mxu1 %v4727_v24  ;;  %v2656_v53 = vld [vmem:[%s7092_s7 + $0x60] sm:$0xff]  ;;  %v2657_v55 = vld [vmem:[%s7092_s7 + $0x68] sm:$0xff] }
 0x2ba   : > { %3460 = vmatprep.subr.bf16.mxu0 %v4718_v34  ;;  %3501 = vmatprep.subr.bf16.mxu1 %v4720_v35  ;;  %v4694_v58 = vcombine.high %v2652_v52, %v2656_v53  ;;  %v2607_v59 = vld [vmem:[#allocation2 + $0x8] sm:$0xff]  ;;  %v6536_v60 = vld [vmem:[%s7090_s5] sm:$0x3]  ;;  %v4696_v61 = vcombine.high %v2653_v54, %v2657_v55  ;;  %v4693_v5 = vcombine.low %v2652_v52, %v2656_v53 }
 0x2bb   : > { %v2644_v62 = vld [vmem:[%s7092_s7] sm:$0xff]  ;;  %v2617_v0 = vrot.slane %v6536_v60, %v6439_v32  ;;  %v2645_v2 = vld [vmem:[%s7092_s7 + $0x8] sm:$0xff]  ;;  %v4695_v7 = vcombine.low %v2653_v54, %v2657_v55 }
 0x2bc   : > { %v2648_v63 = vld [vmem:[%s7092_s7 + $0x20] sm:$0xff]  ;;  %v2649_v3 = vld [vmem:[%s7092_s7 + $0x28] sm:$0xff] }
 0x2bd   : > { %3461 = vmatpush1.bf16.msra.mxu0 %v4717_v40  ;;  %3502 = vmatpush1.bf16.msra.mxu1 %v4719_v41  ;;  %v6549_v1 = vld [vmem:[%s7091_s6] sm:$0x3]  ;;  %v2621_v6 = vmul.f32 %v2617_v0, %v2607_v59  ;;  %v4686_v8 = vcombine.high %v2644_v62, %v2648_v63  ;;  %v4688_v9 = vcombine.high %v2645_v2, %v2649_v3  ;;  %v2765_v13 = vld [vmem:[%s7092_s7 + $0x3c8] sm:$0xff] }
 0x2be   : > { %3462 = vmatprep.subr.bf16.mxu0 %v4710_v42  ;;  %3503 = vmatprep.subr.bf16.mxu1 %v4712_v43  ;;  %v2631_v4 = vrot.slane %v6549_v1, %v6439_v32  ;;  %v2764_v10 = vld [vmem:[%s7092_s7 + $0x3c0] sm:$0xff]  ;;  %v2769_v14 = vld [vmem:[%s7092_s7 + $0x3e8] sm:$0xff]  ;;  %v4685_v15 = vcombine.low %v2644_v62, %v2648_v63  ;;  %v4687_v17 = vcombine.low %v2645_v2, %v2649_v3 }
 0x2bf   : > { %v2768_v11 = vld [vmem:[%s7092_s7 + $0x3e0] sm:$0xff]  ;;  %v4808_v21 = vcombine.high %v2765_v13, %v2769_v14  ;;  %v2757_v19 = vld [vmem:[%s7092_s7 + $0x388] sm:$0xff]  ;;  %v4807_v31 = vcombine.low %v2765_v13, %v2769_v14  ;;  %v2627_v3 = vrot.slane %v6549_v1, %v6433_v30 }
 0x2c0   : > { %v2635_v12 = vadd.f32 %v2631_v4, %v2621_v6  ;;  %v4806_v18 = vcombine.high %v2764_v10, %v2768_v11  ;;  %v2756_v22 = vld [vmem:[%s7092_s7 + $0x380] sm:$0xff]  ;;  %v2761_v20 = vld [vmem:[%s7092_s7 + $0x3a8] sm:$0xff]  ;;  %v4805_v29 = vcombine.low %v2764_v10, %v2768_v11 }
 0x2c1   : > { %3463 = vmatpush1.bf16.msra.mxu0 %v4709_v48  ;;  %3504 = vmatpush1.bf16.msra.mxu1 %v4711_v49  ;;  %v2760_v25 = vld [vmem:[%s7092_s7 + $0x3a0] sm:$0xff]  ;;  %v4800_v33 = vcombine.high %v2757_v19, %v2761_v20  ;;  %v2749_v35 = vld [vmem:[%s7092_s7 + $0x348] sm:$0xff]  ;;  %v4799_v38 = vcombine.low %v2757_v19, %v2761_v20  ;;  %v2706_v19 = vld [vmem:[%s7092_s7 + $0x1f0] sm:$0xff] }
 0x2c2   : > { %3464 = vmatprep.subr.bf16.mxu0 %v4702_v50  ;;  %3505 = vmatprep.subr.bf16.mxu1 %v4704_v51  ;;  %vm2637_vm2 = vcmp.ge.f32.partialorder %v2635_v12, 0.0  ;;  %v2639_v16 = vmul.f32 0.2, %v2635_v12  ;;  %v4798_v23 = vcombine.high %v2756_v22, %v2760_v25  ;;  %v2748_v24 = vld [vmem:[%s7092_s7 + $0x340] sm:$0xff]  ;;  %v2753_v36 = vld [vmem:[%s7092_s7 + $0x368] sm:$0xff]  ;;  %v4797_v37 = vcombine.low %v2756_v22, %v2760_v25  ;;  %v2702_v22 = vld [vmem:[%s7092_s7 + $0x1d0] sm:$0xff] }
 0x2c3   : > { %v2752_v34 = vld [vmem:[%s7092_s7 + $0x360] sm:$0xff]  ;;  %v4792_v40 = vcombine.high %v2749_v35, %v2753_v36  ;;  %v2741_v43 = vld [vmem:[%s7092_s7 + $0x308] sm:$0xff]  ;;  %v4791_v46 = vcombine.low %v2749_v35, %v2753_v36  ;;  %v4746_v35 = vcombine.high %v2702_v22, %v2706_v19  ;;  %v2698_v36 = vld [vmem:[%s7092_s7 + $0x1b0] sm:$0xff] }
 0x2c4   : > { %v2641_v26 = vsel %vm2637_vm2, %v2635_v12, %v2639_v16  ;;  %v4790_v39 = vcombine.high %v2748_v24, %v2752_v34  ;;  %v2740_v41 = vld [vmem:[%s7092_s7 + $0x300] sm:$0xff]  ;;  %v2745_v44 = vld [vmem:[%s7092_s7 + $0x328] sm:$0xff]  ;;  %v4789_v45 = vcombine.low %v2748_v24, %v2752_v34  ;;  %v2694_v24 = vld [vmem:[%s7092_s7 + $0x190] sm:$0xff] }
 0x2c5   : > { %3465 = vmatpush1.bf16.msra.mxu0 %v4701_v56  ;;  %3506 = vmatpush1.bf16.msra.mxu1 %v4703_v57  ;;  %v6583_v27 = vpack.c.bf16 %v2641_v26, %v2641_v26  ;;  %v2744_v42 = vld [vmem:[%s7092_s7 + $0x320] sm:$0xff]  ;;  %v4784_v48 = vcombine.high %v2741_v43, %v2745_v44  ;;  %v2733_v51 = vld [vmem:[%s7092_s7 + $0x2c8] sm:$0xff]  ;;  %v2613_v56 = vrot.slane %v6536_v60, %v6433_v30 }
 0x2c6   : > { %3466 = vmatprep.subr.bf16.mxu0 %v4694_v58  ;;  %3507 = vmatprep.subr.bf16.mxu1 %v4696_v61  ;;  %v4782_v47 = vcombine.high %v2740_v41, %v2744_v42  ;;  %v2732_v49 = vld [vmem:[%s7092_s7 + $0x2c0] sm:$0xff]  ;;  %v2737_v52 = vld [vmem:[%s7092_s7 + $0x2e8] sm:$0xff]  ;;  %v4781_v53 = vcombine.low %v2740_v41, %v2744_v42  ;;  %v4783_v57 = vcombine.low %v2741_v43, %v2745_v44  ;;  %v2686_v42 = vld [vmem:[%s7092_s7 + $0x150] sm:$0xff] }
 0x2c7   : > { %3486 = vmatprep.mubr.bf16.mxu0 %v6583_v27  ;;  %3527 = vmatprep.mubr.bf16.mxu1 %v6583_v27  ;;  %v2736_v50 = vld [vmem:[%s7092_s7 + $0x2e0] sm:$0xff]  ;;  %v4776_v61 = vcombine.high %v2733_v51, %v2737_v52  ;;  %v2725_v62 = vld [vmem:[%s7092_s7 + $0x288] sm:$0xff]  ;;  %v4775_v4 = vcombine.low %v2733_v51, %v2737_v52  ;;  %v4745_v41 = vcombine.low %v2702_v22, %v2706_v19  ;;  %v2682_v51 = vld [vmem:[%s7092_s7 + $0x130] sm:$0xff] }
 0x2c8   : > { %v2724_v54 = vld [vmem:[%s7092_s7 + $0x280] sm:$0xff]  ;;  %v4774_v58 = vcombine.high %v2732_v49, %v2736_v50  ;;  %v2729_v63 = vld [vmem:[%s7092_s7 + $0x2a8] sm:$0xff]  ;;  %v4773_v0 = vcombine.low %v2732_v49, %v2736_v50  ;;  %v4738_v44 = vcombine.high %v2694_v24, %v2698_v36  ;;  %v4737_v49 = vcombine.low %v2694_v24, %v2698_v36  ;;  %v2678_v50 = vld [vmem:[%s7092_s7 + $0x110] sm:$0xff] }
 0x2c9   : > { %3467 = vmatpush1.bf16.msra.mxu0 %v4693_v5  ;;  %3508 = vmatpush1.bf16.msra.mxu1 %v4695_v7  ;;  %v2728_v55 = vld [vmem:[%s7092_s7 + $0x2a0] sm:$0xff]  ;;  %v4768_v7 = vcombine.high %v2725_v62, %v2729_v63  ;;  %v4767_v12 = vcombine.low %v2725_v62, %v2729_v63  ;;  %v2709_v16 = vld [vmem:[%s7092_s7 + $0x208] sm:$0xff]  ;;  %v4722_v62 = vcombine.high %v2678_v50, %v2682_v51  ;;  %v2671_v63 = vld [vmem:[%s7092_s7 + $0xd8] sm:$0xff] }
 0x2ca   : > { %3468 = vmatprep.subr.bf16.mxu0 %v4686_v8  ;;  %3509 = vmatprep.subr.bf16.mxu1 %v4688_v9  ;;  %v2606_v59 = vld [vmem:[#allocation2] sm:$0xff]  ;;  %v4766_v5 = vcombine.high %v2724_v54, %v2728_v55  ;;  %v2717_v8 = vld [vmem:[%s7092_s7 + $0x248] sm:$0xff]  ;;  %v4765_v1 = vcombine.low %v2724_v54, %v2728_v55  ;;  %v2679_v54 = vld [vmem:[%s7092_s7 + $0x118] sm:$0xff] }
 0x2cb   : > { %v2716_v60 = vld [vmem:[%s7092_s7 + $0x240] sm:$0xff]  ;;  %v2620_v2 = vmul.f32 %v2613_v56, %v2606_v59  ;;  %v2721_v9 = vld [vmem:[%s7092_s7 + $0x268] sm:$0xff]  ;;  %v2683_v55 = vld [vmem:[%s7092_s7 + $0x138] sm:$0xff] }
 0x2cc   : > { %v2720_v6 = vld [vmem:[%s7092_s7 + $0x260] sm:$0xff]  ;;  %v4759_v25 = vcombine.low %v2717_v8, %v2721_v9  ;;  %v2674_v59 = vld [vmem:[%s7092_s7 + $0xf0] sm:$0xff]  ;;  %v2767_v24 = vld [vmem:[%s7092_s7 + $0x3d8] sm:$0xff] }
 0x2cd   : > { %3469 = vmatpush1.bf16.msra.mxu0 %v4685_v15  ;;  %3510 = vmatpush1.bf16.msra.mxu1 %v4687_v17  ;;  %v2708_v10 = vld [vmem:[%s7092_s7 + $0x200] sm:$0xff]  ;;  %v2634_v11 = vadd.f32 %v2627_v3, %v2620_v2  ;;  %v4758_v13 = vcombine.high %v2716_v60, %v2720_v6  ;;  %v4760_v15 = vcombine.high %v2717_v8, %v2721_v9  ;;  %v2713_v17 = vld [vmem:[%s7092_s7 + $0x228] sm:$0xff]  ;;  %v2662_v2 = vld [vmem:[%s7092_s7 + $0x90] sm:$0xff] }
 0x2ce   : > { %3470 = vmatprep.subr.bf16.mxu0 %v4806_v18  ;;  %3511 = vmatprep.subr.bf16.mxu1 %v4808_v21  ;;  %v2712_v14 = vld [vmem:[%s7092_s7 + $0x220] sm:$0xff]  ;;  %v4757_v18 = vcombine.low %v2716_v60, %v2720_v6  ;;  %v4752_v20 = vcombine.high %v2709_v16, %v2713_v17  ;;  %v4751_v34 = vcombine.low %v2709_v16, %v2713_v17  ;;  %v2666_v3 = vld [vmem:[%s7092_s7 + $0xb0] sm:$0xff]  ;;  %v2663_v6 = vld [vmem:[%s7092_s7 + $0x98] sm:$0xff] }
 0x2cf   : > { %v2638_v21 = vmul.f32 0.2, %v2634_v11  ;;  %v4750_v26 = vcombine.high %v2708_v10, %v2712_v14  ;;  %vm2636_vm3 = vcmp.ge.f32.partialorder %v2634_v11, 0.0  ;;  %v4721_v60 = vcombine.low %v2678_v50, %v2682_v51  ;;  %v2646_v17 = vld [vmem:[%s7092_s7 + $0x10] sm:$0xff]  ;;  %v2751_v51 = vld [vmem:[%s7092_s7 + $0x358] sm:$0xff] }
 0x2d0   : > { %v4705_v16 = vcombine.low %v2662_v2, %v2666_v3  ;;  %v2754_v50 = vld [vmem:[%s7092_s7 + $0x370] sm:$0xff] }
 0x2d1   : > { %3471 = vmatpush2.bf16.msra.mxu0 %v4805_v29  ;;  %3512 = vmatpush2.bf16.msra.mxu1 %v4807_v31  ;;  %v2703_v29 = vld [vmem:[%s7092_s7 + $0x1d8] sm:$0xff] }
 0x2d2   : > { %3472 = vmatprep.subr.bf16.mxu0 %v4798_v23  ;;  %3513 = vmatprep.subr.bf16.mxu1 %v4800_v33  ;;  %v2707_v31 = vld [vmem:[%s7092_s7 + $0x1f8] sm:$0xff]  ;;  %v4749_v23 = vcombine.low %v2708_v10, %v2712_v14  ;;  %v2640_v33 = vsel %vm2636_vm3, %v2634_v11, %v2638_v21  ;;  %v2658_v10 = vld [vmem:[%s7092_s7 + $0x70] sm:$0xff] }
 0x2d3   : > { %v4747_v43 = vcombine.low %v2703_v29, %v2707_v31  ;;  %v2659_v14 = vld [vmem:[%s7092_s7 + $0x78] sm:$0xff] }
 0x2d5   : > { %3473 = vmatpush2.bf16.msra.mxu0 %v4797_v37  ;;  %3514 = vmatpush2.bf16.msra.mxu1 %v4799_v38  ;;  %v4748_v37 = vcombine.high %v2703_v29, %v2707_v31  ;;  %v2695_v38 = vld [vmem:[%s7092_s7 + $0x198] sm:$0xff]  ;;  %v2766_v29 = vld [vmem:[%s7092_s7 + $0x3d0] sm:$0xff] }
 0x2d6   : > { %3474 = vmatprep.subr.bf16.mxu0 %v4790_v39  ;;  %3515 = vmatprep.subr.bf16.mxu1 %v4792_v40  ;;  %v6684_v39 = vpack.c.bf16 %v2640_v33, %v2640_v33  ;;  %v2699_v40 = vld [vmem:[%s7092_s7 + $0x1b8] sm:$0xff]  ;;  %v2770_v31 = vld [vmem:[%s7092_s7 + $0x3f0] sm:$0xff] }
 0x2d7   : > { %v4739_v52 = vcombine.low %v2695_v38, %v2699_v40 }
 0x2d9   : > { %3475 = vmatpush2.bf16.msra.mxu0 %v4789_v45  ;;  %3516 = vmatpush2.bf16.msra.mxu1 %v4791_v46  ;;  %v2690_v45 = vld [vmem:[%s7092_s7 + $0x170] sm:$0xff]  ;;  %v4740_v46 = vcombine.high %v2695_v38, %v2699_v40 }
 0x2da   : > { %3476 = vmatprep.subr.bf16.mxu0 %v4782_v47  ;;  %3517 = vmatprep.subr.bf16.mxu1 %v4784_v48  ;;  %v2687_v47 = vld [vmem:[%s7092_s7 + $0x158] sm:$0xff]  ;;  %v2762_v38 = vld [vmem:[%s7092_s7 + $0x3b0] sm:$0xff] }
 0x2db   : > { %v2691_v48 = vld [vmem:[%s7092_s7 + $0x178] sm:$0xff] }
 0x2dc   : > { %v4732_v56 = vcombine.high %v2687_v47, %v2691_v48 }
 0x2dd   : > { %3477 = vmatpush2.bf16.msra.mxu0 %v4781_v53  ;;  %3518 = vmatpush2.bf16.msra.mxu1 %v4783_v57  ;;  %v4730_v53 = vcombine.high %v2686_v42, %v2690_v45  ;;  %v4729_v57 = vcombine.low %v2686_v42, %v2690_v45  ;;  %v4809_v45 = vcombine.low %v2766_v29, %v2770_v31 }
 0x2de   : > { %3478 = vmatprep.subr.bf16.mxu0 %v4774_v58  ;;  %3519 = vmatprep.subr.bf16.mxu1 %v4776_v61  ;;  %v2670_v58 = vld [vmem:[%s7092_s7 + $0xd0] sm:$0xff]  ;;  %v4731_v61 = vcombine.low %v2687_v47, %v2691_v48 }
 0x2df   : > { %v4713_v9 = vcombine.low %v2670_v58, %v2674_v59 }
 0x2e1   : > { %3479 = vmatpush2.bf16.msra.mxu0 %v4773_v0  ;;  %3520 = vmatpush2.bf16.msra.mxu1 %v4775_v4  ;;  %v4724_v0 = vcombine.high %v2679_v54, %v2683_v55  ;;  %v4723_v4 = vcombine.low %v2679_v54, %v2683_v55 }
 0x2e2   : > { %3480 = vmatprep.subr.bf16.mxu0 %v4766_v5  ;;  %3521 = vmatprep.subr.bf16.mxu1 %v4768_v7  ;;  %v4714_v5 = vcombine.high %v2670_v58, %v2674_v59  ;;  %v2667_v7 = vld [vmem:[%s7092_s7 + $0xb8] sm:$0xff]  ;;  %v2746_v58 = vld [vmem:[%s7092_s7 + $0x330] sm:$0xff] }
 0x2e3   : > { %v4707_v21 = vcombine.low %v2663_v6, %v2667_v7  ;;  %v2743_v59 = vld [vmem:[%s7092_s7 + $0x318] sm:$0xff] }
 0x2e5   : > { %3481 = vmatpush2.bf16.msra.mxu0 %v4765_v1  ;;  %3522 = vmatpush2.bf16.msra.mxu1 %v4767_v12  ;;  %v2654_v1 = vld [vmem:[%s7092_s7 + $0x50] sm:$0xff]  ;;  %v4706_v12 = vcombine.high %v2662_v2, %v2666_v3  ;;  %v2735_v3 = vld [vmem:[%s7092_s7 + $0x2d8] sm:$0xff] }
 0x2e6   : > { %3482 = vmatprep.subr.bf16.mxu0 %v4758_v13  ;;  %3523 = vmatprep.subr.bf16.mxu1 %v4760_v15  ;;  %v2655_v13 = vld [vmem:[%s7092_s7 + $0x58] sm:$0xff]  ;;  %v4708_v15 = vcombine.high %v2663_v6, %v2667_v7  ;;  %v4698_v22 = vcombine.high %v2654_v1, %v2658_v10  ;;  %v2738_v2 = vld [vmem:[%s7092_s7 + $0x2f0] sm:$0xff] }
 0x2e7   : > { %v4700_v19 = vcombine.high %v2655_v13, %v2659_v14 }
 0x2e9   : > { %3483 = vmatpush2.bf16.msra.mxu0 %v4757_v18  ;;  %3524 = vmatpush2.bf16.msra.mxu1 %v4759_v25  ;;  %v2650_v18 = vld [vmem:[%s7092_s7 + $0x30] sm:$0xff]  ;;  %v2647_v25 = vld [vmem:[%s7092_s7 + $0x18] sm:$0xff] }
 0x2ea   : > { %3484 = vmatprep.subr.bf16.mxu0 %v4750_v26  ;;  %3525 = vmatprep.subr.bf16.mxu1 %v4752_v20  ;;  %v2651_v26 = vld [vmem:[%s7092_s7 + $0x38] sm:$0xff]  ;;  %v4697_v20 = vcombine.low %v2654_v1, %v2658_v10  ;;  %v4690_v33 = vcombine.high %v2646_v17, %v2650_v18  ;;  %v4689_v36 = vcombine.low %v2646_v17, %v2650_v18  ;;  %v2730_v1 = vld [vmem:[%s7092_s7 + $0x2b0] sm:$0xff] }
 0x2eb   : > { %v4691_v40 = vcombine.low %v2647_v25, %v2651_v26  ;;  %v2727_v10 = vld [vmem:[%s7092_s7 + $0x298] sm:$0xff]  ;;  %v2722_v17 = vld [vmem:[%s7092_s7 + $0x270] sm:$0xff] }
 0x2ec   : > { %v2719_v18 = vld [vmem:[%s7092_s7 + $0x258] sm:$0xff] }
 0x2ed   : > { %3485 = vmatpush2.bf16.msra.mxu0 %v4749_v23  ;;  %3526 = vmatpush2.bf16.msra.mxu1 %v4751_v34  ;;  %v4699_v23 = vcombine.low %v2655_v13, %v2659_v14  ;;  %v2771_v34 = vld [vmem:[%s7092_s7 + $0x3f8] sm:$0xff] }
 0x2ee   : > { %3536 = vmatprep.subr.bf16.mxu0 %v4746_v35  ;;  %3577 = vmatprep.subr.bf16.mxu1 %v4748_v37  ;;  %v4692_v35 = vcombine.high %v2647_v25, %v2651_v26  ;;  %v2758_v37 = vld [vmem:[%s7092_s7 + $0x390] sm:$0xff]  ;;  %v4812_v42 = vcombine.high %v2767_v24, %v2771_v34 }
 0x2ef   : > { %v4802_v47 = vcombine.high %v2758_v37, %v2762_v38 }
 0x2f0   : > { %3487 = vmatmul.mubr.bf16.vlgmr.msra.gmra.mxu0 %v6684_v39  ;;  %3528 = vmatmul.mubr.bf16.vlgmr.msra.gmra.mxu1 %v6684_v39 }
 0x2f1   : > { %3537 = vmatpush1.bf16.msra.mxu0 %v4745_v41  ;;  %3578 = vmatpush1.bf16.msra.mxu1 %v4747_v43  ;;  %v4810_v41 = vcombine.high %v2766_v29, %v2770_v31  ;;  %v2759_v43 = vld [vmem:[%s7092_s7 + $0x398] sm:$0xff]  ;;  %v2714_v29 = vld [vmem:[%s7092_s7 + $0x230] sm:$0xff] }
 0x2f2   : > { %3538 = vmatprep.subr.bf16.mxu0 %v4738_v44  ;;  %3579 = vmatprep.subr.bf16.mxu1 %v4740_v46  ;;  %v2763_v44 = vld [vmem:[%s7092_s7 + $0x3b8] sm:$0xff]  ;;  %v4811_v46 = vcombine.low %v2767_v24, %v2771_v34 }
 0x2f3   : > { %3568 = vmatprep.mubr.bf16.mxu0 %v6583_v27  ;;  %3609 = vmatprep.mubr.bf16.mxu1 %v6583_v27  ;;  %v2675_v27 = vld [vmem:[%s7092_s7 + $0xf8] sm:$0xff]  ;;  %v4804_v48 = vcombine.high %v2759_v43, %v2763_v44  ;;  %v4803_v54 = vcombine.low %v2759_v43, %v2763_v44  ;;  %v5431_v43 = vld [vmem:[%s7094_s9 + $0x70] sm:$0xff]  }
 0x2f4   : > { %v4716_v8 = vcombine.high %v2671_v63, %v2675_v27  ;;  %v4715_v11 = vcombine.low %v2671_v63, %v2675_v27  ;;  %v2711_v31 = vld [vmem:[%s7092_s7 + $0x218] sm:$0xff]  ;;  %v5432_v44 = vld [vmem:[%s7094_s9 + $0xf0] sm:$0xff]  }
 0x2f5   : > { %3539 = vmatpush1.bf16.msra.mxu0 %v4737_v49  ;;  %3580 = vmatpush1.bf16.msra.mxu1 %v4739_v52  ;;  %v2750_v49 = vld [vmem:[%s7092_s7 + $0x350] sm:$0xff]  ;;  %v2755_v52 = vld [vmem:[%s7092_s7 + $0x378] sm:$0xff] }
 0x2f6   : > { %3540 = vmatprep.subr.bf16.mxu0 %v4730_v53  ;;  %3581 = vmatprep.subr.bf16.mxu1 %v4732_v56  ;;  %v4801_v53 = vcombine.low %v2758_v37, %v2762_v38  ;;  %v4794_v55 = vcombine.high %v2750_v49, %v2754_v50  ;;  %v4796_v56 = vcombine.high %v2751_v51, %v2755_v52  ;;  %v5427_v38 = vld [vmem:[%s7094_s9 + $0x78] sm:$0xff]  }
 0x2f7   : > { %v4795_v63 = vcombine.low %v2751_v51, %v2755_v52  ;;  %v5440_v51 = vld [vmem:[%s7094_s9 + $0xe0] sm:$0xff]  }
 0x2f8   : > { %v5441_v52 = vld [vmem:[%s7094_s9 + $0x20] sm:$0xff]  }
 0x2f9   : > { %3541 = vmatpush1.bf16.msra.mxu0 %v4729_v57  ;;  %3582 = vmatpush1.bf16.msra.mxu1 %v4731_v61  ;;  %v2742_v57 = vld [vmem:[%s7092_s7 + $0x310] sm:$0xff]  ;;  %v2747_v61 = vld [vmem:[%s7092_s7 + $0x338] sm:$0xff] }
 0x2fa   : > { %3542 = vmatprep.subr.bf16.mxu0 %v4722_v62  ;;  %3583 = vmatprep.subr.bf16.mxu1 %v4724_v0  ;;  %v4793_v62 = vcombine.low %v2750_v49, %v2754_v50  ;;  %v4786_v27 = vcombine.high %v2742_v57, %v2746_v58  ;;  %v4788_v0 = vcombine.high %v2743_v59, %v2747_v61  ;;  %v5438_v49 = vld [vmem:[%s7094_s9 + $0xa8] sm:$0xff]   ;;  %v5439_v50 = vld [vmem:[%s7094_s9 + $0x60] sm:$0xff]  }
 0x2fb   : > { %v4787_v6 = vcombine.low %v2743_v59, %v2747_v61  ;;  %v5448_v59 = vld [vmem:[%s7094_s9 + $0xd0] sm:$0xff]  }
 0x2fc   : > { %v5449_v61 = vld [vmem:[%s7094_s9 + $0x10] sm:$0xff]  }
 0x2fd   : > { %3543 = vmatpush1.bf16.msra.mxu0 %v4721_v60  ;;  %3584 = vmatpush1.bf16.msra.mxu1 %v4723_v4  ;;  %v2734_v60 = vld [vmem:[%s7092_s7 + $0x2d0] sm:$0xff]  ;;  %v2739_v4 = vld [vmem:[%s7092_s7 + $0x2f8] sm:$0xff] }
 0x2fe   : > { %3544 = vmatprep.subr.bf16.mxu0 %v4714_v5  ;;  %3585 = vmatprep.subr.bf16.mxu1 %v4716_v8  ;;  %v4785_v5 = vcombine.low %v2742_v57, %v2746_v58  ;;  %v4778_v7 = vcombine.high %v2734_v60, %v2738_v2  ;;  %v4780_v8 = vcombine.high %v2735_v3, %v2739_v4  ;;  %v5446_v57 = vld [vmem:[%s7094_s9 + $0x98] sm:$0xff]   ;;  %v5447_v58 = vld [vmem:[%s7094_s9 + $0x50] sm:$0xff]  }
 0x2ff   : > { %v4779_v13 = vcombine.low %v2735_v3, %v2739_v4  ;;  %v5456_v3 = vld [vmem:[%s7094_s9 + $0xc0] sm:$0xff]  }
 0x300   : > { %v5457_v4 = vld [vmem:[%s7094_s9] sm:$0xff]  }
 0x301   : > { %3545 = vmatpush1.bf16.msra.mxu0 %v4713_v9  ;;  %3586 = vmatpush1.bf16.msra.mxu1 %v4715_v11  ;;  %v2726_v9 = vld [vmem:[%s7092_s7 + $0x290] sm:$0xff]  ;;  %v2731_v11 = vld [vmem:[%s7092_s7 + $0x2b8] sm:$0xff] }
 0x302   : > { %3546 = vmatprep.subr.bf16.mxu0 %v4706_v12  ;;  %3587 = vmatprep.subr.bf16.mxu1 %v4708_v15  ;;  %v4777_v12 = vcombine.low %v2734_v60, %v2738_v2  ;;  %v4770_v14 = vcombine.high %v2726_v9, %v2730_v1  ;;  %v4772_v15 = vcombine.high %v2727_v10, %v2731_v11  ;;  %v5454_v60 = vld [vmem:[%s7094_s9 + $0x88] sm:$0xff]   ;;  %v5455_v2 = vld [vmem:[%s7094_s9 + $0x40] sm:$0xff]  }
 0x303   : > { %v4771_v25 = vcombine.low %v2727_v10, %v2731_v11 }
 0x305   : > { %3547 = vmatpush1.bf16.msra.mxu0 %v4705_v16  ;;  %3588 = vmatpush1.bf16.msra.mxu1 %v4707_v21  ;;  %v2718_v16 = vld [vmem:[%s7092_s7 + $0x250] sm:$0xff]  ;;  %v2723_v21 = vld [vmem:[%s7092_s7 + $0x278] sm:$0xff] }
 0x306   : > { %3548 = vmatprep.subr.bf16.mxu0 %v4698_v22  ;;  %3589 = vmatprep.subr.bf16.mxu1 %v4700_v19  ;;  %v4769_v22 = vcombine.low %v2726_v9, %v2730_v1  ;;  %v4762_v26 = vcombine.high %v2718_v16, %v2722_v17  ;;  %v4764_v19 = vcombine.high %v2719_v18, %v2723_v21  ;;  %v2784_v9 = vsub.s32 2, %v6430_v28 }
 0x307   : > { %v4763_v24 = vcombine.low %v2719_v18, %v2723_v21  ;;  %v2788_v1 = vsub.s32 3, %v6430_v28 }
 0x309   : > { %3549 = vmatpush1.bf16.msra.mxu0 %v4697_v20  ;;  %3590 = vmatpush1.bf16.msra.mxu1 %v4699_v23  ;;  %v2710_v20 = vld [vmem:[%s7092_s7 + $0x210] sm:$0xff]  ;;  %v2715_v23 = vld [vmem:[%s7092_s7 + $0x238] sm:$0xff] }
 0x30a   : > { %3550 = vmatprep.subr.bf16.mxu0 %v4690_v33  ;;  %3591 = vmatprep.subr.bf16.mxu1 %v4692_v35  ;;  %v4761_v33 = vcombine.low %v2718_v16, %v2722_v17  ;;  %v4754_v34 = vcombine.high %v2710_v20, %v2714_v29  ;;  %v4756_v35 = vcombine.high %v2711_v31, %v2715_v23 }
 0x30b   : > { %v4755_v37 = vcombine.low %v2711_v31, %v2715_v23 }
 0x30d   : > { %3551 = vmatpush1.bf16.msra.mxu0 %v4689_v36  ;;  %3592 = vmatpush1.bf16.msra.mxu1 %v4691_v40  ;;  %v4753_v36 = vcombine.low %v2710_v20, %v2714_v29  ;;  %v5428_v40 = vld [vmem:[%s7094_s9 + $0xf8] sm:$0xff]  }
 0x30e   : > { %3552 = vmatprep.subr.bf16.mxu0 %v4810_v41  ;;  %3593 = vmatprep.subr.bf16.mxu1 %v4812_v42  ;;  %v5429_v41 = vld [vmem:[%s7094_s9 + $0x38] sm:$0xff]  }
 0x30f   : > { %v5430_v42 = vld [vmem:[%s7094_s9 + $0xb8] sm:$0xff]  }
 0x311   : > { %3553 = vmatpush2.bf16.msra.mxu0 %v4809_v45  ;;  %3594 = vmatpush2.bf16.msra.mxu1 %v4811_v46  ;;  %v5433_v45 = vld [vmem:[%s7094_s9 + $0x30] sm:$0xff]  }
 0x312   : > { %3554 = vmatprep.subr.bf16.mxu0 %v4802_v47  ;;  %3595 = vmatprep.subr.bf16.mxu1 %v4804_v48  ;;  %v5434_v46 = vld [vmem:[%s7094_s9 + $0xb0] sm:$0xff]   ;;  %v5435_v47 = vld [vmem:[%s7094_s9 + $0x68] sm:$0xff]  }
 0x313   : > { %v5437_v48 = vld [vmem:[%s7094_s9 + $0x28] sm:$0xff]  }
 0x315   : > { %3555 = vmatpush2.bf16.msra.mxu0 %v4801_v53  ;;  %3596 = vmatpush2.bf16.msra.mxu1 %v4803_v54  ;;  %v5442_v53 = vld [vmem:[%s7094_s9 + $0xa0] sm:$0xff]   ;;  %v5443_v54 = vld [vmem:[%s7094_s9 + $0x58] sm:$0xff]  }
 0x316   : > { %3556 = vmatprep.subr.bf16.mxu0 %v4794_v55  ;;  %3597 = vmatprep.subr.bf16.mxu1 %v4796_v56  ;;  %v5444_v55 = vld [vmem:[%s7094_s9 + $0xd8] sm:$0xff]  }
 0x317   : > { %v5445_v56 = vld [vmem:[%s7094_s9 + $0x18] sm:$0xff]  }
 0x319   : > { %3557 = vmatpush2.bf16.msra.mxu0 %v4793_v62  ;;  %3598 = vmatpush2.bf16.msra.mxu1 %v4795_v63  ;;  %v5450_v62 = vld [vmem:[%s7094_s9 + $0x90] sm:$0xff]   ;;  %v5451_v63 = vld [vmem:[%s7094_s9 + $0x48] sm:$0xff]  }
 0x31a   : > { %3558 = vmatprep.subr.bf16.mxu0 %v4786_v27  ;;  %3599 = vmatprep.subr.bf16.mxu1 %v4788_v0  ;;  %v5452_v27 = vld [vmem:[%s7094_s9 + $0xc8] sm:$0xff]  }
 0x31b   : > { %v5453_v0 = vld [vmem:[%s7094_s9 + $0x8] sm:$0xff]  }
 0x31d   : > { %3559 = vmatpush2.bf16.msra.mxu0 %v4785_v5  ;;  %3600 = vmatpush2.bf16.msra.mxu1 %v4787_v6  ;;  %v5458_v5 = vld [vmem:[%s7094_s9 + $0x80] sm:$0xff]   ;;  %v5459_v6 = vld [vmem:[%s7094_s9 + $0x178] sm:$0xff]  }
 0x31e   : > { %3560 = vmatprep.subr.bf16.mxu0 %v4778_v7  ;;  %3601 = vmatprep.subr.bf16.mxu1 %v4780_v8  ;;  %v5460_v7 = vld [vmem:[%s7094_s9 + $0x1f8] sm:$0xff]   ;;  %v6968_v8 = vld [vmem:[%s7093_s8] sm:$0xff] }
 0x31f   : > { %v2777_v10 = vrot.slane %v6968_v8, %v6433_v30  ;;  %v2785_v11 = vrot.slane %v6968_v8, %v2784_v9  ;;  %v2796_v9 = vsub.s32 5, %v6430_v28 }
 0x321   : > { %3561 = vmatpush2.bf16.msra.mxu0 %v4777_v12  ;;  %3602 = vmatpush2.bf16.msra.mxu1 %v4779_v13  ;;  %v2781_v12 = vrot.slane %v6968_v8, %v6439_v32 }
 0x322   : > { %3562 = vmatprep.subr.bf16.mxu0 %v4770_v14  ;;  %3603 = vmatprep.subr.bf16.mxu1 %v4772_v15  ;;  %v2789_v14 = vrot.slane %v6968_v8, %v2788_v1  ;;  %v2804_v1 = vsub.s32 7, %v6430_v28 }
 0x325   : > { %3563 = vmatpush2.bf16.msra.mxu0 %v4769_v22  ;;  %3604 = vmatpush2.bf16.msra.mxu1 %v4771_v25 }
 0x326   : > { %3564 = vmatprep.subr.bf16.mxu0 %v4762_v26  ;;  %3605 = vmatprep.subr.bf16.mxu1 %v4764_v19 }
 0x329   : > { %3565 = vmatpush2.bf16.msra.mxu0 %v4761_v33  ;;  %3606 = vmatpush2.bf16.msra.mxu1 %v4763_v24 }
 0x32a   : > { %3566 = vmatprep.subr.bf16.mxu0 %v4754_v34  ;;  %3607 = vmatprep.subr.bf16.mxu1 %v4756_v35 }
 0x32d   : > { %3567 = vmatpush2.bf16.msra.mxu0 %v4753_v36  ;;  %3608 = vmatpush2.bf16.msra.mxu1 %v4755_v37  ;;  %v5461_v37 = vld [vmem:[%s7094_s9 + $0x138] sm:$0xff]  }
 0x32e   : > { %4882 = vmatprep.subr.bf16.mxu0 %v5427_v38  ;;  %4904 = vmatprep.subr.bf16.mxu1 %v5428_v40 }
 0x330   : > { %3569 = vmatmul.mubr.bf16.vlgmr.msra.gmra.mxu0 %v6684_v39  ;;  %3610 = vmatmul.mubr.bf16.vlgmr.msra.gmra.mxu1 %v6684_v39  ;;  %v5436_v39 = vld [vmem:[%s7094_s9 + $0xe8] sm:$0xff]  }
 0x331   : > { %4883 = vmatpush3.bf16.msra.mxu0 %v5429_v41  ;;  %4905 = vmatpush3.bf16.msra.mxu1 %v5430_v42  ;;  %v5462_v41 = vld [vmem:[%s7094_s9 + $0x1b8] sm:$0xff]   ;;  %v5463_v42 = vld [vmem:[%s7094_s9 + $0x170] sm:$0xff]  }
 0x332   : > { %4884 = vmatprep.subr.bf16.mxu0 %v5431_v43  ;;  %4906 = vmatprep.subr.bf16.mxu1 %v5432_v44  ;;  %v5464_v44 = vld [vmem:[%s7094_s9 + $0x1f0] sm:$0xff]  }
 0x335   : > { %4885 = vmatpush3.bf16.msra.mxu0 %v5433_v45  ;;  %4907 = vmatpush3.bf16.msra.mxu1 %v5434_v46  ;;  %v5465_v45 = vld [vmem:[%s7094_s9 + $0x130] sm:$0xff]  }
 0x336   : > { %4886 = vmatprep.subr.bf16.mxu0 %v5435_v47  ;;  %4908 = vmatprep.subr.bf16.mxu1 %v5436_v39  ;;  %v5466_v46 = vld [vmem:[%s7094_s9 + $0x1b0] sm:$0xff]   ;;  %v5467_v47 = vld [vmem:[%s7094_s9 + $0x168] sm:$0xff]  }
 0x337   : > { %v5468_v39 = vld [vmem:[%s7094_s9 + $0x1e8] sm:$0xff]  }
 0x339   : > { %4887 = vmatpush3.bf16.msra.mxu0 %v5437_v48  ;;  %4909 = vmatpush3.bf16.msra.mxu1 %v5438_v49  ;;  %v5469_v48 = vld [vmem:[%s7094_s9 + $0x128] sm:$0xff]  }
 0x33a   : > { %4888 = vmatprep.subr.bf16.mxu0 %v5439_v50  ;;  %4910 = vmatprep.subr.bf16.mxu1 %v5440_v51  ;;  %v5470_v49 = vld [vmem:[%s7094_s9 + $0x1a8] sm:$0xff]   ;;  %v5471_v50 = vld [vmem:[%s7094_s9 + $0x160] sm:$0xff]  }
 0x33b   : > { %v5472_v51 = vld [vmem:[%s7094_s9 + $0x1e0] sm:$0xff]  }
 0x33d   : > { %4889 = vmatpush3.bf16.msra.mxu0 %v5441_v52  ;;  %4911 = vmatpush3.bf16.msra.mxu1 %v5442_v53  ;;  %v5473_v52 = vld [vmem:[%s7094_s9 + $0x120] sm:$0xff]  }
 0x33e   : > { %4890 = vmatprep.subr.bf16.mxu0 %v5443_v54  ;;  %4912 = vmatprep.subr.bf16.mxu1 %v5444_v55  ;;  %v5474_v53 = vld [vmem:[%s7094_s9 + $0x1a0] sm:$0xff]   ;;  %v5475_v54 = vld [vmem:[%s7094_s9 + $0x158] sm:$0xff]  }
 0x33f   : > { %v5476_v55 = vld [vmem:[%s7094_s9 + $0x1d8] sm:$0xff]  }
 0x341   : > { %4891 = vmatpush3.bf16.msra.mxu0 %v5445_v56  ;;  %4913 = vmatpush3.bf16.msra.mxu1 %v5446_v57  ;;  %v5477_v56 = vld [vmem:[%s7094_s9 + $0x118] sm:$0xff]  }
 0x342   : > { %4892 = vmatprep.subr.bf16.mxu0 %v5447_v58  ;;  %4914 = vmatprep.subr.bf16.mxu1 %v5448_v59  ;;  %v5478_v57 = vld [vmem:[%s7094_s9 + $0x198] sm:$0xff]   ;;  %v5479_v58 = vld [vmem:[%s7094_s9 + $0x150] sm:$0xff]  }
 0x343   : > { %v5480_v59 = vld [vmem:[%s7094_s9 + $0x1d0] sm:$0xff]  }
 0x345   : > { %4893 = vmatpush3.bf16.msra.mxu0 %v5449_v61  ;;  %4915 = vmatpush3.bf16.msra.mxu1 %v5450_v62  ;;  %v5481_v61 = vld [vmem:[%s7094_s9 + $0x110] sm:$0xff]  }
 0x346   : > { %4894 = vmatprep.subr.bf16.mxu0 %v5451_v63  ;;  %4916 = vmatprep.subr.bf16.mxu1 %v5452_v27  ;;  %v5482_v62 = vld [vmem:[%s7094_s9 + $0x190] sm:$0xff]   ;;  %v5483_v63 = vld [vmem:[%s7094_s9 + $0x148] sm:$0xff]  }
 0x347   : > { %v5484_v27 = vld [vmem:[%s7094_s9 + $0x1c8] sm:$0xff]  }
 0x349   : > { %4895 = vmatpush3.bf16.msra.mxu0 %v5453_v0  ;;  %4917 = vmatpush3.bf16.msra.mxu1 %v5454_v60  ;;  %v5485_v0 = vld [vmem:[%s7094_s9 + $0x108] sm:$0xff]  }
 0x34a   : > { %4896 = vmatprep.subr.bf16.mxu0 %v5455_v2  ;;  %4918 = vmatprep.subr.bf16.mxu1 %v5456_v3  ;;  %v5486_v60 = vld [vmem:[%s7094_s9 + $0x188] sm:$0xff]   ;;  %v5487_v2 = vld [vmem:[%s7094_s9 + $0x140] sm:$0xff]  }
 0x34b   : > { %v5488_v3 = vld [vmem:[%s7094_s9 + $0x1c0] sm:$0xff]  }
 0x34d   : > { %4897 = vmatpush3.bf16.msra.mxu0 %v5457_v4  ;;  %4919 = vmatpush3.bf16.msra.mxu1 %v5458_v5  ;;  %v5489_v4 = vld [vmem:[%s7094_s9 + $0x100] sm:$0xff]  }
 0x34e   : > { %4926 = vmatprep.subr.bf16.mxu0 %v5459_v6  ;;  %4948 = vmatprep.subr.bf16.mxu1 %v5460_v7  ;;  %v5490_v5 = vld [vmem:[%s7094_s9 + $0x180] sm:$0xff]   ;;  %v2792_v6 = vsub.s32 4, %v6430_v28  ;;  %v2800_v7 = vsub.s32 6, %v6430_v28 }
 0x3b0   : > { %v3488_v13 = vpop.f32.mrf.mxu0  ;;  %v3529_v16 = vpop.f32.mrf.mxu1 }
 0x3b1   : > { %v3489_v15 = vadd.f32 %v3488_v13, %v2777_v10  ;;  %v3530_v17 = vadd.f32 %v3529_v16, %v2785_v11  ;;  %v2793_v10 = vrot.slane %v6968_v8, %v2792_v6  ;;  %v2801_v11 = vrot.slane %v6968_v8, %v2800_v7 }
 0x3b2   : > { %v3490_v18 = vpop.f32.mrf.mxu0  ;;  %v3531_v25 = vpop.f32.mrf.mxu1 }
 0x3b3   : > { %vm3618_vm4 = vcmp.ge.f32.partialorder %v3489_v15, 0.0  ;;  %v3626_v21 = vmul.f32 0.2, %v3489_v15  ;;  %v3491_v22 = vadd.f32 %v3490_v18, %v2781_v12  ;;  %vm3620_vm5 = vcmp.ge.f32.partialorder %v3530_v17, 0.0 }
 0x3b4   : > { %v3628_v26 = vmul.f32 0.2, %v3530_v17  ;;  %v3532_v19 = vadd.f32 %v3531_v25, %v2789_v14  ;;  %v3492_v30 = vpop.f32.mrf.mxu0  ;;  %v3533_v29 = vpop.f32.mrf.mxu1  ;;  %v2797_v12 = vrot.slane %v6968_v8, %v2796_v9  ;;  %v2805_v14 = vrot.slane %v6968_v8, %v2804_v1 }
 0x3b5   : > { %vm3619_vm6 = vcmp.ge.f32.partialorder %v3491_v22, 0.0  ;;  %v3627_v20 = vmul.f32 0.2, %v3491_v22  ;;  %v3634_v31 = vsel %vm3618_vm4, %v3489_v15, %v3626_v21 }
 0x3b6   : > { %vm3621_vm7 = vcmp.ge.f32.partialorder %v3532_v19, 0.0  ;;  %v3629_v32 = vmul.f32 0.2, %v3532_v19  ;;  %v3493_v23 = vpop.f32.mrf.mxu0  ;;  %v3636_v33 = vsel %vm3620_vm5, %v3530_v17, %v3628_v26  ;;  %v3534_v24 = vpop.f32.mrf.mxu1  ;;  %v3642_v38 = vpack.c.bf16 %v3634_v31, %v3634_v31 }
 0x3b7   : > { %v3635_v34 = vsel %vm3619_vm6, %v3491_v22, %v3627_v20  ;;  %v3644_v43 = vpack.c.bf16 %v3636_v33, %v3636_v33 }
 0x3b8   : > { %v3643_v35 = vpack.c.bf16 %v3635_v34, %v3635_v34  ;;  %v3637_v36 = vsel %vm3621_vm7, %v3532_v19, %v3629_v32 }
 0x3b9   : > { %v3645_v40 = vpack.c.bf16 %v3637_v36, %v3637_v36 }
 0x3ba   : > { %4201 = vmatprep.mubr.bf16.mxu0 %v3643_v35 }
 0x3bb   : > { %4241 = vmatprep.mubr.bf16.mxu1 %v3645_v40  ;;  %4202 = vmatmul.mubr.bf16.vlgmr.msra.gmra.mxu0 %v3642_v38 }
 0x3bc   : > { %4242 = vmatmul.mubr.bf16.vlgmr.msra.gmra.mxu1 %v3644_v43  ;;  %4927 = vmatpush3.bf16.msra.mxu0 %v5461_v37 }
 0x3bd   : > { %4949 = vmatpush3.bf16.msra.mxu1 %v5462_v41  ;;  %4928 = vmatprep.subr.bf16.mxu0 %v5463_v42 }
 0x3be   : > { %4950 = vmatprep.subr.bf16.mxu1 %v5464_v44 }
 0x3c0   : > { %4929 = vmatpush3.bf16.msra.mxu0 %v5465_v45 }
 0x3c1   : > { %4951 = vmatpush3.bf16.msra.mxu1 %v5466_v46  ;;  %4930 = vmatprep.subr.bf16.mxu0 %v5467_v47 }
 0x3c2   : > { %4952 = vmatprep.subr.bf16.mxu1 %v5468_v39  ;;  %v4813_v39 = vld [vmem:[%s7095_s10] ss:$0 sm:$0xff] }
 0x3c4   : > { %4931 = vmatpush3.bf16.msra.mxu0 %v5469_v48 }
 0x3c5   : > { %4953 = vmatpush3.bf16.msra.mxu1 %v5470_v49  ;;  %4932 = vmatprep.subr.bf16.mxu0 %v5471_v50 }
 0x3c6   : > { %4954 = vmatprep.subr.bf16.mxu1 %v5472_v51 }
 0x3c8   : > { %4933 = vmatpush3.bf16.msra.mxu0 %v5473_v52 }
 0x3c9   : > { %4955 = vmatpush3.bf16.msra.mxu1 %v5474_v53  ;;  %4934 = vmatprep.subr.bf16.mxu0 %v5475_v54 }
 0x3ca   : > { %4956 = vmatprep.subr.bf16.mxu1 %v5476_v55 }
 0x3cc   : > { %4935 = vmatpush3.bf16.msra.mxu0 %v5477_v56 }
 0x3cd   : > { %4957 = vmatpush3.bf16.msra.mxu1 %v5478_v57  ;;  %4936 = vmatprep.subr.bf16.mxu0 %v5479_v58 }
 0x3ce   : > { %4958 = vmatprep.subr.bf16.mxu1 %v5480_v59 }
 0x3d0   : > { %4937 = vmatpush3.bf16.msra.mxu0 %v5481_v61 }
 0x3d1   : > { %4959 = vmatpush3.bf16.msra.mxu1 %v5482_v62  ;;  %4938 = vmatprep.subr.bf16.mxu0 %v5483_v63 }
 0x3d2   : > { %4960 = vmatprep.subr.bf16.mxu1 %v5484_v27 }
 0x3d4   : > { %4939 = vmatpush3.bf16.msra.mxu0 %v5485_v0 }
 0x3d5   : > { %4961 = vmatpush3.bf16.msra.mxu1 %v5486_v60  ;;  %4940 = vmatprep.subr.bf16.mxu0 %v5487_v2 }
 0x3d6   : > { %4962 = vmatprep.subr.bf16.mxu1 %v5488_v3 }
 0x3d8   : > { %4941 = vmatpush3.bf16.msra.mxu0 %v5489_v4 }
 0x3d9   : > { %4963 = vmatpush3.bf16.msra.mxu1 %v5490_v5 }
 0x3f0   : > { %v3570_v13 = vpop.f32.mrf.mxu0  ;;  %v3611_v16 = vpop.f32.mrf.mxu1 }
 0x3f1   : > { %v3571_v15 = vadd.f32 %v3570_v13, %v2793_v10  ;;  %v3612_v17 = vadd.f32 %v3611_v16, %v2801_v11 }
 0x3f2   : > { %v3572_v18 = vpop.f32.mrf.mxu0  ;;  %v3613_v25 = vpop.f32.mrf.mxu1 }
 0x3f3   : > { %vm3622_vm8 = vcmp.ge.f32.partialorder %v3571_v15, 0.0  ;;  %v3630_v21 = vmul.f32 0.2, %v3571_v15  ;;  %v3573_v22 = vadd.f32 %v3572_v18, %v2797_v12  ;;  %vm3624_vm9 = vcmp.ge.f32.partialorder %v3612_v17, 0.0 }
 0x3f4   : > { %v3632_v26 = vmul.f32 0.2, %v3612_v17  ;;  %v3614_v28 = vadd.f32 %v3613_v25, %v2805_v14  ;;  %v3574_v19 = vpop.f32.mrf.mxu0  ;;  %v3615_v20 = vpop.f32.mrf.mxu1 }
 0x3f5   : > { %vm3623_vm10 = vcmp.ge.f32.partialorder %v3573_v22, 0.0  ;;  %v3631_v30 = vmul.f32 0.2, %v3573_v22  ;;  %v3638_v29 = vsel %vm3622_vm8, %v3571_v15, %v3630_v21 }
 0x3f6   : > { %vm3625_vm11 = vcmp.ge.f32.partialorder %v3614_v28, 0.0  ;;  %v3633_v31 = vmul.f32 0.2, %v3614_v28  ;;  %v3575_v32 = vpop.f32.mrf.mxu0  ;;  %v3640_v8 = vsel %vm3624_vm9, %v3612_v17, %v3632_v26  ;;  %v3616_v23 = vpop.f32.mrf.mxu1  ;;  %v3646_v35 = vpack.c.bf16 %v3638_v29, %v3638_v29 }
 0x3f7   : > { %v3639_v33 = vsel %vm3623_vm10, %v3573_v22, %v3631_v30  ;;  %v3648_v37 = vpack.c.bf16 %v3640_v8, %v3640_v8 }
 0x3f8   : > { %v3647_v24 = vpack.c.bf16 %v3639_v33, %v3639_v33  ;;  %v3641_v34 = vsel %vm3625_vm11, %v3614_v28, %v3633_v31 }
 0x3f9   : > { %v3649_v36 = vpack.c.bf16 %v3641_v34, %v3641_v34 }
 0x3fa   : > { %4281 = vmatprep.mubr.bf16.mxu0 %v3647_v24 }
 0x3fb   : > { %4321 = vmatprep.mubr.bf16.mxu1 %v3649_v36  ;;  %4282 = vmatmul.mubr.bf16.vlgmr.msra.gmra.mxu0 %v3646_v35 }
 0x3fc   : > { %4322 = vmatmul.mubr.bf16.vlgmr.msra.gmra.mxu1 %v3648_v37 }
 0x47b   : > { %v4898_v38 = vpop.f32.mrf.mxu0 }
 0x47c   : > { %v4920_v40 = vpop.f32.mrf.mxu1 }
 0x47d   : > { %v4899_v41 = vpop.f32.mrf.mxu0 }
 0x47e   : > { %v4921_v42 = vpop.f32.mrf.mxu1  ;;  %v4900_v47 = vadd.f32 %v4899_v41, %v4898_v38 }
 0x47f   : > { %v4901_v43 = vpop.f32.mrf.mxu0  ;;  %v4922_v50 = vadd.f32 %v4921_v42, %v4920_v40 }
 0x480   : > { %v4923_v44 = vpop.f32.mrf.mxu1  ;;  %v4204_v48 = vadd.f32 %v4900_v47, %v4813_v39 }
 0x481   : > { %v4902_v45 = vpop.f32.mrf.mxu0 }
 0x482   : > { %v4924_v46 = vpop.f32.mrf.mxu1  ;;  %v4244_v53 = vadd.f32 %v4922_v50, %v4204_v48 }
 0x4bb   : > { %v4942_v49 = vpop.f32.mrf.mxu0 }
 0x4bc   : > { %v4964_v51 = vpop.f32.mrf.mxu1 }
 0x4bd   : > { %v4943_v52 = vpop.f32.mrf.mxu0 }
 0x4be   : > { %v4944_v54 = vadd.f32 %v4943_v52, %v4942_v49  ;;  %v4965_v55 = vpop.f32.mrf.mxu1 }
 0x4bf   : > { %v4945_v56 = vpop.f32.mrf.mxu0  ;;  %v4966_v58 = vadd.f32 %v4965_v55, %v4964_v51 }
 0x4c0   : > { %v4284_v57 = vadd.f32 %v4944_v54, %v4244_v53  ;;  %v4967_v59 = vpop.f32.mrf.mxu1 }
 0x4c1   : > { %v4946_v61 = vpop.f32.mrf.mxu0 }
 0x4c2   : > { %v4324_v62 = vadd.f32 %v4966_v58, %v4284_v57  ;;  %v4968_v63 = vpop.f32.mrf.mxu1 }
 0x4c4   : > { %4330 = vst.msk [vmem:[%s7096_s11] sm:$0xff] %vm4329_vm12, %v4324_v62 }
 0x4c5 PF: > { %s21_s17 = sadd.s32 1, %s5497_s17  }
 0x4c6   : > { %p18_p6 = scmp.ge.s32.totalorder %s21_s17, 18  }
 0x4c8   :  { %20 = sbr.rel (!%p18_p6) target bundleno = 1 (0x1), region = 101 }

</bundles_post_ra>
